<compile_context>
chip_gen: v6e
topology: v6e:2x2x1
jax: 0.10.0
libtpu: 0.0.40
codegen_flags: <defaults>
</compile_context>

<pallas_src>
import functools

import numpy as np
import jax
import jax.numpy as jnp
from jax.experimental import pallas as pl
from jax.experimental.pallas import tpu as pltpu


# ----------------------------------------------------------------------------
# helpers
# ----------------------------------------------------------------------------
_VMEM_LIMIT = 48 * 1024 * 1024   # conservative budget; fits v7x's 64 MiB physical VMEM


def _cparams(dims):
    return pltpu.CompilerParams(dimension_semantics=dims,
                                vmem_limit_bytes=_VMEM_LIMIT)


def _pick_tile(dim, candidates):
    """Largest candidate that divides `dim`; fall back to the full dim (always legal)."""
    for c in candidates:
        if dim >= c and dim % c == 0:
            return c
    return dim


# ----------------------------------------------------------------------------
# Fused linear kernel: [LayerNorm] -> matmul(bf16, f32 acc) -> +bias [-> GELU] [-> +residual]
# ----------------------------------------------------------------------------
def _fused_linear_kernel(*refs, act, has_ln, has_res, n_k, eps):
    it = iter(refs)
    x_ref = next(it)
    w_ref = next(it)
    b_ref = next(it)
    g_ref = bt_ref = r_ref = None
    if has_ln:
        g_ref = next(it)
        bt_ref = next(it)
    if has_res:
        r_ref = next(it)
    o_ref = next(it)
    acc_ref = next(it)

    k = pl.program_id(2)

    @pl.when(k == 0)
    def _():
        acc_ref[...] = jnp.zeros(acc_ref.shape, acc_ref.dtype)

    x = x_ref[...]
    if has_ln:
        mu = jnp.mean(x, axis=-1, keepdims=True)
        var = jnp.mean((x - mu) ** 2, axis=-1, keepdims=True)
        x = (x - mu) * jax.lax.rsqrt(var + eps) * g_ref[...] + bt_ref[...]

    acc_ref[...] += jnp.dot(x.astype(jnp.bfloat16), w_ref[...].astype(jnp.bfloat16),
                            preferred_element_type=jnp.float32)

    @pl.when(k == n_k - 1)
    def _():
        y = acc_ref[...] + b_ref[...]
        if act == "gelu":                         # exact (erf) GELU, like nn.GELU()
            y = 0.5 * y * (1.0 + jax.lax.erf(y * 0.7071067811865476))
        if has_res:
            y = y + r_ref[...]
        o_ref[...] = y


def fused_linear(x, w, b, *, gamma=None, beta=None, residual=None, act=None, eps=1e-5):
    """x: (M, K), w: (K, N), b: (N,).  Optional LN prologue (gamma/beta over K),
    GELU epilogue and residual add (residual: (M, N)).  Returns (M, N) f32."""
    M, K = x.shape
    N = w.shape[1]
    has_ln = gamma is not None
    has_res = residual is not None

    tm = _pick_tile(M, (256, 128, 64, 32, 16, 8))
    tn = _pick_tile(N, (512, 256, 128))            # prefer 256-multiples (v6e/v7x MXU)
    tk = K if has_ln else _pick_tile(K, (512, 256, 128))   # LN needs the full row
    gm, gn, gk = M // tm, N // tn, K // tk

    in_arrays = [x, w, b.reshape(1, N)]
    in_specs = [
        pl.BlockSpec((tm, tk), lambda i, j, k: (i, k)),
        pl.BlockSpec((tk, tn), lambda i, j, k: (k, j)),
        pl.BlockSpec((1, tn), lambda i, j, k: (0, j)),
    ]
    if has_ln:
        in_arrays += [gamma.reshape(1, K), beta.reshape(1, K)]
        in_specs += [pl.BlockSpec((1, tk), lambda i, j, k: (0, k)),
                     pl.BlockSpec((1, tk), lambda i, j, k: (0, k))]
    if has_res:
        in_arrays.append(residual)
        in_specs.append(pl.BlockSpec((tm, tn), lambda i, j, k: (i, j)))

    kernel = functools.partial(_fused_linear_kernel, act=act, has_ln=has_ln,
                               has_res=has_res, n_k=gk, eps=eps)
    return pl.pallas_call(
        kernel,
        grid=(gm, gn, gk),
        in_specs=in_specs,
        out_specs=pl.BlockSpec((tm, tn), lambda i, j, k: (i, j)),
        out_shape=jax.ShapeDtypeStruct((M, N), jnp.float32),
        scratch_shapes=[pltpu.VMEM((tm, tn), jnp.float32)],
        compiler_params=_cparams(("parallel", "parallel", "arbitrary")),
    )(*in_arrays)


# ----------------------------------------------------------------------------
# Flash attention kernel (online softmax, grid over batch x heads x q-tiles x kv-tiles)
# ----------------------------------------------------------------------------
def _flash_attn_kernel(q_ref, k_ref, v_ref, o_ref, m_sc, l_sc, acc_sc, *, scale, n_kv):
    ki = pl.program_id(3)

    @pl.when(ki == 0)
    def _():
        m_sc[...] = jnp.full(m_sc.shape, -jnp.inf, m_sc.dtype)
        l_sc[...] = jnp.zeros(l_sc.shape, l_sc.dtype)
        acc_sc[...] = jnp.zeros(acc_sc.shape, acc_sc.dtype)

    q = q_ref[...].astype(jnp.bfloat16)          # (tq, hd)
    kk = k_ref[...].astype(jnp.bfloat16)         # (tkv, hd)
    v = v_ref[...].astype(jnp.bfloat16)          # (tkv, hd)

    s = jax.lax.dot_general(q, kk, (((1,), (1,)), ((), ())),
                            preferred_element_type=jnp.float32) * scale   # (tq, tkv)
    m_prev = m_sc[...]
    m_new = jnp.maximum(m_prev, jnp.max(s, axis=-1, keepdims=True))
    alpha = jnp.exp(m_prev - m_new)
    p = jnp.exp(s - m_new)
    l_sc[...] = alpha * l_sc[...] + jnp.sum(p, axis=-1, keepdims=True)
    acc_sc[...] = alpha * acc_sc[...] + jnp.dot(p.astype(jnp.bfloat16), v,
                                                preferred_element_type=jnp.float32)
    m_sc[...] = m_new

    @pl.when(ki == n_kv - 1)
    def _():
        o_ref[...] = acc_sc[...] * pl.reciprocal(l_sc[...], approx=True)


def flash_attention(q, k, v, scale):
    """q, k, v: (N, H, L, hd) f32 -> (N, H, L, hd) f32."""
    N, H, Lq, hd = q.shape
    Lk = k.shape[2]
    tq = _pick_tile(Lq, (256, 128, 64, 32, 16, 8))
    tkv = _pick_tile(Lk, (512, 256, 128, 64, 32, 16, 8))
    n_kv = Lk // tkv

    kernel = functools.partial(_flash_attn_kernel, scale=scale, n_kv=n_kv)
    return pl.pallas_call(
        kernel,
        grid=(N, H, Lq // tq, n_kv),
        in_specs=[
            pl.BlockSpec((None, None, tq, hd), lambda n, h, qi, ki: (n, h, qi, 0)),
            pl.BlockSpec((None, None, tkv, hd), lambda n, h, qi, ki: (n, h, ki, 0)),
            pl.BlockSpec((None, None, tkv, hd), lambda n, h, qi, ki: (n, h, ki, 0)),
        ],
        out_specs=pl.BlockSpec((None, None, tq, hd), lambda n, h, qi, ki: (n, h, qi, 0)),
        out_shape=jax.ShapeDtypeStruct((N, H, Lq, hd), jnp.float32),
        scratch_shapes=[pltpu.VMEM((tq, 1), jnp.float32),
                        pltpu.VMEM((tq, 1), jnp.float32),
                        pltpu.VMEM((tq, hd), jnp.float32)],
        compiler_params=_cparams(("parallel", "parallel", "parallel", "arbitrary")),
    )(q, k, v)
    # TODO(synk): heads could be packed along lanes (hd<128) for lane-dense stores /
    # fuller MXU occupancy; kept hd-last layout for layout-legality across configs.


# ----------------------------------------------------------------------------
# Masked MSE loss kernel (row-tiled reduction, SMEM scalar accumulators)
# ----------------------------------------------------------------------------
def _masked_mse_kernel(p_ref, t_ref, m_ref, num_ref, den_ref):
    @pl.when(pl.program_id(0) == 0)
    def _():
        num_ref[0, 0] = jnp.float32(0.0)
        den_ref[0, 0] = jnp.float32(0.0)
    d = (p_ref[...] - t_ref[...]) ** 2 * m_ref[...]
    num_ref[0, 0] += jnp.sum(d)
    den_ref[0, 0] += jnp.sum(m_ref[...])


def masked_mse_pallas(pred2d, target2d, mask2d):
    M, D = pred2d.shape
    tr = _pick_tile(M, (1024, 512, 256, 128, 64, 32, 16, 8))
    num, den = pl.pallas_call(
        _masked_mse_kernel,
        grid=(M // tr,),
        in_specs=[pl.BlockSpec((tr, D), lambda i: (i, 0))] * 3,
        out_specs=(pl.BlockSpec((1, 1), lambda i: (0, 0),
                                memory_space=pltpu.MemorySpace.SMEM),
                   pl.BlockSpec((1, 1), lambda i: (0, 0),
                                memory_space=pltpu.MemorySpace.SMEM)),
        out_shape=(jax.ShapeDtypeStruct((1, 1), jnp.float32),
                   jax.ShapeDtypeStruct((1, 1), jnp.float32)),
        compiler_params=_cparams(("arbitrary",)),
    )(pred2d, target2d, mask2d)
    return num, den


# ----------------------------------------------------------------------------
# Model pieces (glue in plain JAX, compute in the Pallas kernels above)
# ----------------------------------------------------------------------------
def get_2d_sincos_pos_embed(embed_dim, grid_size):
    def get_1d(dim, pos):
        omega = np.arange(dim // 2, dtype=np.float32)
        omega /= dim / 2.0
        omega = 1.0 / 10000 ** omega
        out = np.einsum("m,d->md", pos.reshape(-1), omega)
        return np.concatenate([np.sin(out), np.cos(out)], axis=1)

    grid_h = np.arange(grid_size, dtype=np.float32)
    grid_w = np.arange(grid_size, dtype=np.float32)
    grid = np.meshgrid(grid_w, grid_h)           # w goes first
    grid = np.stack(grid, axis=0).reshape([2, 1, grid_size, grid_size])
    emb_h = get_1d(embed_dim // 2, grid[0])
    emb_w = get_1d(embed_dim // 2, grid[1])
    return np.concatenate([emb_h, emb_w], axis=1).astype(np.float32)


def patchify(imgs, p):
    # (N, C, H, W) -> (N, L, p*p*C) with per-patch flatten order (p, q, c)
    N, C, H, W = imgs.shape
    h = w = H // p
    x = imgs.reshape(N, C, h, p, w, p)
    x = x.transpose(0, 2, 4, 3, 5, 1)            # n h w p q c
    return x.reshape(N, h * w, p * p * C)


def patch_embed_apply(imgs, w, b, p):
    # Conv2d(kernel=stride=p) == im2col (flatten order (c, p, q)) + matmul.
    N, C, H, W = imgs.shape
    h = wn = H // p
    x = imgs.reshape(N, C, h, p, wn, p).transpose(0, 2, 4, 1, 3, 5)   # n h w c p q
    x = x.reshape(N * h * wn, C * p * p)
    wm = w.reshape(w.shape[0], -1).T                                  # (C*p*p, E)
    y = fused_linear(x, wm, b)
    return y.reshape(N, h * wn, -1)


def transformer_block(x, bp, num_heads):
    N, L, D = x.shape
    hd = D // num_heads
    x2 = x.reshape(N * L, D)

    # --- attention: LN1 fused as prologue of the qkv projection ---
    qkv = fused_linear(x2, bp["qkv_w"], bp["qkv_b"], gamma=bp["ln1_g"], beta=bp["ln1_b"])
    qkv = qkv.reshape(N, L, 3, num_heads, hd).transpose(2, 0, 3, 1, 4)   # (3, N, H, L, hd)
    o = flash_attention(qkv[0], qkv[1], qkv[2], scale=hd ** -0.5)        # (N, H, L, hd)
    o = o.transpose(0, 2, 1, 3).reshape(N * L, D)
    # output projection with fused residual add (x = x + attn(norm1(x)))
    x2 = fused_linear(o, bp["proj_w"], bp["proj_b"], residual=x2)

    # --- MLP: LN2 fused into fc1 prologue (+GELU epilogue), residual fused into fc2 ---
    h = fused_linear(x2, bp["fc1_w"], bp["fc1_b"],
                     gamma=bp["ln2_g"], beta=bp["ln2_b"], act="gelu")
    x2 = fused_linear(h, bp["fc2_w"], bp["fc2_b"], residual=x2)
    return x2.reshape(N, L, D)


def adaptive_random_masking(x, mask_img, mask_ratio, key):
    # TODO(synk): torch.rand / torch.argsort are replaced by jax.random + jnp.argsort
    # (tie-breaking may differ from torch but semantics are preserved).
    N, L, D = x.shape
    s = int(np.sqrt(L))
    H = mask_img.shape[2]
    f = H // s
    # F.interpolate(mode='area') with exact divisor == block average pooling.
    m = mask_img.reshape(N, 1, s, f, s, f).mean(axis=(3, 5))
    m = (m > 0).astype(jnp.float32).reshape(N, L)
    resize_mask = m
    len_keep = int(L * (1 - mask_ratio))
    noise = jax.random.uniform(key, (N, L), jnp.float32)
    noise = jnp.clip(noise + m, 0.0, 1.0)
    ids_shuffle = jnp.argsort(noise, axis=1)
    ids_restore = jnp.argsort(ids_shuffle, axis=1)
    ids_keep = ids_shuffle[:, :len_keep]
    x_masked = jnp.take_along_axis(x, ids_keep[:, :, None], axis=1)
    mask = jnp.ones((N, L), jnp.float32).at[:, :len_keep].set(0.0)
    mask = jnp.take_along_axis(mask, ids_restore, axis=1)
    # nearest upsample (integer factor) == repeat
    rm_com = ((1.0 - resize_mask) * mask).reshape(N, 1, s, s)
    rm_com = jnp.repeat(jnp.repeat(rm_com, f, axis=2), f, axis=3)
    rm = (resize_mask * mask).reshape(N, 1, s, s)
    rm = jnp.repeat(jnp.repeat(rm, f, axis=2), f, axis=3)
    irr_mask = mask_img * rm + rm_com
    return x_masked, mask, ids_restore, irr_mask


def mae_forward(params, imgs, mask_img, noise_key, *, cfg, mask_ratio):
    p = cfg["patch_size"]; C = cfg["in_chans"]
    E = cfg["embed_dim"]; Dd = cfg["decoder_embed_dim"]
    N, _, H, W = imgs.shape
    g = H // p
    L = g * g

    # ------------------ encoder ------------------
    x = patch_embed_apply(imgs, params["patch_embed_w"], params["patch_embed_b"], p)
    x = x + params["pos_embed"]
    x, mask, ids_restore, irr_mask = adaptive_random_masking(x, mask_img, mask_ratio, noise_key)
    for bp in params["blocks"]:
        x = transformer_block(x, bp, cfg["num_heads"])
    # encoder final LayerNorm is fused as the prologue of decoder_embed
    Nl = x.shape[1]
    xd = fused_linear(x.reshape(-1, E), params["decoder_embed_w"], params["decoder_embed_b"],
                      gamma=params["norm_g"], beta=params["norm_b"]).reshape(N, Nl, Dd)

    # ------------------ decoder ------------------
    input2embed = jnp.concatenate([imgs * (1.0 - irr_mask), irr_mask], axis=1)   # (N, C+1, H, W)
    f = H // g
    pm = irr_mask.reshape(N, 1, g, f, g, f).mean(axis=(3, 5)).reshape(N, L, 1)
    total_mask = jnp.where(pm > 0, 1.0, pm)
    pm_hard = jnp.where(pm < 1.0, 0.0, pm)
    partial_mask = total_mask - pm_hard
    img_embedding = patch_embed_apply(input2embed, params["decoder_patch_embed_w"],
                                      params["decoder_patch_embed_b"], p)        # (N, L, Dd)
    n_mask_tok = L + 1 - Nl
    mask_tokens = jnp.broadcast_to(params["mask_token"], (N, n_mask_tok, Dd))
    x_ = jnp.concatenate([xd, mask_tokens], axis=1)
    x_ = jnp.take_along_axis(x_, ids_restore[:, :, None], axis=1)
    alpha = jnp.clip(params["alpha"], 0.0, 1.0)
    xd = x_ * (1.0 - partial_mask) + (x_ * alpha + img_embedding * (1.0 - alpha)) * partial_mask
    xd = xd + params["decoder_pos_embed"]
    for bp in params["decoder_blocks"]:
        xd = transformer_block(xd, bp, cfg["decoder_num_heads"])
    # decoder final LayerNorm fused as the prologue of decoder_pred
    pred = fused_linear(xd.reshape(-1, Dd), params["decoder_pred_w"], params["decoder_pred_b"],
                        gamma=params["decoder_norm_g"], beta=params["decoder_norm_b"]
                        ).reshape(N, L, p * p * C)

    # ------------------ loss ------------------
    target = patchify(imgs, p)
    mask_p = patchify(jnp.tile(irr_mask, (1, C, 1, 1)), p)
    num, den = masked_mse_pallas(pred.reshape(-1, p * p * C),
                                 target.reshape(-1, p * p * C),
                                 mask_p.reshape(-1, p * p * C))
    loss = num[0, 0] / den[0, 0]
    return loss, pred, mask, irr_mask, partial_mask


# ----------------------------------------------------------------------------
# Deterministic parameter initialization (synthetic weights, shapes per __init__)
# ----------------------------------------------------------------------------
def init_params(key, cfg):
    p = cfg["patch_size"]; C = cfg["in_chans"]
    E = cfg["embed_dim"]; Dd = cfg["decoder_embed_dim"]
    g = cfg["img_size"] // p
    hid = int(E * cfg["mlp_ratio"]); dhid = int(Dd * cfg["mlp_ratio"])
    keys = iter(jax.random.split(key, 256))

    def nrm(shape, std=0.02):
        return jax.random.normal(next(keys), shape, jnp.float32) * std

    def block_params(D, hidden):
        return dict(
            ln1_g=jnp.ones((D,), jnp.float32), ln1_b=jnp.zeros((D,), jnp.float32),
            qkv_w=nrm((D, 3 * D)), qkv_b=jnp.zeros((3 * D,), jnp.float32),
            proj_w=nrm((D, D)), proj_b=jnp.zeros((D,), jnp.float32),
            ln2_g=jnp.ones((D,), jnp.float32), ln2_b=jnp.zeros((D,), jnp.float32),
            fc1_w=nrm((D, hidden)), fc1_b=jnp.zeros((hidden,), jnp.float32),
            fc2_w=nrm((hidden, D)), fc2_b=jnp.zeros((D,), jnp.float32),
        )

    return dict(
        patch_embed_w=nrm((E, C, p, p)), patch_embed_b=jnp.zeros((E,), jnp.float32),
        pos_embed=jnp.asarray(get_2d_sincos_pos_embed(E, g))[None],
        blocks=[block_params(E, hid) for _ in range(cfg["depth"])],
        norm_g=jnp.ones((E,), jnp.float32), norm_b=jnp.zeros((E,), jnp.float32),
        decoder_embed_w=nrm((E, Dd)), decoder_embed_b=jnp.zeros((Dd,), jnp.float32),
        mask_token=nrm((1, 1, Dd)),
        decoder_pos_embed=jnp.asarray(get_2d_sincos_pos_embed(Dd, g))[None],
        decoder_blocks=[block_params(Dd, dhid) for _ in range(cfg["decoder_depth"])],
        decoder_norm_g=jnp.ones((Dd,), jnp.float32), decoder_norm_b=jnp.zeros((Dd,), jnp.float32),
        decoder_pred_w=nrm((Dd, p * p * C)), decoder_pred_b=jnp.zeros((p * p * C,), jnp.float32),
        decoder_patch_embed_w=nrm((Dd, C + 1, p, p)),
        decoder_patch_embed_b=jnp.zeros((Dd,), jnp.float32),
        alpha=jnp.float32(1.0),
    )


# ----------------------------------------------------------------------------
if __name__ == "__main__":
    cfg = dict(img_size=32, patch_size=8, in_chans=3,
               embed_dim=64, depth=2, num_heads=4,
               decoder_embed_dim=32, decoder_depth=2, decoder_num_heads=4,
               mlp_ratio=4.0)

    key = jax.random.PRNGKey(0)
    k_param, k_img, k_noise = jax.random.split(key, 3)

    params = init_params(k_param, cfg)
    imgs = jax.random.normal(k_img, (2, cfg["in_chans"], cfg["img_size"], cfg["img_size"]),
                             jnp.float32)
    mask = jnp.zeros((2, 1, cfg["img_size"], cfg["img_size"]), jnp.float32)
    mask = mask.at[:, :, 8:24, 8:24].set(1.0)   # irregular-region mask (binary)

    fwd = jax.jit(functools.partial(mae_forward, cfg=cfg, mask_ratio=0.75))
    loss, pred, out_mask, irr_mask, partial_mask = fwd(params, imgs, mask, k_noise)
    jax.block_until_ready((loss, pred, out_mask, irr_mask, partial_mask))

    assert pred.shape == (2, 16, cfg["patch_size"] ** 2 * cfg["in_chans"])
    assert out_mask.shape == (2, 16)
    assert irr_mask.shape == (2, 1, 32, 32)
    assert partial_mask.shape == (2, 16, 1)
    assert bool(jnp.isfinite(loss))
    print("KERNEL_OK")
</pallas_src>

<mosaic_0001>
module attributes {stable_mosaic.version = 11 : i64} {
  func.func @_fused_linear_kernel(%arg0: i32, %arg1: i32, %arg2: i32, %arg3: memref<32x256xf32, #tpu.memory_space<vmem>>, %arg4: memref<256x32xf32, #tpu.memory_space<vmem>>, %arg5: memref<1x32xf32, #tpu.memory_space<vmem>>, %arg6: memref<32x32xf32, #tpu.memory_space<vmem>>, %arg7: memref<32x32xf32, #tpu.memory_space<vmem>>) attributes {dimension_semantics = [#tpu.dimension_semantics<parallel>, #tpu.dimension_semantics<parallel>, #tpu.dimension_semantics<arbitrary>], iteration_bounds = array<i64: 1, 1, 1>, scalar_prefetch = 0 : i64, scratch_operands = 1 : i64, tpu.core_type = #tpu.core_type<tc>, window_params = [{transform_indices = @transform_0, window_bounds = array<i64: 32, 256>}, {transform_indices = @transform_1, window_bounds = array<i64: 256, 32>}, {transform_indices = @transform_2, window_bounds = array<i64: 1, 32>}, {transform_indices = @transform_3, window_bounds = array<i64: 32, 32>}]} {
    %c0_i32 = arith.constant 0 : i32
    %0 = arith.cmpi eq, %arg2, %c0_i32 : i32
    %1 = arith.extui %0 : i1 to i32
    %c0_i32_0 = arith.constant 0 : i32
    %2 = arith.cmpi ne, %1, %c0_i32_0 : i32
    scf.if %2 {
      %cst_10 = arith.constant 0.000000e+00 : f32
      %14 = vector.broadcast %cst_10 : f32 to vector<32x32xf32>
      %c0_11 = arith.constant 0 : index
      %c0_12 = arith.constant 0 : index
      %15 = vector.load %arg7[%c0_11, %c0_12] : memref<32x32xf32, #tpu.memory_space<vmem>>, vector<32x32xf32>
      tpu.vector_store %arg7[%c0_11, %c0_12], %14 {strides = array<i32>} : memref<32x32xf32, #tpu.memory_space<vmem>>, vector<32x32xf32>,
    } else {
    }
    %c0 = arith.constant 0 : index
    %c0_1 = arith.constant 0 : index
    %3 = vector.load %arg3[%c0, %c0_1] : memref<32x256xf32, #tpu.memory_space<vmem>>, vector<32x256xf32>
    %c0_2 = arith.constant 0 : index
    %c0_3 = arith.constant 0 : index
    %4 = vector.load %arg7[%c0_2, %c0_3] : memref<32x32xf32, #tpu.memory_space<vmem>>, vector<32x32xf32>
    %5 = arith.truncf %3 : vector<32x256xf32> to vector<32x256xbf16>
    %c0_4 = arith.constant 0 : index
    %c0_5 = arith.constant 0 : index
    %6 = vector.load %arg4[%c0_4, %c0_5] : memref<256x32xf32, #tpu.memory_space<vmem>>, vector<256x32xf32>
    %7 = arith.truncf %6 : vector<256x32xf32> to vector<256x32xbf16>
    %cst = arith.constant dense<0.000000e+00> : vector<32x32xf32>
    %8 = tpu.matmul %5, %7, %cst {dimension_numbers = #tpu.dot_dimension_numbers<[1], [0], [0], [1], [0, 0, 1, 1], [], []>} : vector<32x256xbf16>, vector<256x32xbf16>, vector<32x32xf32> -> vector<32x32xf32>
    %9 = arith.addf %4, %8 : vector<32x32xf32>
    %c0_6 = arith.constant 0 : index
    %c0_7 = arith.constant 0 : index
    %10 = vector.load %arg7[%c0_6, %c0_7] : memref<32x32xf32, #tpu.memory_space<vmem>>, vector<32x32xf32>
    tpu.vector_store %arg7[%c0_6, %c0_7], %9 {strides = array<i32>} : memref<32x32xf32, #tpu.memory_space<vmem>>, vector<32x32xf32>,
    %c0_i32_8 = arith.constant 0 : i32
    %11 = arith.cmpi eq, %arg2, %c0_i32_8 : i32
    %12 = arith.extui %11 : i1 to i32
    %c0_i32_9 = arith.constant 0 : i32
    %13 = arith.cmpi ne, %12, %c0_i32_9 : i32
    scf.if %13 {
      %c0_10 = arith.constant 0 : index
      %c0_11 = arith.constant 0 : index
      %14 = vector.load %arg7[%c0_10, %c0_11] : memref<32x32xf32, #tpu.memory_space<vmem>>, vector<32x32xf32>
      %c0_12 = arith.constant 0 : index
      %c0_13 = arith.constant 0 : index
      %15 = vector.load %arg5[%c0_12, %c0_13] : memref<1x32xf32, #tpu.memory_space<vmem>>, vector<1x32xf32>
      %16 = vector.broadcast %15 : vector<1x32xf32> to vector<32x32xf32>
      %17 = arith.addf %14, %16 : vector<32x32xf32>
      %c0_14 = arith.constant 0 : index
      %c0_15 = arith.constant 0 : index
      %18 = vector.load %arg6[%c0_14, %c0_15] : memref<32x32xf32, #tpu.memory_space<vmem>>, vector<32x32xf32>
      tpu.vector_store %arg6[%c0_14, %c0_15], %17 {strides = array<i32>} : memref<32x32xf32, #tpu.memory_space<vmem>>, vector<32x32xf32>,
    } else {
    }
    return
  }
  func.func @transform_0(%arg0: i32, %arg1: i32, %arg2: i32) -> (i32, i32) {
    %c0_i32 = arith.constant 0 : i32
    return %arg0, %arg2 : i32, i32
  }
  func.func @transform_1(%arg0: i32, %arg1: i32, %arg2: i32) -> (i32, i32) {
    %c0_i32 = arith.constant 0 : i32
    return %arg2, %arg1 : i32, i32
  }
  func.func @transform_2(%arg0: i32, %arg1: i32, %arg2: i32) -> (i32, i32) {
    %c0_i32 = arith.constant 0 : i32
    %c0_i32_0 = arith.constant 0 : i32
    return %c0_i32, %arg1 : i32, i32
  }
  func.func @transform_3(%arg0: i32, %arg1: i32, %arg2: i32) -> (i32, i32) {
    %c0_i32 = arith.constant 0 : i32
    return %arg0, %arg1 : i32, i32
  }
}

module attributes {stable_mosaic.version = 11 : i64} {
  func.func @_fused_linear_kernel(%arg0: i32, %arg1: i32, %arg2: i32, %arg3: memref<32x192xf32, #tpu.memory_space<vmem>>, %arg4: memref<192x64xf32, #tpu.memory_space<vmem>>, %arg5: memref<1x64xf32, #tpu.memory_space<vmem>>, %arg6: memref<32x64xf32, #tpu.memory_space<vmem>>, %arg7: memref<32x64xf32, #tpu.memory_space<vmem>>) attributes {dimension_semantics = [#tpu.dimension_semantics<parallel>, #tpu.dimension_semantics<parallel>, #tpu.dimension_semantics<arbitrary>], iteration_bounds = array<i64: 1, 1, 1>, scalar_prefetch = 0 : i64, scratch_operands = 1 : i64, tpu.core_type = #tpu.core_type<tc>, window_params = [{transform_indices = @transform_0, window_bounds = array<i64: 32, 192>}, {transform_indices = @transform_1, window_bounds = array<i64: 192, 64>}, {transform_indices = @transform_2, window_bounds = array<i64: 1, 64>}, {transform_indices = @transform_3, window_bounds = array<i64: 32, 64>}]} {
    %c0_i32 = arith.constant 0 : i32
    %0 = arith.cmpi eq, %arg2, %c0_i32 : i32
    %1 = arith.extui %0 : i1 to i32
    %c0_i32_0 = arith.constant 0 : i32
    %2 = arith.cmpi ne, %1, %c0_i32_0 : i32
    scf.if %2 {
      %cst_10 = arith.constant 0.000000e+00 : f32
      %14 = vector.broadcast %cst_10 : f32 to vector<32x64xf32>
      %c0_11 = arith.constant 0 : index
      %c0_12 = arith.constant 0 : index
      %15 = vector.load %arg7[%c0_11, %c0_12] : memref<32x64xf32, #tpu.memory_space<vmem>>, vector<32x64xf32>
      tpu.vector_store %arg7[%c0_11, %c0_12], %14 {strides = array<i32>} : memref<32x64xf32, #tpu.memory_space<vmem>>, vector<32x64xf32>,
    } else {
    }
    %c0 = arith.constant 0 : index
    %c0_1 = arith.constant 0 : index
    %3 = vector.load %arg3[%c0, %c0_1] : memref<32x192xf32, #tpu.memory_space<vmem>>, vector<32x192xf32>
    %c0_2 = arith.constant 0 : index
    %c0_3 = arith.constant 0 : index
    %4 = vector.load %arg7[%c0_2, %c0_3] : memref<32x64xf32, #tpu.memory_space<vmem>>, vector<32x64xf32>
    %5 = arith.truncf %3 : vector<32x192xf32> to vector<32x192xbf16>
    %c0_4 = arith.constant 0 : index
    %c0_5 = arith.constant 0 : index
    %6 = vector.load %arg4[%c0_4, %c0_5] : memref<192x64xf32, #tpu.memory_space<vmem>>, vector<192x64xf32>
    %7 = arith.truncf %6 : vector<192x64xf32> to vector<192x64xbf16>
    %cst = arith.constant dense<0.000000e+00> : vector<32x64xf32>
    %8 = tpu.matmul %5, %7, %cst {dimension_numbers = #tpu.dot_dimension_numbers<[1], [0], [0], [1], [0, 0, 1, 1], [], []>} : vector<32x192xbf16>, vector<192x64xbf16>, vector<32x64xf32> -> vector<32x64xf32>
    %9 = arith.addf %4, %8 : vector<32x64xf32>
    %c0_6 = arith.constant 0 : index
    %c0_7 = arith.constant 0 : index
    %10 = vector.load %arg7[%c0_6, %c0_7] : memref<32x64xf32, #tpu.memory_space<vmem>>, vector<32x64xf32>
    tpu.vector_store %arg7[%c0_6, %c0_7], %9 {strides = array<i32>} : memref<32x64xf32, #tpu.memory_space<vmem>>, vector<32x64xf32>,
    %c0_i32_8 = arith.constant 0 : i32
    %11 = arith.cmpi eq, %arg2, %c0_i32_8 : i32
    %12 = arith.extui %11 : i1 to i32
    %c0_i32_9 = arith.constant 0 : i32
    %13 = arith.cmpi ne, %12, %c0_i32_9 : i32
    scf.if %13 {
      %c0_10 = arith.constant 0 : index
      %c0_11 = arith.constant 0 : index
      %14 = vector.load %arg7[%c0_10, %c0_11] : memref<32x64xf32, #tpu.memory_space<vmem>>, vector<32x64xf32>
      %c0_12 = arith.constant 0 : index
      %c0_13 = arith.constant 0 : index
      %15 = vector.load %arg5[%c0_12, %c0_13] : memref<1x64xf32, #tpu.memory_space<vmem>>, vector<1x64xf32>
      %16 = vector.broadcast %15 : vector<1x64xf32> to vector<32x64xf32>
      %17 = arith.addf %14, %16 : vector<32x64xf32>
      %c0_14 = arith.constant 0 : index
      %c0_15 = arith.constant 0 : index
      %18 = vector.load %arg6[%c0_14, %c0_15] : memref<32x64xf32, #tpu.memory_space<vmem>>, vector<32x64xf32>
      tpu.vector_store %arg6[%c0_14, %c0_15], %17 {strides = array<i32>} : memref<32x64xf32, #tpu.memory_space<vmem>>, vector<32x64xf32>,
    } else {
    }
    return
  }
  func.func @transform_0(%arg0: i32, %arg1: i32, %arg2: i32) -> (i32, i32) {
    %c0_i32 = arith.constant 0 : i32
    return %arg0, %arg2 : i32, i32
  }
  func.func @transform_1(%arg0: i32, %arg1: i32, %arg2: i32) -> (i32, i32) {
    %c0_i32 = arith.constant 0 : i32
    return %arg2, %arg1 : i32, i32
  }
  func.func @transform_2(%arg0: i32, %arg1: i32, %arg2: i32) -> (i32, i32) {
    %c0_i32 = arith.constant 0 : i32
    %c0_i32_0 = arith.constant 0 : i32
    return %c0_i32, %arg1 : i32, i32
  }
  func.func @transform_3(%arg0: i32, %arg1: i32, %arg2: i32) -> (i32, i32) {
    %c0_i32 = arith.constant 0 : i32
    return %arg0, %arg1 : i32, i32
  }
}

module attributes {stable_mosaic.version = 11 : i64} {
  func.func @_fused_linear_kernel(%arg0: i32, %arg1: i32, %arg2: i32, %arg3: memref<8x64xf32, #tpu.memory_space<vmem>>, %arg4: memref<64x192xf32, #tpu.memory_space<vmem>>, %arg5: memref<1x192xf32, #tpu.memory_space<vmem>>, %arg6: memref<1x64xf32, #tpu.memory_space<vmem>>, %arg7: memref<1x64xf32, #tpu.memory_space<vmem>>, %arg8: memref<8x192xf32, #tpu.memory_space<vmem>>, %arg9: memref<8x192xf32, #tpu.memory_space<vmem>>) attributes {dimension_semantics = [#tpu.dimension_semantics<parallel>, #tpu.dimension_semantics<parallel>, #tpu.dimension_semantics<arbitrary>], iteration_bounds = array<i64: 1, 1, 1>, scalar_prefetch = 0 : i64, scratch_operands = 1 : i64, tpu.core_type = #tpu.core_type<tc>, window_params = [{transform_indices = @transform_0, window_bounds = array<i64: 8, 64>}, {transform_indices = @transform_1, window_bounds = array<i64: 64, 192>}, {transform_indices = @transform_2, window_bounds = array<i64: 1, 192>}, {transform_indices = @transform_3, window_bounds = array<i64: 1, 64>}, {transform_indices = @transform_4, window_bounds = array<i64: 1, 64>}, {transform_indices = @transform_5, window_bounds = array<i64: 8, 192>}]} {
    %c0_i32 = arith.constant 0 : i32
    %0 = arith.cmpi eq, %arg2, %c0_i32 : i32
    %1 = arith.extui %0 : i1 to i32
    %c0_i32_0 = arith.constant 0 : i32
    %2 = arith.cmpi ne, %1, %c0_i32_0 : i32
    scf.if %2 {
      %cst_19 = arith.constant 0.000000e+00 : f32
      %38 = vector.broadcast %cst_19 : f32 to vector<8x192xf32>
      %c0_20 = arith.constant 0 : index
      %c0_21 = arith.constant 0 : index
      %39 = vector.load %arg9[%c0_20, %c0_21] : memref<8x192xf32, #tpu.memory_space<vmem>>, vector<8x192xf32>
      tpu.vector_store %arg9[%c0_20, %c0_21], %38 {strides = array<i32>} : memref<8x192xf32, #tpu.memory_space<vmem>>, vector<8x192xf32>,
    } else {
    }
    %c0 = arith.constant 0 : index
    %c0_1 = arith.constant 0 : index
    %3 = vector.load %arg3[%c0, %c0_1] : memref<8x64xf32, #tpu.memory_space<vmem>>, vector<8x64xf32>
    %cst = arith.constant dense<0.000000e+00> : vector<8xf32>
    %4 = vector.multi_reduction <add>, %3, %cst [1] : vector<8x64xf32> to vector<8xf32>
    %5 = vector.shape_cast %4 : vector<8xf32> to vector<8x1xf32>
    %cst_2 = arith.constant 6.400000e+01 : f32
    %6 = vector.broadcast %cst_2 : f32 to vector<8x1xf32>
    %7 = arith.divf %5, %6 : vector<8x1xf32>
    %8 = vector.broadcast %7 : vector<8x1xf32> to vector<8x64xf32>
    %9 = arith.subf %3, %8 : vector<8x64xf32>
    %10 = arith.mulf %9, %9 : vector<8x64xf32>
    %cst_3 = arith.constant dense<0.000000e+00> : vector<8xf32>
    %11 = vector.multi_reduction <add>, %10, %cst_3 [1] : vector<8x64xf32> to vector<8xf32>
    %12 = vector.shape_cast %11 : vector<8xf32> to vector<8x1xf32>
    %cst_4 = arith.constant 6.400000e+01 : f32
    %13 = vector.broadcast %cst_4 : f32 to vector<8x1xf32>
    %14 = arith.divf %12, %13 : vector<8x1xf32>
    %15 = vector.broadcast %7 : vector<8x1xf32> to vector<8x64xf32>
    %16 = arith.subf %3, %15 : vector<8x64xf32>
    %cst_5 = arith.constant 9.99999974E-6 : f32
    %17 = vector.broadcast %cst_5 : f32 to vector<8x1xf32>
    %18 = arith.addf %14, %17 : vector<8x1xf32>
    %19 = math.rsqrt %18 : vector<8x1xf32>
    %20 = vector.broadcast %19 : vector<8x1xf32> to vector<8x64xf32>
    %21 = arith.mulf %16, %20 : vector<8x64xf32>
    %c0_6 = arith.constant 0 : index
    %c0_7 = arith.constant 0 : index
    %22 = vector.load %arg6[%c0_6, %c0_7] : memref<1x64xf32, #tpu.memory_space<vmem>>, vector<1x64xf32>
    %23 = vector.broadcast %22 : vector<1x64xf32> to vector<8x64xf32>
    %24 = arith.mulf %21, %23 : vector<8x64xf32>
    %c0_8 = arith.constant 0 : index
    %c0_9 = arith.constant 0 : index
    %25 = vector.load %arg7[%c0_8, %c0_9] : memref<1x64xf32, #tpu.memory_space<vmem>>, vector<1x64xf32>
    %26 = vector.broadcast %25 : vector<1x64xf32> to vector<8x64xf32>
    %27 = arith.addf %24, %26 : vector<8x64xf32>
    %c0_10 = arith.constant 0 : index
    %c0_11 = arith.constant 0 : index
    %28 = vector.load %arg9[%c0_10, %c0_11] : memref<8x192xf32, #tpu.memory_space<vmem>>, vector<8x192xf32>
    %29 = arith.truncf %27 : vector<8x64xf32> to vector<8x64xbf16>
    %c0_12 = arith.constant 0 : index
    %c0_13 = arith.constant 0 : index
    %30 = vector.load %arg4[%c0_12, %c0_13] : memref<64x192xf32, #tpu.memory_space<vmem>>, vector<64x192xf32>
    %31 = arith.truncf %30 : vector<64x192xf32> to vector<64x192xbf16>
    %cst_14 = arith.constant dense<0.000000e+00> : vector<8x192xf32>
    %32 = tpu.matmul %29, %31, %cst_14 {dimension_numbers = #tpu.dot_dimension_numbers<[1], [0], [0], [1], [0, 0, 1, 1], [], []>} : vector<8x64xbf16>, vector<64x192xbf16>, vector<8x192xf32> -> vector<8x192xf32>
    %33 = arith.addf %28, %32 : vector<8x192xf32>
    %c0_15 = arith.constant 0 : index
    %c0_16 = arith.constant 0 : index
    %34 = vector.load %arg9[%c0_15, %c0_16] : memref<8x192xf32, #tpu.memory_space<vmem>>, vector<8x192xf32>
    tpu.vector_store %arg9[%c0_15, %c0_16], %33 {strides = array<i32>} : memref<8x192xf32, #tpu.memory_space<vmem>>, vector<8x192xf32>,
    %c0_i32_17 = arith.constant 0 : i32
    %35 = arith.cmpi eq, %arg2, %c0_i32_17 : i32
    %36 = arith.extui %35 : i1 to i32
    %c0_i32_18 = arith.constant 0 : i32
    %37 = arith.cmpi ne, %36, %c0_i32_18 : i32
    scf.if %37 {
      %c0_19 = arith.constant 0 : index
      %c0_20 = arith.constant 0 : index
      %38 = vector.load %arg9[%c0_19, %c0_20] : memref<8x192xf32, #tpu.memory_space<vmem>>, vector<8x192xf32>
      %c0_21 = arith.constant 0 : index
      %c0_22 = arith.constant 0 : index
      %39 = vector.load %arg5[%c0_21, %c0_22] : memref<1x192xf32, #tpu.memory_space<vmem>>, vector<1x192xf32>
      %40 = vector.broadcast %39 : vector<1x192xf32> to vector<8x192xf32>
      %41 = arith.addf %38, %40 : vector<8x192xf32>
      %c0_23 = arith.constant 0 : index
      %c0_24 = arith.constant 0 : index
      %42 = vector.load %arg8[%c0_23, %c0_24] : memref<8x192xf32, #tpu.memory_space<vmem>>, vector<8x192xf32>
      tpu.vector_store %arg8[%c0_23, %c0_24], %41 {strides = array<i32>} : memref<8x192xf32, #tpu.memory_space<vmem>>, vector<8x192xf32>,
    } else {
    }
    return
  }
  func.func @transform_0(%arg0: i32, %arg1: i32, %arg2: i32) -> (i32, i32) {
    %c0_i32 = arith.constant 0 : i32
    return %arg0, %arg2 : i32, i32
  }
  func.func @transform_1(%arg0: i32, %arg1: i32, %arg2: i32) -> (i32, i32) {
    %c0_i32 = arith.constant 0 : i32
    return %arg2, %arg1 : i32, i32
  }
  func.func @transform_2(%arg0: i32, %arg1: i32, %arg2: i32) -> (i32, i32) {
    %c0_i32 = arith.constant 0 : i32
    %c0_i32_0 = arith.constant 0 : i32
    return %c0_i32, %arg1 : i32, i32
  }
  func.func @transform_3(%arg0: i32, %arg1: i32, %arg2: i32) -> (i32, i32) {
    %c0_i32 = arith.constant 0 : i32
    %c0_i32_0 = arith.constant 0 : i32
    return %c0_i32, %arg2 : i32, i32
  }
  func.func @transform_4(%arg0: i32, %arg1: i32, %arg2: i32) -> (i32, i32) {
    %c0_i32 = arith.constant 0 : i32
    %c0_i32_0 = arith.constant 0 : i32
    return %c0_i32, %arg2 : i32, i32
  }
  func.func @transform_5(%arg0: i32, %arg1: i32, %arg2: i32) -> (i32, i32) {
    %c0_i32 = arith.constant 0 : i32
    return %arg0, %arg1 : i32, i32
  }
}

module attributes {stable_mosaic.version = 11 : i64} {
  func.func @_flash_attn_kernel(%arg0: i32, %arg1: i32, %arg2: i32, %arg3: i32, %arg4: memref<1x1x4x16xf32, #tpu.memory_space<vmem>>, %arg5: memref<1x1x4x16xf32, #tpu.memory_space<vmem>>, %arg6: memref<1x1x4x16xf32, #tpu.memory_space<vmem>>, %arg7: memref<1x1x4x16xf32, #tpu.memory_space<vmem>>, %arg8: memref<4x1xf32, #tpu.memory_space<vmem>>, %arg9: memref<4x1xf32, #tpu.memory_space<vmem>>, %arg10: memref<4x16xf32, #tpu.memory_space<vmem>>) attributes {dimension_semantics = [#tpu.dimension_semantics<parallel>, #tpu.dimension_semantics<parallel>, #tpu.dimension_semantics<parallel>, #tpu.dimension_semantics<arbitrary>], iteration_bounds = array<i64: 2, 4, 1, 1>, scalar_prefetch = 0 : i64, scratch_operands = 3 : i64, tpu.core_type = #tpu.core_type<tc>, window_params = [{transform_indices = @transform_0, window_bounds = array<i64: 1, 1, 4, 16>}, {transform_indices = @transform_1, window_bounds = array<i64: 1, 1, 4, 16>}, {transform_indices = @transform_2, window_bounds = array<i64: 1, 1, 4, 16>}, {transform_indices = @transform_3, window_bounds = array<i64: 1, 1, 4, 16>}]} {
    %c0_i32 = arith.constant 0 : i32
    %0 = arith.cmpi eq, %arg3, %c0_i32 : i32
    %1 = arith.extui %0 : i1 to i32
    %c0_i32_0 = arith.constant 0 : i32
    %2 = arith.cmpi ne, %1, %c0_i32_0 : i32
    scf.if %2 {
      %cst_30 = arith.constant 0xFF800000 : f32
      %41 = vector.broadcast %cst_30 : f32 to vector<4x1xf32>
      %c0_31 = arith.constant 0 : index
      %c0_32 = arith.constant 0 : index
      %42 = vector.load %arg8[%c0_31, %c0_32] : memref<4x1xf32, #tpu.memory_space<vmem>>, vector<4x1xf32>
      tpu.vector_store %arg8[%c0_31, %c0_32], %41 {strides = array<i32>} : memref<4x1xf32, #tpu.memory_space<vmem>>, vector<4x1xf32>,
      %cst_33 = arith.constant 0.000000e+00 : f32
      %43 = vector.broadcast %cst_33 : f32 to vector<4x1xf32>
      %c0_34 = arith.constant 0 : index
      %c0_35 = arith.constant 0 : index
      %44 = vector.load %arg9[%c0_34, %c0_35] : memref<4x1xf32, #tpu.memory_space<vmem>>, vector<4x1xf32>
      tpu.vector_store %arg9[%c0_34, %c0_35], %43 {strides = array<i32>} : memref<4x1xf32, #tpu.memory_space<vmem>>, vector<4x1xf32>,
      %cst_36 = arith.constant 0.000000e+00 : f32
      %45 = vector.broadcast %cst_36 : f32 to vector<4x16xf32>
      %c0_37 = arith.constant 0 : index
      %c0_38 = arith.constant 0 : index
      %46 = vector.load %arg10[%c0_37, %c0_38] : memref<4x16xf32, #tpu.memory_space<vmem>>, vector<4x16xf32>
      tpu.vector_store %arg10[%c0_37, %c0_38], %45 {strides = array<i32>} : memref<4x16xf32, #tpu.memory_space<vmem>>, vector<4x16xf32>,
    } else {
    }
    %c0 = arith.constant 0 : index
    %c0_1 = arith.constant 0 : index
    %c0_2 = arith.constant 0 : index
    %c0_3 = arith.constant 0 : index
    %3 = vector.load %arg4[%c0, %c0_1, %c0_2, %c0_3] : memref<1x1x4x16xf32, #tpu.memory_space<vmem>>, vector<1x1x4x16xf32>
    %4 = vector.shape_cast %3 : vector<1x1x4x16xf32> to vector<4x16xf32>
    %5 = arith.truncf %4 : vector<4x16xf32> to vector<4x16xbf16>
    %c0_4 = arith.constant 0 : index
    %c0_5 = arith.constant 0 : index
    %c0_6 = arith.constant 0 : index
    %c0_7 = arith.constant 0 : index
    %6 = vector.load %arg5[%c0_4, %c0_5, %c0_6, %c0_7] : memref<1x1x4x16xf32, #tpu.memory_space<vmem>>, vector<1x1x4x16xf32>
    %7 = vector.shape_cast %6 : vector<1x1x4x16xf32> to vector<4x16xf32>
    %8 = arith.truncf %7 : vector<4x16xf32> to vector<4x16xbf16>
    %c0_8 = arith.constant 0 : index
    %c0_9 = arith.constant 0 : index
    %c0_10 = arith.constant 0 : index
    %c0_11 = arith.constant 0 : index
    %9 = vector.load %arg6[%c0_8, %c0_9, %c0_10, %c0_11] : memref<1x1x4x16xf32, #tpu.memory_space<vmem>>, vector<1x1x4x16xf32>
    %10 = vector.shape_cast %9 : vector<1x1x4x16xf32> to vector<4x16xf32>
    %11 = arith.truncf %10 : vector<4x16xf32> to vector<4x16xbf16>
    %cst = arith.constant dense<0.000000e+00> : vector<4x4xf32>
    %12 = tpu.matmul %5, %8, %cst {dimension_numbers = #tpu.dot_dimension_numbers<[1], [1], [0], [0], [0, 0, 1, 0], [], []>} : vector<4x16xbf16>, vector<4x16xbf16>, vector<4x4xf32> -> vector<4x4xf32>
    %cst_12 = arith.constant 2.500000e-01 : f32
    %13 = vector.broadcast %cst_12 : f32 to vector<4x4xf32>
    %14 = arith.mulf %12, %13 : vector<4x4xf32>
    %c0_13 = arith.constant 0 : index
    %c0_14 = arith.constant 0 : index
    %15 = vector.load %arg8[%c0_13, %c0_14] : memref<4x1xf32, #tpu.memory_space<vmem>>, vector<4x1xf32>
    %cst_15 = arith.constant dense<0xFF800000> : vector<4xf32>
    %16 = vector.multi_reduction <maximumf>, %14, %cst_15 [1] : vector<4x4xf32> to vector<4xf32>
    %17 = vector.shape_cast %16 : vector<4xf32> to vector<4x1xf32>
    %18 = arith.maximumf %15, %17 : vector<4x1xf32>
    %19 = arith.subf %15, %18 : vector<4x1xf32>
    %20 = math.exp %19 : vector<4x1xf32>
    %21 = vector.broadcast %18 : vector<4x1xf32> to vector<4x4xf32>
    %22 = arith.subf %14, %21 : vector<4x4xf32>
    %23 = math.exp %22 : vector<4x4xf32>
    %c0_16 = arith.constant 0 : index
    %c0_17 = arith.constant 0 : index
    %24 = vector.load %arg9[%c0_16, %c0_17] : memref<4x1xf32, #tpu.memory_space<vmem>>, vector<4x1xf32>
    %25 = arith.mulf %20, %24 : vector<4x1xf32>
    %cst_18 = arith.constant dense<0.000000e+00> : vector<4xf32>
    %26 = vector.multi_reduction <add>, %23, %cst_18 [1] : vector<4x4xf32> to vector<4xf32>
    %27 = vector.shape_cast %26 : vector<4xf32> to vector<4x1xf32>
    %28 = arith.addf %25, %27 : vector<4x1xf32>
    %c0_19 = arith.constant 0 : index
    %c0_20 = arith.constant 0 : index
    %29 = vector.load %arg9[%c0_19, %c0_20] : memref<4x1xf32, #tpu.memory_space<vmem>>, vector<4x1xf32>
    tpu.vector_store %arg9[%c0_19, %c0_20], %28 {strides = array<i32>} : memref<4x1xf32, #tpu.memory_space<vmem>>, vector<4x1xf32>,
    %c0_21 = arith.constant 0 : index
    %c0_22 = arith.constant 0 : index
    %30 = vector.load %arg10[%c0_21, %c0_22] : memref<4x16xf32, #tpu.memory_space<vmem>>, vector<4x16xf32>
    %31 = vector.broadcast %20 : vector<4x1xf32> to vector<4x16xf32>
    %32 = arith.mulf %31, %30 : vector<4x16xf32>
    %33 = arith.truncf %23 : vector<4x4xf32> to vector<4x4xbf16>
    %cst_23 = arith.constant dense<0.000000e+00> : vector<4x16xf32>
    %34 = tpu.matmul %33, %11, %cst_23 {dimension_numbers = #tpu.dot_dimension_numbers<[1], [0], [0], [1], [0, 0, 1, 1], [], []>} : vector<4x4xbf16>, vector<4x16xbf16>, vector<4x16xf32> -> vector<4x16xf32>
    %35 = arith.addf %32, %34 : vector<4x16xf32>
    %c0_24 = arith.constant 0 : index
    %c0_25 = arith.constant 0 : index
    %36 = vector.load %arg10[%c0_24, %c0_25] : memref<4x16xf32, #tpu.memory_space<vmem>>, vector<4x16xf32>
    tpu.vector_store %arg10[%c0_24, %c0_25], %35 {strides = array<i32>} : memref<4x16xf32, #tpu.memory_space<vmem>>, vector<4x16xf32>,
    %c0_26 = arith.constant 0 : index
    %c0_27 = arith.constant 0 : index
    %37 = vector.load %arg8[%c0_26, %c0_27] : memref<4x1xf32, #tpu.memory_space<vmem>>, vector<4x1xf32>
    tpu.vector_store %arg8[%c0_26, %c0_27], %18 {strides = array<i32>} : memref<4x1xf32, #tpu.memory_space<vmem>>, vector<4x1xf32>,
    %c0_i32_28 = arith.constant 0 : i32
    %38 = arith.cmpi eq, %arg3, %c0_i32_28 : i32
    %39 = arith.extui %38 : i1 to i32
    %c0_i32_29 = arith.constant 0 : i32
    %40 = arith.cmpi ne, %39, %c0_i32_29 : i32
    scf.if %40 {
      %c0_30 = arith.constant 0 : index
      %c0_31 = arith.constant 0 : index
      %41 = vector.load %arg10[%c0_30, %c0_31] : memref<4x16xf32, #tpu.memory_space<vmem>>, vector<4x16xf32>
      %c0_32 = arith.constant 0 : index
      %c0_33 = arith.constant 0 : index
      %42 = vector.load %arg9[%c0_32, %c0_33] : memref<4x1xf32, #tpu.memory_space<vmem>>, vector<4x1xf32>
      %43 = tpu.reciprocal %42 {approx = true} : vector<4x1xf32> -> vector<4x1xf32>
      %44 = vector.broadcast %43 : vector<4x1xf32> to vector<4x16xf32>
      %45 = arith.mulf %41, %44 : vector<4x16xf32>
      %c0_34 = arith.constant 0 : index
      %c0_35 = arith.constant 0 : index
      %c0_36 = arith.constant 0 : index
      %c0_37 = arith.constant 0 : index
      %46 = vector.load %arg7[%c0_34, %c0_35, %c0_36, %c0_37] : memref<1x1x4x16xf32, #tpu.memory_space<vmem>>, vector<1x1x4x16xf32>
      %47 = vector.shape_cast %46 : vector<1x1x4x16xf32> to vector<4x16xf32>
      %48 = vector.shape_cast %45 : vector<4x16xf32> to vector<1x1x4x16xf32>
      tpu.vector_store %arg7[%c0_34, %c0_35, %c0_36, %c0_37], %48 {strides = array<i32>} : memref<1x1x4x16xf32, #tpu.memory_space<vmem>>, vector<1x1x4x16xf32>,
    } else {
    }
    return
  }
  func.func @transform_0(%arg0: i32, %arg1: i32, %arg2: i32, %arg3: i32) -> (i32, i32, i32, i32) {
    %c0_i32 = arith.constant 0 : i32
    %c0_i32_0 = arith.constant 0 : i32
    return %arg0, %arg1, %arg2, %c0_i32 : i32, i32, i32, i32
  }
  func.func @transform_1(%arg0: i32, %arg1: i32, %arg2: i32, %arg3: i32) -> (i32, i32, i32, i32) {
    %c0_i32 = arith.constant 0 : i32
    %c0_i32_0 = arith.constant 0 : i32
    return %arg0, %arg1, %arg3, %c0_i32 : i32, i32, i32, i32
  }
  func.func @transform_2(%arg0: i32, %arg1: i32, %arg2: i32, %arg3: i32) -> (i32, i32, i32, i32) {
    %c0_i32 = arith.constant 0 : i32
    %c0_i32_0 = arith.constant 0 : i32
    return %arg0, %arg1, %arg3, %c0_i32 : i32, i32, i32, i32
  }
  func.func @transform_3(%arg0: i32, %arg1: i32, %arg2: i32, %arg3: i32) -> (i32, i32, i32, i32) {
    %c0_i32 = arith.constant 0 : i32
    %c0_i32_0 = arith.constant 0 : i32
    return %arg0, %arg1, %arg2, %c0_i32 : i32, i32, i32, i32
  }
}

module attributes {stable_mosaic.version = 11 : i64} {
  func.func @_fused_linear_kernel(%arg0: i32, %arg1: i32, %arg2: i32, %arg3: memref<8x64xf32, #tpu.memory_space<vmem>>, %arg4: memref<64x64xf32, #tpu.memory_space<vmem>>, %arg5: memref<1x64xf32, #tpu.memory_space<vmem>>, %arg6: memref<8x64xf32, #tpu.memory_space<vmem>>, %arg7: memref<8x64xf32, #tpu.memory_space<vmem>>, %arg8: memref<8x64xf32, #tpu.memory_space<vmem>>) attributes {dimension_semantics = [#tpu.dimension_semantics<parallel>, #tpu.dimension_semantics<parallel>, #tpu.dimension_semantics<arbitrary>], iteration_bounds = array<i64: 1, 1, 1>, scalar_prefetch = 0 : i64, scratch_operands = 1 : i64, tpu.core_type = #tpu.core_type<tc>, window_params = [{transform_indices = @transform_0, window_bounds = array<i64: 8, 64>}, {transform_indices = @transform_1, window_bounds = array<i64: 64, 64>}, {transform_indices = @transform_2, window_bounds = array<i64: 1, 64>}, {transform_indices = @transform_3, window_bounds = array<i64: 8, 64>}, {transform_indices = @transform_4, window_bounds = array<i64: 8, 64>}]} {
    %c0_i32 = arith.constant 0 : i32
    %0 = arith.cmpi eq, %arg2, %c0_i32 : i32
    %1 = arith.extui %0 : i1 to i32
    %c0_i32_0 = arith.constant 0 : i32
    %2 = arith.cmpi ne, %1, %c0_i32_0 : i32
    scf.if %2 {
      %cst_10 = arith.constant 0.000000e+00 : f32
      %14 = vector.broadcast %cst_10 : f32 to vector<8x64xf32>
      %c0_11 = arith.constant 0 : index
      %c0_12 = arith.constant 0 : index
      %15 = vector.load %arg8[%c0_11, %c0_12] : memref<8x64xf32, #tpu.memory_space<vmem>>, vector<8x64xf32>
      tpu.vector_store %arg8[%c0_11, %c0_12], %14 {strides = array<i32>} : memref<8x64xf32, #tpu.memory_space<vmem>>, vector<8x64xf32>,
    } else {
    }
    %c0 = arith.constant 0 : index
    %c0_1 = arith.constant 0 : index
    %3 = vector.load %arg3[%c0, %c0_1] : memref<8x64xf32, #tpu.memory_space<vmem>>, vector<8x64xf32>
    %c0_2 = arith.constant 0 : index
    %c0_3 = arith.constant 0 : index
    %4 = vector.load %arg8[%c0_2, %c0_3] : memref<8x64xf32, #tpu.memory_space<vmem>>, vector<8x64xf32>
    %5 = arith.truncf %3 : vector<8x64xf32> to vector<8x64xbf16>
    %c0_4 = arith.constant 0 : index
    %c0_5 = arith.constant 0 : index
    %6 = vector.load %arg4[%c0_4, %c0_5] : memref<64x64xf32, #tpu.memory_space<vmem>>, vector<64x64xf32>
    %7 = arith.truncf %6 : vector<64x64xf32> to vector<64x64xbf16>
    %cst = arith.constant dense<0.000000e+00> : vector<8x64xf32>
    %8 = tpu.matmul %5, %7, %cst {dimension_numbers = #tpu.dot_dimension_numbers<[1], [0], [0], [1], [0, 0, 1, 1], [], []>} : vector<8x64xbf16>, vector<64x64xbf16>, vector<8x64xf32> -> vector<8x64xf32>
    %9 = arith.addf %4, %8 : vector<8x64xf32>
    %c0_6 = arith.constant 0 : index
    %c0_7 = arith.constant 0 : index
    %10 = vector.load %arg8[%c0_6, %c0_7] : memref<8x64xf32, #tpu.memory_space<vmem>>, vector<8x64xf32>
    tpu.vector_store %arg8[%c0_6, %c0_7], %9 {strides = array<i32>} : memref<8x64xf32, #tpu.memory_space<vmem>>, vector<8x64xf32>,
    %c0_i32_8 = arith.constant 0 : i32
    %11 = arith.cmpi eq, %arg2, %c0_i32_8 : i32
    %12 = arith.extui %11 : i1 to i32
    %c0_i32_9 = arith.constant 0 : i32
    %13 = arith.cmpi ne, %12, %c0_i32_9 : i32
    scf.if %13 {
      %c0_10 = arith.constant 0 : index
      %c0_11 = arith.constant 0 : index
      %14 = vector.load %arg8[%c0_10, %c0_11] : memref<8x64xf32, #tpu.memory_space<vmem>>, vector<8x64xf32>
      %c0_12 = arith.constant 0 : index
      %c0_13 = arith.constant 0 : index
      %15 = vector.load %arg5[%c0_12, %c0_13] : memref<1x64xf32, #tpu.memory_space<vmem>>, vector<1x64xf32>
      %16 = vector.broadcast %15 : vector<1x64xf32> to vector<8x64xf32>
      %17 = arith.addf %14, %16 : vector<8x64xf32>
      %c0_14 = arith.constant 0 : index
      %c0_15 = arith.constant 0 : index
      %18 = vector.load %arg6[%c0_14, %c0_15] : memref<8x64xf32, #tpu.memory_space<vmem>>, vector<8x64xf32>
      %19 = arith.addf %17, %18 : vector<8x64xf32>
      %c0_16 = arith.constant 0 : index
      %c0_17 = arith.constant 0 : index
      %20 = vector.load %arg7[%c0_16, %c0_17] : memref<8x64xf32, #tpu.memory_space<vmem>>, vector<8x64xf32>
      tpu.vector_store %arg7[%c0_16, %c0_17], %19 {strides = array<i32>} : memref<8x64xf32, #tpu.memory_space<vmem>>, vector<8x64xf32>,
    } else {
    }
    return
  }
  func.func @transform_0(%arg0: i32, %arg1: i32, %arg2: i32) -> (i32, i32) {
    %c0_i32 = arith.constant 0 : i32
    return %arg0, %arg2 : i32, i32
  }
  func.func @transform_1(%arg0: i32, %arg1: i32, %arg2: i32) -> (i32, i32) {
    %c0_i32 = arith.constant 0 : i32
    return %arg2, %arg1 : i32, i32
  }
  func.func @transform_2(%arg0: i32, %arg1: i32, %arg2: i32) -> (i32, i32) {
    %c0_i32 = arith.constant 0 : i32
    %c0_i32_0 = arith.constant 0 : i32
    return %c0_i32, %arg1 : i32, i32
  }
  func.func @transform_3(%arg0: i32, %arg1: i32, %arg2: i32) -> (i32, i32) {
    %c0_i32 = arith.constant 0 : i32
    return %arg0, %arg1 : i32, i32
  }
  func.func @transform_4(%arg0: i32, %arg1: i32, %arg2: i32) -> (i32, i32) {
    %c0_i32 = arith.constant 0 : i32
    return %arg0, %arg1 : i32, i32
  }
}

module attributes {stable_mosaic.version = 11 : i64} {
  func.func @_fused_linear_kernel(%arg0: i32, %arg1: i32, %arg2: i32, %arg3: memref<8x64xf32, #tpu.memory_space<vmem>>, %arg4: memref<64x256xf32, #tpu.memory_space<vmem>>, %arg5: memref<1x256xf32, #tpu.memory_space<vmem>>, %arg6: memref<1x64xf32, #tpu.memory_space<vmem>>, %arg7: memref<1x64xf32, #tpu.memory_space<vmem>>, %arg8: memref<8x256xf32, #tpu.memory_space<vmem>>, %arg9: memref<8x256xf32, #tpu.memory_space<vmem>>) attributes {dimension_semantics = [#tpu.dimension_semantics<parallel>, #tpu.dimension_semantics<parallel>, #tpu.dimension_semantics<arbitrary>], iteration_bounds = array<i64: 1, 1, 1>, scalar_prefetch = 0 : i64, scratch_operands = 1 : i64, tpu.core_type = #tpu.core_type<tc>, window_params = [{transform_indices = @transform_0, window_bounds = array<i64: 8, 64>}, {transform_indices = @transform_1, window_bounds = array<i64: 64, 256>}, {transform_indices = @transform_2, window_bounds = array<i64: 1, 256>}, {transform_indices = @transform_3, window_bounds = array<i64: 1, 64>}, {transform_indices = @transform_4, window_bounds = array<i64: 1, 64>}, {transform_indices = @transform_5, window_bounds = array<i64: 8, 256>}]} {
    %c0_i32 = arith.constant 0 : i32
    %0 = arith.cmpi eq, %arg2, %c0_i32 : i32
    %1 = arith.extui %0 : i1 to i32
    %c0_i32_0 = arith.constant 0 : i32
    %2 = arith.cmpi ne, %1, %c0_i32_0 : i32
    scf.if %2 {
      %cst_19 = arith.constant 0.000000e+00 : f32
      %38 = vector.broadcast %cst_19 : f32 to vector<8x256xf32>
      %c0_20 = arith.constant 0 : index
      %c0_21 = arith.constant 0 : index
      %39 = vector.load %arg9[%c0_20, %c0_21] : memref<8x256xf32, #tpu.memory_space<vmem>>, vector<8x256xf32>
      tpu.vector_store %arg9[%c0_20, %c0_21], %38 {strides = array<i32>} : memref<8x256xf32, #tpu.memory_space<vmem>>, vector<8x256xf32>,
    } else {
    }
    %c0 = arith.constant 0 : index
    %c0_1 = arith.constant 0 : index
    %3 = vector.load %arg3[%c0, %c0_1] : memref<8x64xf32, #tpu.memory_space<vmem>>, vector<8x64xf32>
    %cst = arith.constant dense<0.000000e+00> : vector<8xf32>
    %4 = vector.multi_reduction <add>, %3, %cst [1] : vector<8x64xf32> to vector<8xf32>
    %5 = vector.shape_cast %4 : vector<8xf32> to vector<8x1xf32>
    %cst_2 = arith.constant 6.400000e+01 : f32
    %6 = vector.broadcast %cst_2 : f32 to vector<8x1xf32>
    %7 = arith.divf %5, %6 : vector<8x1xf32>
    %8 = vector.broadcast %7 : vector<8x1xf32> to vector<8x64xf32>
    %9 = arith.subf %3, %8 : vector<8x64xf32>
    %10 = arith.mulf %9, %9 : vector<8x64xf32>
    %cst_3 = arith.constant dense<0.000000e+00> : vector<8xf32>
    %11 = vector.multi_reduction <add>, %10, %cst_3 [1] : vector<8x64xf32> to vector<8xf32>
    %12 = vector.shape_cast %11 : vector<8xf32> to vector<8x1xf32>
    %cst_4 = arith.constant 6.400000e+01 : f32
    %13 = vector.broadcast %cst_4 : f32 to vector<8x1xf32>
    %14 = arith.divf %12, %13 : vector<8x1xf32>
    %15 = vector.broadcast %7 : vector<8x1xf32> to vector<8x64xf32>
    %16 = arith.subf %3, %15 : vector<8x64xf32>
    %cst_5 = arith.constant 9.99999974E-6 : f32
    %17 = vector.broadcast %cst_5 : f32 to vector<8x1xf32>
    %18 = arith.addf %14, %17 : vector<8x1xf32>
    %19 = math.rsqrt %18 : vector<8x1xf32>
    %20 = vector.broadcast %19 : vector<8x1xf32> to vector<8x64xf32>
    %21 = arith.mulf %16, %20 : vector<8x64xf32>
    %c0_6 = arith.constant 0 : index
    %c0_7 = arith.constant 0 : index
    %22 = vector.load %arg6[%c0_6, %c0_7] : memref<1x64xf32, #tpu.memory_space<vmem>>, vector<1x64xf32>
    %23 = vector.broadcast %22 : vector<1x64xf32> to vector<8x64xf32>
    %24 = arith.mulf %21, %23 : vector<8x64xf32>
    %c0_8 = arith.constant 0 : index
    %c0_9 = arith.constant 0 : index
    %25 = vector.load %arg7[%c0_8, %c0_9] : memref<1x64xf32, #tpu.memory_space<vmem>>, vector<1x64xf32>
    %26 = vector.broadcast %25 : vector<1x64xf32> to vector<8x64xf32>
    %27 = arith.addf %24, %26 : vector<8x64xf32>
    %c0_10 = arith.constant 0 : index
    %c0_11 = arith.constant 0 : index
    %28 = vector.load %arg9[%c0_10, %c0_11] : memref<8x256xf32, #tpu.memory_space<vmem>>, vector<8x256xf32>
    %29 = arith.truncf %27 : vector<8x64xf32> to vector<8x64xbf16>
    %c0_12 = arith.constant 0 : index
    %c0_13 = arith.constant 0 : index
    %30 = vector.load %arg4[%c0_12, %c0_13] : memref<64x256xf32, #tpu.memory_space<vmem>>, vector<64x256xf32>
    %31 = arith.truncf %30 : vector<64x256xf32> to vector<64x256xbf16>
    %cst_14 = arith.constant dense<0.000000e+00> : vector<8x256xf32>
    %32 = tpu.matmul %29, %31, %cst_14 {dimension_numbers = #tpu.dot_dimension_numbers<[1], [0], [0], [1], [0, 0, 1, 1], [], []>} : vector<8x64xbf16>, vector<64x256xbf16>, vector<8x256xf32> -> vector<8x256xf32>
    %33 = arith.addf %28, %32 : vector<8x256xf32>
    %c0_15 = arith.constant 0 : index
    %c0_16 = arith.constant 0 : index
    %34 = vector.load %arg9[%c0_15, %c0_16] : memref<8x256xf32, #tpu.memory_space<vmem>>, vector<8x256xf32>
    tpu.vector_store %arg9[%c0_15, %c0_16], %33 {strides = array<i32>} : memref<8x256xf32, #tpu.memory_space<vmem>>, vector<8x256xf32>,
    %c0_i32_17 = arith.constant 0 : i32
    %35 = arith.cmpi eq, %arg2, %c0_i32_17 : i32
    %36 = arith.extui %35 : i1 to i32
    %c0_i32_18 = arith.constant 0 : i32
    %37 = arith.cmpi ne, %36, %c0_i32_18 : i32
    scf.if %37 {
      %c0_19 = arith.constant 0 : index
      %c0_20 = arith.constant 0 : index
      %38 = vector.load %arg9[%c0_19, %c0_20] : memref<8x256xf32, #tpu.memory_space<vmem>>, vector<8x256xf32>
      %c0_21 = arith.constant 0 : index
      %c0_22 = arith.constant 0 : index
      %39 = vector.load %arg5[%c0_21, %c0_22] : memref<1x256xf32, #tpu.memory_space<vmem>>, vector<1x256xf32>
      %40 = vector.broadcast %39 : vector<1x256xf32> to vector<8x256xf32>
      %41 = arith.addf %38, %40 : vector<8x256xf32>
      %cst_23 = arith.constant 5.000000e-01 : f32
      %42 = vector.broadcast %cst_23 : f32 to vector<8x256xf32>
      %43 = arith.mulf %42, %41 : vector<8x256xf32>
      %cst_24 = arith.constant 0.707106769 : f32
      %44 = vector.broadcast %cst_24 : f32 to vector<8x256xf32>
      %45 = arith.mulf %41, %44 : vector<8x256xf32>
      %46 = math.erf %45 : vector<8x256xf32>
      %cst_25 = arith.constant 1.000000e+00 : f32
      %47 = vector.broadcast %cst_25 : f32 to vector<8x256xf32>
      %48 = arith.addf %47, %46 : vector<8x256xf32>
      %49 = arith.mulf %43, %48 : vector<8x256xf32>
      %c0_26 = arith.constant 0 : index
      %c0_27 = arith.constant 0 : index
      %50 = vector.load %arg8[%c0_26, %c0_27] : memref<8x256xf32, #tpu.memory_space<vmem>>, vector<8x256xf32>
      tpu.vector_store %arg8[%c0_26, %c0_27], %49 {strides = array<i32>} : memref<8x256xf32, #tpu.memory_space<vmem>>, vector<8x256xf32>,
    } else {
    }
    return
  }
  func.func @transform_0(%arg0: i32, %arg1: i32, %arg2: i32) -> (i32, i32) {
    %c0_i32 = arith.constant 0 : i32
    return %arg0, %arg2 : i32, i32
  }
  func.func @transform_1(%arg0: i32, %arg1: i32, %arg2: i32) -> (i32, i32) {
    %c0_i32 = arith.constant 0 : i32
    return %arg2, %arg1 : i32, i32
  }
  func.func @transform_2(%arg0: i32, %arg1: i32, %arg2: i32) -> (i32, i32) {
    %c0_i32 = arith.constant 0 : i32
    %c0_i32_0 = arith.constant 0 : i32
    return %c0_i32, %arg1 : i32, i32
  }
  func.func @transform_3(%arg0: i32, %arg1: i32, %arg2: i32) -> (i32, i32) {
    %c0_i32 = arith.constant 0 : i32
    %c0_i32_0 = arith.constant 0 : i32
    return %c0_i32, %arg2 : i32, i32
  }
  func.func @transform_4(%arg0: i32, %arg1: i32, %arg2: i32) -> (i32, i32) {
    %c0_i32 = arith.constant 0 : i32
    %c0_i32_0 = arith.constant 0 : i32
    return %c0_i32, %arg2 : i32, i32
  }
  func.func @transform_5(%arg0: i32, %arg1: i32, %arg2: i32) -> (i32, i32) {
    %c0_i32 = arith.constant 0 : i32
    return %arg0, %arg1 : i32, i32
  }
}

module attributes {stable_mosaic.version = 11 : i64} {
  func.func @_fused_linear_kernel(%arg0: i32, %arg1: i32, %arg2: i32, %arg3: memref<8x256xf32, #tpu.memory_space<vmem>>, %arg4: memref<256x64xf32, #tpu.memory_space<vmem>>, %arg5: memref<1x64xf32, #tpu.memory_space<vmem>>, %arg6: memref<8x64xf32, #tpu.memory_space<vmem>>, %arg7: memref<8x64xf32, #tpu.memory_space<vmem>>, %arg8: memref<8x64xf32, #tpu.memory_space<vmem>>) attributes {dimension_semantics = [#tpu.dimension_semantics<parallel>, #tpu.dimension_semantics<parallel>, #tpu.dimension_semantics<arbitrary>], iteration_bounds = array<i64: 1, 1, 1>, scalar_prefetch = 0 : i64, scratch_operands = 1 : i64, tpu.core_type = #tpu.core_type<tc>, window_params = [{transform_indices = @transform_0, window_bounds = array<i64: 8, 256>}, {transform_indices = @transform_1, window_bounds = array<i64: 256, 64>}, {transform_indices = @transform_2, window_bounds = array<i64: 1, 64>}, {transform_indices = @transform_3, window_bounds = array<i64: 8, 64>}, {transform_indices = @transform_4, window_bounds = array<i64: 8, 64>}]} {
    %c0_i32 = arith.constant 0 : i32
    %0 = arith.cmpi eq, %arg2, %c0_i32 : i32
    %1 = arith.extui %0 : i1 to i32
    %c0_i32_0 = arith.constant 0 : i32
    %2 = arith.cmpi ne, %1, %c0_i32_0 : i32
    scf.if %2 {
      %cst_10 = arith.constant 0.000000e+00 : f32
      %14 = vector.broadcast %cst_10 : f32 to vector<8x64xf32>
      %c0_11 = arith.constant 0 : index
      %c0_12 = arith.constant 0 : index
      %15 = vector.load %arg8[%c0_11, %c0_12] : memref<8x64xf32, #tpu.memory_space<vmem>>, vector<8x64xf32>
      tpu.vector_store %arg8[%c0_11, %c0_12], %14 {strides = array<i32>} : memref<8x64xf32, #tpu.memory_space<vmem>>, vector<8x64xf32>,
    } else {
    }
    %c0 = arith.constant 0 : index
    %c0_1 = arith.constant 0 : index
    %3 = vector.load %arg3[%c0, %c0_1] : memref<8x256xf32, #tpu.memory_space<vmem>>, vector<8x256xf32>
    %c0_2 = arith.constant 0 : index
    %c0_3 = arith.constant 0 : index
    %4 = vector.load %arg8[%c0_2, %c0_3] : memref<8x64xf32, #tpu.memory_space<vmem>>, vector<8x64xf32>
    %5 = arith.truncf %3 : vector<8x256xf32> to vector<8x256xbf16>
    %c0_4 = arith.constant 0 : index
    %c0_5 = arith.constant 0 : index
    %6 = vector.load %arg4[%c0_4, %c0_5] : memref<256x64xf32, #tpu.memory_space<vmem>>, vector<256x64xf32>
    %7 = arith.truncf %6 : vector<256x64xf32> to vector<256x64xbf16>
    %cst = arith.constant dense<0.000000e+00> : vector<8x64xf32>
    %8 = tpu.matmul %5, %7, %cst {dimension_numbers = #tpu.dot_dimension_numbers<[1], [0], [0], [1], [0, 0, 1, 1], [], []>} : vector<8x256xbf16>, vector<256x64xbf16>, vector<8x64xf32> -> vector<8x64xf32>
    %9 = arith.addf %4, %8 : vector<8x64xf32>
    %c0_6 = arith.constant 0 : index
    %c0_7 = arith.constant 0 : index
    %10 = vector.load %arg8[%c0_6, %c0_7] : memref<8x64xf32, #tpu.memory_space<vmem>>, vector<8x64xf32>
    tpu.vector_store %arg8[%c0_6, %c0_7], %9 {strides = array<i32>} : memref<8x64xf32, #tpu.memory_space<vmem>>, vector<8x64xf32>,
    %c0_i32_8 = arith.constant 0 : i32
    %11 = arith.cmpi eq, %arg2, %c0_i32_8 : i32
    %12 = arith.extui %11 : i1 to i32
    %c0_i32_9 = arith.constant 0 : i32
    %13 = arith.cmpi ne, %12, %c0_i32_9 : i32
    scf.if %13 {
      %c0_10 = arith.constant 0 : index
      %c0_11 = arith.constant 0 : index
      %14 = vector.load %arg8[%c0_10, %c0_11] : memref<8x64xf32, #tpu.memory_space<vmem>>, vector<8x64xf32>
      %c0_12 = arith.constant 0 : index
      %c0_13 = arith.constant 0 : index
      %15 = vector.load %arg5[%c0_12, %c0_13] : memref<1x64xf32, #tpu.memory_space<vmem>>, vector<1x64xf32>
      %16 = vector.broadcast %15 : vector<1x64xf32> to vector<8x64xf32>
      %17 = arith.addf %14, %16 : vector<8x64xf32>
      %c0_14 = arith.constant 0 : index
      %c0_15 = arith.constant 0 : index
      %18 = vector.load %arg6[%c0_14, %c0_15] : memref<8x64xf32, #tpu.memory_space<vmem>>, vector<8x64xf32>
      %19 = arith.addf %17, %18 : vector<8x64xf32>
      %c0_16 = arith.constant 0 : index
      %c0_17 = arith.constant 0 : index
      %20 = vector.load %arg7[%c0_16, %c0_17] : memref<8x64xf32, #tpu.memory_space<vmem>>, vector<8x64xf32>
      tpu.vector_store %arg7[%c0_16, %c0_17], %19 {strides = array<i32>} : memref<8x64xf32, #tpu.memory_space<vmem>>, vector<8x64xf32>,
    } else {
    }
    return
  }
  func.func @transform_0(%arg0: i32, %arg1: i32, %arg2: i32) -> (i32, i32) {
    %c0_i32 = arith.constant 0 : i32
    return %arg0, %arg2 : i32, i32
  }
  func.func @transform_1(%arg0: i32, %arg1: i32, %arg2: i32) -> (i32, i32) {
    %c0_i32 = arith.constant 0 : i32
    return %arg2, %arg1 : i32, i32
  }
  func.func @transform_2(%arg0: i32, %arg1: i32, %arg2: i32) -> (i32, i32) {
    %c0_i32 = arith.constant 0 : i32
    %c0_i32_0 = arith.constant 0 : i32
    return %c0_i32, %arg1 : i32, i32
  }
  func.func @transform_3(%arg0: i32, %arg1: i32, %arg2: i32) -> (i32, i32) {
    %c0_i32 = arith.constant 0 : i32
    return %arg0, %arg1 : i32, i32
  }
  func.func @transform_4(%arg0: i32, %arg1: i32, %arg2: i32) -> (i32, i32) {
    %c0_i32 = arith.constant 0 : i32
    return %arg0, %arg1 : i32, i32
  }
}

module attributes {stable_mosaic.version = 11 : i64} {
  func.func @_fused_linear_kernel(%arg0: i32, %arg1: i32, %arg2: i32, %arg3: memref<8x64xf32, #tpu.memory_space<vmem>>, %arg4: memref<64x32xf32, #tpu.memory_space<vmem>>, %arg5: memref<1x32xf32, #tpu.memory_space<vmem>>, %arg6: memref<1x64xf32, #tpu.memory_space<vmem>>, %arg7: memref<1x64xf32, #tpu.memory_space<vmem>>, %arg8: memref<8x32xf32, #tpu.memory_space<vmem>>, %arg9: memref<8x32xf32, #tpu.memory_space<vmem>>) attributes {dimension_semantics = [#tpu.dimension_semantics<parallel>, #tpu.dimension_semantics<parallel>, #tpu.dimension_semantics<arbitrary>], iteration_bounds = array<i64: 1, 1, 1>, scalar_prefetch = 0 : i64, scratch_operands = 1 : i64, tpu.core_type = #tpu.core_type<tc>, window_params = [{transform_indices = @transform_0, window_bounds = array<i64: 8, 64>}, {transform_indices = @transform_1, window_bounds = array<i64: 64, 32>}, {transform_indices = @transform_2, window_bounds = array<i64: 1, 32>}, {transform_indices = @transform_3, window_bounds = array<i64: 1, 64>}, {transform_indices = @transform_4, window_bounds = array<i64: 1, 64>}, {transform_indices = @transform_5, window_bounds = array<i64: 8, 32>}]} {
    %c0_i32 = arith.constant 0 : i32
    %0 = arith.cmpi eq, %arg2, %c0_i32 : i32
    %1 = arith.extui %0 : i1 to i32
    %c0_i32_0 = arith.constant 0 : i32
    %2 = arith.cmpi ne, %1, %c0_i32_0 : i32
    scf.if %2 {
      %cst_19 = arith.constant 0.000000e+00 : f32
      %38 = vector.broadcast %cst_19 : f32 to vector<8x32xf32>
      %c0_20 = arith.constant 0 : index
      %c0_21 = arith.constant 0 : index
      %39 = vector.load %arg9[%c0_20, %c0_21] : memref<8x32xf32, #tpu.memory_space<vmem>>, vector<8x32xf32>
      tpu.vector_store %arg9[%c0_20, %c0_21], %38 {strides = array<i32>} : memref<8x32xf32, #tpu.memory_space<vmem>>, vector<8x32xf32>,
    } else {
    }
    %c0 = arith.constant 0 : index
    %c0_1 = arith.constant 0 : index
    %3 = vector.load %arg3[%c0, %c0_1] : memref<8x64xf32, #tpu.memory_space<vmem>>, vector<8x64xf32>
    %cst = arith.constant dense<0.000000e+00> : vector<8xf32>
    %4 = vector.multi_reduction <add>, %3, %cst [1] : vector<8x64xf32> to vector<8xf32>
    %5 = vector.shape_cast %4 : vector<8xf32> to vector<8x1xf32>
    %cst_2 = arith.constant 6.400000e+01 : f32
    %6 = vector.broadcast %cst_2 : f32 to vector<8x1xf32>
    %7 = arith.divf %5, %6 : vector<8x1xf32>
    %8 = vector.broadcast %7 : vector<8x1xf32> to vector<8x64xf32>
    %9 = arith.subf %3, %8 : vector<8x64xf32>
    %10 = arith.mulf %9, %9 : vector<8x64xf32>
    %cst_3 = arith.constant dense<0.000000e+00> : vector<8xf32>
    %11 = vector.multi_reduction <add>, %10, %cst_3 [1] : vector<8x64xf32> to vector<8xf32>
    %12 = vector.shape_cast %11 : vector<8xf32> to vector<8x1xf32>
    %cst_4 = arith.constant 6.400000e+01 : f32
    %13 = vector.broadcast %cst_4 : f32 to vector<8x1xf32>
    %14 = arith.divf %12, %13 : vector<8x1xf32>
    %15 = vector.broadcast %7 : vector<8x1xf32> to vector<8x64xf32>
    %16 = arith.subf %3, %15 : vector<8x64xf32>
    %cst_5 = arith.constant 9.99999974E-6 : f32
    %17 = vector.broadcast %cst_5 : f32 to vector<8x1xf32>
    %18 = arith.addf %14, %17 : vector<8x1xf32>
    %19 = math.rsqrt %18 : vector<8x1xf32>
    %20 = vector.broadcast %19 : vector<8x1xf32> to vector<8x64xf32>
    %21 = arith.mulf %16, %20 : vector<8x64xf32>
    %c0_6 = arith.constant 0 : index
    %c0_7 = arith.constant 0 : index
    %22 = vector.load %arg6[%c0_6, %c0_7] : memref<1x64xf32, #tpu.memory_space<vmem>>, vector<1x64xf32>
    %23 = vector.broadcast %22 : vector<1x64xf32> to vector<8x64xf32>
    %24 = arith.mulf %21, %23 : vector<8x64xf32>
    %c0_8 = arith.constant 0 : index
    %c0_9 = arith.constant 0 : index
    %25 = vector.load %arg7[%c0_8, %c0_9] : memref<1x64xf32, #tpu.memory_space<vmem>>, vector<1x64xf32>
    %26 = vector.broadcast %25 : vector<1x64xf32> to vector<8x64xf32>
    %27 = arith.addf %24, %26 : vector<8x64xf32>
    %c0_10 = arith.constant 0 : index
    %c0_11 = arith.constant 0 : index
    %28 = vector.load %arg9[%c0_10, %c0_11] : memref<8x32xf32, #tpu.memory_space<vmem>>, vector<8x32xf32>
    %29 = arith.truncf %27 : vector<8x64xf32> to vector<8x64xbf16>
    %c0_12 = arith.constant 0 : index
    %c0_13 = arith.constant 0 : index
    %30 = vector.load %arg4[%c0_12, %c0_13] : memref<64x32xf32, #tpu.memory_space<vmem>>, vector<64x32xf32>
    %31 = arith.truncf %30 : vector<64x32xf32> to vector<64x32xbf16>
    %cst_14 = arith.constant dense<0.000000e+00> : vector<8x32xf32>
    %32 = tpu.matmul %29, %31, %cst_14 {dimension_numbers = #tpu.dot_dimension_numbers<[1], [0], [0], [1], [0, 0, 1, 1], [], []>} : vector<8x64xbf16>, vector<64x32xbf16>, vector<8x32xf32> -> vector<8x32xf32>
    %33 = arith.addf %28, %32 : vector<8x32xf32>
    %c0_15 = arith.constant 0 : index
    %c0_16 = arith.constant 0 : index
    %34 = vector.load %arg9[%c0_15, %c0_16] : memref<8x32xf32, #tpu.memory_space<vmem>>, vector<8x32xf32>
    tpu.vector_store %arg9[%c0_15, %c0_16], %33 {strides = array<i32>} : memref<8x32xf32, #tpu.memory_space<vmem>>, vector<8x32xf32>,
    %c0_i32_17 = arith.constant 0 : i32
    %35 = arith.cmpi eq, %arg2, %c0_i32_17 : i32
    %36 = arith.extui %35 : i1 to i32
    %c0_i32_18 = arith.constant 0 : i32
    %37 = arith.cmpi ne, %36, %c0_i32_18 : i32
    scf.if %37 {
      %c0_19 = arith.constant 0 : index
      %c0_20 = arith.constant 0 : index
      %38 = vector.load %arg9[%c0_19, %c0_20] : memref<8x32xf32, #tpu.memory_space<vmem>>, vector<8x32xf32>
      %c0_21 = arith.constant 0 : index
      %c0_22 = arith.constant 0 : index
      %39 = vector.load %arg5[%c0_21, %c0_22] : memref<1x32xf32, #tpu.memory_space<vmem>>, vector<1x32xf32>
      %40 = vector.broadcast %39 : vector<1x32xf32> to vector<8x32xf32>
      %41 = arith.addf %38, %40 : vector<8x32xf32>
      %c0_23 = arith.constant 0 : index
      %c0_24 = arith.constant 0 : index
      %42 = vector.load %arg8[%c0_23, %c0_24] : memref<8x32xf32, #tpu.memory_space<vmem>>, vector<8x32xf32>
      tpu.vector_store %arg8[%c0_23, %c0_24], %41 {strides = array<i32>} : memref<8x32xf32, #tpu.memory_space<vmem>>, vector<8x32xf32>,
    } else {
    }
    return
  }
  func.func @transform_0(%arg0: i32, %arg1: i32, %arg2: i32) -> (i32, i32) {
    %c0_i32 = arith.constant 0 : i32
    return %arg0, %arg2 : i32, i32
  }
  func.func @transform_1(%arg0: i32, %arg1: i32, %arg2: i32) -> (i32, i32) {
    %c0_i32 = arith.constant 0 : i32
    return %arg2, %arg1 : i32, i32
  }
  func.func @transform_2(%arg0: i32, %arg1: i32, %arg2: i32) -> (i32, i32) {
    %c0_i32 = arith.constant 0 : i32
    %c0_i32_0 = arith.constant 0 : i32
    return %c0_i32, %arg1 : i32, i32
  }
  func.func @transform_3(%arg0: i32, %arg1: i32, %arg2: i32) -> (i32, i32) {
    %c0_i32 = arith.constant 0 : i32
    %c0_i32_0 = arith.constant 0 : i32
    return %c0_i32, %arg2 : i32, i32
  }
  func.func @transform_4(%arg0: i32, %arg1: i32, %arg2: i32) -> (i32, i32) {
    %c0_i32 = arith.constant 0 : i32
    %c0_i32_0 = arith.constant 0 : i32
    return %c0_i32, %arg2 : i32, i32
  }
  func.func @transform_5(%arg0: i32, %arg1: i32, %arg2: i32) -> (i32, i32) {
    %c0_i32 = arith.constant 0 : i32
    return %arg0, %arg1 : i32, i32
  }
}

module attributes {stable_mosaic.version = 11 : i64} {
  func.func @_fused_linear_kernel(%arg0: i32, %arg1: i32, %arg2: i32, %arg3: memref<32x32xf32, #tpu.memory_space<vmem>>, %arg4: memref<32x96xf32, #tpu.memory_space<vmem>>, %arg5: memref<1x96xf32, #tpu.memory_space<vmem>>, %arg6: memref<1x32xf32, #tpu.memory_space<vmem>>, %arg7: memref<1x32xf32, #tpu.memory_space<vmem>>, %arg8: memref<32x96xf32, #tpu.memory_space<vmem>>, %arg9: memref<32x96xf32, #tpu.memory_space<vmem>>) attributes {dimension_semantics = [#tpu.dimension_semantics<parallel>, #tpu.dimension_semantics<parallel>, #tpu.dimension_semantics<arbitrary>], iteration_bounds = array<i64: 1, 1, 1>, scalar_prefetch = 0 : i64, scratch_operands = 1 : i64, tpu.core_type = #tpu.core_type<tc>, window_params = [{transform_indices = @transform_0, window_bounds = array<i64: 32, 32>}, {transform_indices = @transform_1, window_bounds = array<i64: 32, 96>}, {transform_indices = @transform_2, window_bounds = array<i64: 1, 96>}, {transform_indices = @transform_3, window_bounds = array<i64: 1, 32>}, {transform_indices = @transform_4, window_bounds = array<i64: 1, 32>}, {transform_indices = @transform_5, window_bounds = array<i64: 32, 96>}]} {
    %c0_i32 = arith.constant 0 : i32
    %0 = arith.cmpi eq, %arg2, %c0_i32 : i32
    %1 = arith.extui %0 : i1 to i32
    %c0_i32_0 = arith.constant 0 : i32
    %2 = arith.cmpi ne, %1, %c0_i32_0 : i32
    scf.if %2 {
      %cst_19 = arith.constant 0.000000e+00 : f32
      %38 = vector.broadcast %cst_19 : f32 to vector<32x96xf32>
      %c0_20 = arith.constant 0 : index
      %c0_21 = arith.constant 0 : index
      %39 = vector.load %arg9[%c0_20, %c0_21] : memref<32x96xf32, #tpu.memory_space<vmem>>, vector<32x96xf32>
      tpu.vector_store %arg9[%c0_20, %c0_21], %38 {strides = array<i32>} : memref<32x96xf32, #tpu.memory_space<vmem>>, vector<32x96xf32>,
    } else {
    }
    %c0 = arith.constant 0 : index
    %c0_1 = arith.constant 0 : index
    %3 = vector.load %arg3[%c0, %c0_1] : memref<32x32xf32, #tpu.memory_space<vmem>>, vector<32x32xf32>
    %cst = arith.constant dense<0.000000e+00> : vector<32xf32>
    %4 = vector.multi_reduction <add>, %3, %cst [1] : vector<32x32xf32> to vector<32xf32>
    %5 = vector.shape_cast %4 : vector<32xf32> to vector<32x1xf32>
    %cst_2 = arith.constant 3.200000e+01 : f32
    %6 = vector.broadcast %cst_2 : f32 to vector<32x1xf32>
    %7 = arith.divf %5, %6 : vector<32x1xf32>
    %8 = vector.broadcast %7 : vector<32x1xf32> to vector<32x32xf32>
    %9 = arith.subf %3, %8 : vector<32x32xf32>
    %10 = arith.mulf %9, %9 : vector<32x32xf32>
    %cst_3 = arith.constant dense<0.000000e+00> : vector<32xf32>
    %11 = vector.multi_reduction <add>, %10, %cst_3 [1] : vector<32x32xf32> to vector<32xf32>
    %12 = vector.shape_cast %11 : vector<32xf32> to vector<32x1xf32>
    %cst_4 = arith.constant 3.200000e+01 : f32
    %13 = vector.broadcast %cst_4 : f32 to vector<32x1xf32>
    %14 = arith.divf %12, %13 : vector<32x1xf32>
    %15 = vector.broadcast %7 : vector<32x1xf32> to vector<32x32xf32>
    %16 = arith.subf %3, %15 : vector<32x32xf32>
    %cst_5 = arith.constant 9.99999974E-6 : f32
    %17 = vector.broadcast %cst_5 : f32 to vector<32x1xf32>
    %18 = arith.addf %14, %17 : vector<32x1xf32>
    %19 = math.rsqrt %18 : vector<32x1xf32>
    %20 = vector.broadcast %19 : vector<32x1xf32> to vector<32x32xf32>
    %21 = arith.mulf %16, %20 : vector<32x32xf32>
    %c0_6 = arith.constant 0 : index
    %c0_7 = arith.constant 0 : index
    %22 = vector.load %arg6[%c0_6, %c0_7] : memref<1x32xf32, #tpu.memory_space<vmem>>, vector<1x32xf32>
    %23 = vector.broadcast %22 : vector<1x32xf32> to vector<32x32xf32>
    %24 = arith.mulf %21, %23 : vector<32x32xf32>
    %c0_8 = arith.constant 0 : index
    %c0_9 = arith.constant 0 : index
    %25 = vector.load %arg7[%c0_8, %c0_9] : memref<1x32xf32, #tpu.memory_space<vmem>>, vector<1x32xf32>
    %26 = vector.broadcast %25 : vector<1x32xf32> to vector<32x32xf32>
    %27 = arith.addf %24, %26 : vector<32x32xf32>
    %c0_10 = arith.constant 0 : index
    %c0_11 = arith.constant 0 : index
    %28 = vector.load %arg9[%c0_10, %c0_11] : memref<32x96xf32, #tpu.memory_space<vmem>>, vector<32x96xf32>
    %29 = arith.truncf %27 : vector<32x32xf32> to vector<32x32xbf16>
    %c0_12 = arith.constant 0 : index
    %c0_13 = arith.constant 0 : index
    %30 = vector.load %arg4[%c0_12, %c0_13] : memref<32x96xf32, #tpu.memory_space<vmem>>, vector<32x96xf32>
    %31 = arith.truncf %30 : vector<32x96xf32> to vector<32x96xbf16>
    %cst_14 = arith.constant dense<0.000000e+00> : vector<32x96xf32>
    %32 = tpu.matmul %29, %31, %cst_14 {dimension_numbers = #tpu.dot_dimension_numbers<[1], [0], [0], [1], [0, 0, 1, 1], [], []>} : vector<32x32xbf16>, vector<32x96xbf16>, vector<32x96xf32> -> vector<32x96xf32>
    %33 = arith.addf %28, %32 : vector<32x96xf32>
    %c0_15 = arith.constant 0 : index
    %c0_16 = arith.constant 0 : index
    %34 = vector.load %arg9[%c0_15, %c0_16] : memref<32x96xf32, #tpu.memory_space<vmem>>, vector<32x96xf32>
    tpu.vector_store %arg9[%c0_15, %c0_16], %33 {strides = array<i32>} : memref<32x96xf32, #tpu.memory_space<vmem>>, vector<32x96xf32>,
    %c0_i32_17 = arith.constant 0 : i32
    %35 = arith.cmpi eq, %arg2, %c0_i32_17 : i32
    %36 = arith.extui %35 : i1 to i32
    %c0_i32_18 = arith.constant 0 : i32
    %37 = arith.cmpi ne, %36, %c0_i32_18 : i32
    scf.if %37 {
      %c0_19 = arith.constant 0 : index
      %c0_20 = arith.constant 0 : index
      %38 = vector.load %arg9[%c0_19, %c0_20] : memref<32x96xf32, #tpu.memory_space<vmem>>, vector<32x96xf32>
      %c0_21 = arith.constant 0 : index
      %c0_22 = arith.constant 0 : index
      %39 = vector.load %arg5[%c0_21, %c0_22] : memref<1x96xf32, #tpu.memory_space<vmem>>, vector<1x96xf32>
      %40 = vector.broadcast %39 : vector<1x96xf32> to vector<32x96xf32>
      %41 = arith.addf %38, %40 : vector<32x96xf32>
      %c0_23 = arith.constant 0 : index
      %c0_24 = arith.constant 0 : index
      %42 = vector.load %arg8[%c0_23, %c0_24] : memref<32x96xf32, #tpu.memory_space<vmem>>, vector<32x96xf32>
      tpu.vector_store %arg8[%c0_23, %c0_24], %41 {strides = array<i32>} : memref<32x96xf32, #tpu.memory_space<vmem>>, vector<32x96xf32>,
    } else {
    }
    return
  }
  func.func @transform_0(%arg0: i32, %arg1: i32, %arg2: i32) -> (i32, i32) {
    %c0_i32 = arith.constant 0 : i32
    return %arg0, %arg2 : i32, i32
  }
  func.func @transform_1(%arg0: i32, %arg1: i32, %arg2: i32) -> (i32, i32) {
    %c0_i32 = arith.constant 0 : i32
    return %arg2, %arg1 : i32, i32
  }
  func.func @transform_2(%arg0: i32, %arg1: i32, %arg2: i32) -> (i32, i32) {
    %c0_i32 = arith.constant 0 : i32
    %c0_i32_0 = arith.constant 0 : i32
    return %c0_i32, %arg1 : i32, i32
  }
  func.func @transform_3(%arg0: i32, %arg1: i32, %arg2: i32) -> (i32, i32) {
    %c0_i32 = arith.constant 0 : i32
    %c0_i32_0 = arith.constant 0 : i32
    return %c0_i32, %arg2 : i32, i32
  }
  func.func @transform_4(%arg0: i32, %arg1: i32, %arg2: i32) -> (i32, i32) {
    %c0_i32 = arith.constant 0 : i32
    %c0_i32_0 = arith.constant 0 : i32
    return %c0_i32, %arg2 : i32, i32
  }
  func.func @transform_5(%arg0: i32, %arg1: i32, %arg2: i32) -> (i32, i32) {
    %c0_i32 = arith.constant 0 : i32
    return %arg0, %arg1 : i32, i32
  }
}

module attributes {stable_mosaic.version = 11 : i64} {
  func.func @_flash_attn_kernel(%arg0: i32, %arg1: i32, %arg2: i32, %arg3: i32, %arg4: memref<1x1x16x8xf32, #tpu.memory_space<vmem>>, %arg5: memref<1x1x16x8xf32, #tpu.memory_space<vmem>>, %arg6: memref<1x1x16x8xf32, #tpu.memory_space<vmem>>, %arg7: memref<1x1x16x8xf32, #tpu.memory_space<vmem>>, %arg8: memref<16x1xf32, #tpu.memory_space<vmem>>, %arg9: memref<16x1xf32, #tpu.memory_space<vmem>>, %arg10: memref<16x8xf32, #tpu.memory_space<vmem>>) attributes {dimension_semantics = [#tpu.dimension_semantics<parallel>, #tpu.dimension_semantics<parallel>, #tpu.dimension_semantics<parallel>, #tpu.dimension_semantics<arbitrary>], iteration_bounds = array<i64: 2, 4, 1, 1>, scalar_prefetch = 0 : i64, scratch_operands = 3 : i64, tpu.core_type = #tpu.core_type<tc>, window_params = [{transform_indices = @transform_0, window_bounds = array<i64: 1, 1, 16, 8>}, {transform_indices = @transform_1, window_bounds = array<i64: 1, 1, 16, 8>}, {transform_indices = @transform_2, window_bounds = array<i64: 1, 1, 16, 8>}, {transform_indices = @transform_3, window_bounds = array<i64: 1, 1, 16, 8>}]} {
    %c0_i32 = arith.constant 0 : i32
    %0 = arith.cmpi eq, %arg3, %c0_i32 : i32
    %1 = arith.extui %0 : i1 to i32
    %c0_i32_0 = arith.constant 0 : i32
    %2 = arith.cmpi ne, %1, %c0_i32_0 : i32
    scf.if %2 {
      %cst_30 = arith.constant 0xFF800000 : f32
      %41 = vector.broadcast %cst_30 : f32 to vector<16x1xf32>
      %c0_31 = arith.constant 0 : index
      %c0_32 = arith.constant 0 : index
      %42 = vector.load %arg8[%c0_31, %c0_32] : memref<16x1xf32, #tpu.memory_space<vmem>>, vector<16x1xf32>
      tpu.vector_store %arg8[%c0_31, %c0_32], %41 {strides = array<i32>} : memref<16x1xf32, #tpu.memory_space<vmem>>, vector<16x1xf32>,
      %cst_33 = arith.constant 0.000000e+00 : f32
      %43 = vector.broadcast %cst_33 : f32 to vector<16x1xf32>
      %c0_34 = arith.constant 0 : index
      %c0_35 = arith.constant 0 : index
      %44 = vector.load %arg9[%c0_34, %c0_35] : memref<16x1xf32, #tpu.memory_space<vmem>>, vector<16x1xf32>
      tpu.vector_store %arg9[%c0_34, %c0_35], %43 {strides = array<i32>} : memref<16x1xf32, #tpu.memory_space<vmem>>, vector<16x1xf32>,
      %cst_36 = arith.constant 0.000000e+00 : f32
      %45 = vector.broadcast %cst_36 : f32 to vector<16x8xf32>
      %c0_37 = arith.constant 0 : index
      %c0_38 = arith.constant 0 : index
      %46 = vector.load %arg10[%c0_37, %c0_38] : memref<16x8xf32, #tpu.memory_space<vmem>>, vector<16x8xf32>
      tpu.vector_store %arg10[%c0_37, %c0_38], %45 {strides = array<i32>} : memref<16x8xf32, #tpu.memory_space<vmem>>, vector<16x8xf32>,
    } else {
    }
    %c0 = arith.constant 0 : index
    %c0_1 = arith.constant 0 : index
    %c0_2 = arith.constant 0 : index
    %c0_3 = arith.constant 0 : index
    %3 = vector.load %arg4[%c0, %c0_1, %c0_2, %c0_3] : memref<1x1x16x8xf32, #tpu.memory_space<vmem>>, vector<1x1x16x8xf32>
    %4 = vector.shape_cast %3 : vector<1x1x16x8xf32> to vector<16x8xf32>
    %5 = arith.truncf %4 : vector<16x8xf32> to vector<16x8xbf16>
    %c0_4 = arith.constant 0 : index
    %c0_5 = arith.constant 0 : index
    %c0_6 = arith.constant 0 : index
    %c0_7 = arith.constant 0 : index
    %6 = vector.load %arg5[%c0_4, %c0_5, %c0_6, %c0_7] : memref<1x1x16x8xf32, #tpu.memory_space<vmem>>, vector<1x1x16x8xf32>
    %7 = vector.shape_cast %6 : vector<1x1x16x8xf32> to vector<16x8xf32>
    %8 = arith.truncf %7 : vector<16x8xf32> to vector<16x8xbf16>
    %c0_8 = arith.constant 0 : index
    %c0_9 = arith.constant 0 : index
    %c0_10 = arith.constant 0 : index
    %c0_11 = arith.constant 0 : index
    %9 = vector.load %arg6[%c0_8, %c0_9, %c0_10, %c0_11] : memref<1x1x16x8xf32, #tpu.memory_space<vmem>>, vector<1x1x16x8xf32>
    %10 = vector.shape_cast %9 : vector<1x1x16x8xf32> to vector<16x8xf32>
    %11 = arith.truncf %10 : vector<16x8xf32> to vector<16x8xbf16>
    %cst = arith.constant dense<0.000000e+00> : vector<16x16xf32>
    %12 = tpu.matmul %5, %8, %cst {dimension_numbers = #tpu.dot_dimension_numbers<[1], [1], [0], [0], [0, 0, 1, 0], [], []>} : vector<16x8xbf16>, vector<16x8xbf16>, vector<16x16xf32> -> vector<16x16xf32>
    %cst_12 = arith.constant 0.353553385 : f32
    %13 = vector.broadcast %cst_12 : f32 to vector<16x16xf32>
    %14 = arith.mulf %12, %13 : vector<16x16xf32>
    %c0_13 = arith.constant 0 : index
    %c0_14 = arith.constant 0 : index
    %15 = vector.load %arg8[%c0_13, %c0_14] : memref<16x1xf32, #tpu.memory_space<vmem>>, vector<16x1xf32>
    %cst_15 = arith.constant dense<0xFF800000> : vector<16xf32>
    %16 = vector.multi_reduction <maximumf>, %14, %cst_15 [1] : vector<16x16xf32> to vector<16xf32>
    %17 = vector.shape_cast %16 : vector<16xf32> to vector<16x1xf32>
    %18 = arith.maximumf %15, %17 : vector<16x1xf32>
    %19 = arith.subf %15, %18 : vector<16x1xf32>
    %20 = math.exp %19 : vector<16x1xf32>
    %21 = vector.broadcast %18 : vector<16x1xf32> to vector<16x16xf32>
    %22 = arith.subf %14, %21 : vector<16x16xf32>
    %23 = math.exp %22 : vector<16x16xf32>
    %c0_16 = arith.constant 0 : index
    %c0_17 = arith.constant 0 : index
    %24 = vector.load %arg9[%c0_16, %c0_17] : memref<16x1xf32, #tpu.memory_space<vmem>>, vector<16x1xf32>
    %25 = arith.mulf %20, %24 : vector<16x1xf32>
    %cst_18 = arith.constant dense<0.000000e+00> : vector<16xf32>
    %26 = vector.multi_reduction <add>, %23, %cst_18 [1] : vector<16x16xf32> to vector<16xf32>
    %27 = vector.shape_cast %26 : vector<16xf32> to vector<16x1xf32>
    %28 = arith.addf %25, %27 : vector<16x1xf32>
    %c0_19 = arith.constant 0 : index
    %c0_20 = arith.constant 0 : index
    %29 = vector.load %arg9[%c0_19, %c0_20] : memref<16x1xf32, #tpu.memory_space<vmem>>, vector<16x1xf32>
    tpu.vector_store %arg9[%c0_19, %c0_20], %28 {strides = array<i32>} : memref<16x1xf32, #tpu.memory_space<vmem>>, vector<16x1xf32>,
    %c0_21 = arith.constant 0 : index
    %c0_22 = arith.constant 0 : index
    %30 = vector.load %arg10[%c0_21, %c0_22] : memref<16x8xf32, #tpu.memory_space<vmem>>, vector<16x8xf32>
    %31 = vector.broadcast %20 : vector<16x1xf32> to vector<16x8xf32>
    %32 = arith.mulf %31, %30 : vector<16x8xf32>
    %33 = arith.truncf %23 : vector<16x16xf32> to vector<16x16xbf16>
    %cst_23 = arith.constant dense<0.000000e+00> : vector<16x8xf32>
    %34 = tpu.matmul %33, %11, %cst_23 {dimension_numbers = #tpu.dot_dimension_numbers<[1], [0], [0], [1], [0, 0, 1, 1], [], []>} : vector<16x16xbf16>, vector<16x8xbf16>, vector<16x8xf32> -> vector<16x8xf32>
    %35 = arith.addf %32, %34 : vector<16x8xf32>
    %c0_24 = arith.constant 0 : index
    %c0_25 = arith.constant 0 : index
    %36 = vector.load %arg10[%c0_24, %c0_25] : memref<16x8xf32, #tpu.memory_space<vmem>>, vector<16x8xf32>
    tpu.vector_store %arg10[%c0_24, %c0_25], %35 {strides = array<i32>} : memref<16x8xf32, #tpu.memory_space<vmem>>, vector<16x8xf32>,
    %c0_26 = arith.constant 0 : index
    %c0_27 = arith.constant 0 : index
    %37 = vector.load %arg8[%c0_26, %c0_27] : memref<16x1xf32, #tpu.memory_space<vmem>>, vector<16x1xf32>
    tpu.vector_store %arg8[%c0_26, %c0_27], %18 {strides = array<i32>} : memref<16x1xf32, #tpu.memory_space<vmem>>, vector<16x1xf32>,
    %c0_i32_28 = arith.constant 0 : i32
    %38 = arith.cmpi eq, %arg3, %c0_i32_28 : i32
    %39 = arith.extui %38 : i1 to i32
    %c0_i32_29 = arith.constant 0 : i32
    %40 = arith.cmpi ne, %39, %c0_i32_29 : i32
    scf.if %40 {
      %c0_30 = arith.constant 0 : index
      %c0_31 = arith.constant 0 : index
      %41 = vector.load %arg10[%c0_30, %c0_31] : memref<16x8xf32, #tpu.memory_space<vmem>>, vector<16x8xf32>
      %c0_32 = arith.constant 0 : index
      %c0_33 = arith.constant 0 : index
      %42 = vector.load %arg9[%c0_32, %c0_33] : memref<16x1xf32, #tpu.memory_space<vmem>>, vector<16x1xf32>
      %43 = tpu.reciprocal %42 {approx = true} : vector<16x1xf32> -> vector<16x1xf32>
      %44 = vector.broadcast %43 : vector<16x1xf32> to vector<16x8xf32>
      %45 = arith.mulf %41, %44 : vector<16x8xf32>
      %c0_34 = arith.constant 0 : index
      %c0_35 = arith.constant 0 : index
      %c0_36 = arith.constant 0 : index
      %c0_37 = arith.constant 0 : index
      %46 = vector.load %arg7[%c0_34, %c0_35, %c0_36, %c0_37] : memref<1x1x16x8xf32, #tpu.memory_space<vmem>>, vector<1x1x16x8xf32>
      %47 = vector.shape_cast %46 : vector<1x1x16x8xf32> to vector<16x8xf32>
      %48 = vector.shape_cast %45 : vector<16x8xf32> to vector<1x1x16x8xf32>
      tpu.vector_store %arg7[%c0_34, %c0_35, %c0_36, %c0_37], %48 {strides = array<i32>} : memref<1x1x16x8xf32, #tpu.memory_space<vmem>>, vector<1x1x16x8xf32>,
    } else {
    }
    return
  }
  func.func @transform_0(%arg0: i32, %arg1: i32, %arg2: i32, %arg3: i32) -> (i32, i32, i32, i32) {
    %c0_i32 = arith.constant 0 : i32
    %c0_i32_0 = arith.constant 0 : i32
    return %arg0, %arg1, %arg2, %c0_i32 : i32, i32, i32, i32
  }
  func.func @transform_1(%arg0: i32, %arg1: i32, %arg2: i32, %arg3: i32) -> (i32, i32, i32, i32) {
    %c0_i32 = arith.constant 0 : i32
    %c0_i32_0 = arith.constant 0 : i32
    return %arg0, %arg1, %arg3, %c0_i32 : i32, i32, i32, i32
  }
  func.func @transform_2(%arg0: i32, %arg1: i32, %arg2: i32, %arg3: i32) -> (i32, i32, i32, i32) {
    %c0_i32 = arith.constant 0 : i32
    %c0_i32_0 = arith.constant 0 : i32
    return %arg0, %arg1, %arg3, %c0_i32 : i32, i32, i32, i32
  }
  func.func @transform_3(%arg0: i32, %arg1: i32, %arg2: i32, %arg3: i32) -> (i32, i32, i32, i32) {
    %c0_i32 = arith.constant 0 : i32
    %c0_i32_0 = arith.constant 0 : i32
    return %arg0, %arg1, %arg2, %c0_i32 : i32, i32, i32, i32
  }
}

module attributes {stable_mosaic.version = 11 : i64} {
  func.func @_fused_linear_kernel(%arg0: i32, %arg1: i32, %arg2: i32, %arg3: memref<32x32xf32, #tpu.memory_space<vmem>>, %arg4: memref<32x32xf32, #tpu.memory_space<vmem>>, %arg5: memref<1x32xf32, #tpu.memory_space<vmem>>, %arg6: memref<32x32xf32, #tpu.memory_space<vmem>>, %arg7: memref<32x32xf32, #tpu.memory_space<vmem>>, %arg8: memref<32x32xf32, #tpu.memory_space<vmem>>) attributes {dimension_semantics = [#tpu.dimension_semantics<parallel>, #tpu.dimension_semantics<parallel>, #tpu.dimension_semantics<arbitrary>], iteration_bounds = array<i64: 1, 1, 1>, scalar_prefetch = 0 : i64, scratch_operands = 1 : i64, tpu.core_type = #tpu.core_type<tc>, window_params = [{transform_indices = @transform_0, window_bounds = array<i64: 32, 32>}, {transform_indices = @transform_1, window_bounds = array<i64: 32, 32>}, {transform_indices = @transform_2, window_bounds = array<i64: 1, 32>}, {transform_indices = @transform_3, window_bounds = array<i64: 32, 32>}, {transform_indices = @transform_4, window_bounds = array<i64: 32, 32>}]} {
    %c0_i32 = arith.constant 0 : i32
    %0 = arith.cmpi eq, %arg2, %c0_i32 : i32
    %1 = arith.extui %0 : i1 to i32
    %c0_i32_0 = arith.constant 0 : i32
    %2 = arith.cmpi ne, %1, %c0_i32_0 : i32
    scf.if %2 {
      %cst_10 = arith.constant 0.000000e+00 : f32
      %14 = vector.broadcast %cst_10 : f32 to vector<32x32xf32>
      %c0_11 = arith.constant 0 : index
      %c0_12 = arith.constant 0 : index
      %15 = vector.load %arg8[%c0_11, %c0_12] : memref<32x32xf32, #tpu.memory_space<vmem>>, vector<32x32xf32>
      tpu.vector_store %arg8[%c0_11, %c0_12], %14 {strides = array<i32>} : memref<32x32xf32, #tpu.memory_space<vmem>>, vector<32x32xf32>,
    } else {
    }
    %c0 = arith.constant 0 : index
    %c0_1 = arith.constant 0 : index
    %3 = vector.load %arg3[%c0, %c0_1] : memref<32x32xf32, #tpu.memory_space<vmem>>, vector<32x32xf32>
    %c0_2 = arith.constant 0 : index
    %c0_3 = arith.constant 0 : index
    %4 = vector.load %arg8[%c0_2, %c0_3] : memref<32x32xf32, #tpu.memory_space<vmem>>, vector<32x32xf32>
    %5 = arith.truncf %3 : vector<32x32xf32> to vector<32x32xbf16>
    %c0_4 = arith.constant 0 : index
    %c0_5 = arith.constant 0 : index
    %6 = vector.load %arg4[%c0_4, %c0_5] : memref<32x32xf32, #tpu.memory_space<vmem>>, vector<32x32xf32>
    %7 = arith.truncf %6 : vector<32x32xf32> to vector<32x32xbf16>
    %cst = arith.constant dense<0.000000e+00> : vector<32x32xf32>
    %8 = tpu.matmul %5, %7, %cst {dimension_numbers = #tpu.dot_dimension_numbers<[1], [0], [0], [1], [0, 0, 1, 1], [], []>} : vector<32x32xbf16>, vector<32x32xbf16>, vector<32x32xf32> -> vector<32x32xf32>
    %9 = arith.addf %4, %8 : vector<32x32xf32>
    %c0_6 = arith.constant 0 : index
    %c0_7 = arith.constant 0 : index
    %10 = vector.load %arg8[%c0_6, %c0_7] : memref<32x32xf32, #tpu.memory_space<vmem>>, vector<32x32xf32>
    tpu.vector_store %arg8[%c0_6, %c0_7], %9 {strides = array<i32>} : memref<32x32xf32, #tpu.memory_space<vmem>>, vector<32x32xf32>,
    %c0_i32_8 = arith.constant 0 : i32
    %11 = arith.cmpi eq, %arg2, %c0_i32_8 : i32
    %12 = arith.extui %11 : i1 to i32
    %c0_i32_9 = arith.constant 0 : i32
    %13 = arith.cmpi ne, %12, %c0_i32_9 : i32
    scf.if %13 {
      %c0_10 = arith.constant 0 : index
      %c0_11 = arith.constant 0 : index
      %14 = vector.load %arg8[%c0_10, %c0_11] : memref<32x32xf32, #tpu.memory_space<vmem>>, vector<32x32xf32>
      %c0_12 = arith.constant 0 : index
      %c0_13 = arith.constant 0 : index
      %15 = vector.load %arg5[%c0_12, %c0_13] : memref<1x32xf32, #tpu.memory_space<vmem>>, vector<1x32xf32>
      %16 = vector.broadcast %15 : vector<1x32xf32> to vector<32x32xf32>
      %17 = arith.addf %14, %16 : vector<32x32xf32>
      %c0_14 = arith.constant 0 : index
      %c0_15 = arith.constant 0 : index
      %18 = vector.load %arg6[%c0_14, %c0_15] : memref<32x32xf32, #tpu.memory_space<vmem>>, vector<32x32xf32>
      %19 = arith.addf %17, %18 : vector<32x32xf32>
      %c0_16 = arith.constant 0 : index
      %c0_17 = arith.constant 0 : index
      %20 = vector.load %arg7[%c0_16, %c0_17] : memref<32x32xf32, #tpu.memory_space<vmem>>, vector<32x32xf32>
      tpu.vector_store %arg7[%c0_16, %c0_17], %19 {strides = array<i32>} : memref<32x32xf32, #tpu.memory_space<vmem>>, vector<32x32xf32>,
    } else {
    }
    return
  }
  func.func @transform_0(%arg0: i32, %arg1: i32, %arg2: i32) -> (i32, i32) {
    %c0_i32 = arith.constant 0 : i32
    return %arg0, %arg2 : i32, i32
  }
  func.func @transform_1(%arg0: i32, %arg1: i32, %arg2: i32) -> (i32, i32) {
    %c0_i32 = arith.constant 0 : i32
    return %arg2, %arg1 : i32, i32
  }
  func.func @transform_2(%arg0: i32, %arg1: i32, %arg2: i32) -> (i32, i32) {
    %c0_i32 = arith.constant 0 : i32
    %c0_i32_0 = arith.constant 0 : i32
    return %c0_i32, %arg1 : i32, i32
  }
  func.func @transform_3(%arg0: i32, %arg1: i32, %arg2: i32) -> (i32, i32) {
    %c0_i32 = arith.constant 0 : i32
    return %arg0, %arg1 : i32, i32
  }
  func.func @transform_4(%arg0: i32, %arg1: i32, %arg2: i32) -> (i32, i32) {
    %c0_i32 = arith.constant 0 : i32
    return %arg0, %arg1 : i32, i32
  }
}

module attributes {stable_mosaic.version = 11 : i64} {
  func.func @_fused_linear_kernel(%arg0: i32, %arg1: i32, %arg2: i32, %arg3: memref<32x32xf32, #tpu.memory_space<vmem>>, %arg4: memref<32x128xf32, #tpu.memory_space<vmem>>, %arg5: memref<1x128xf32, #tpu.memory_space<vmem>>, %arg6: memref<1x32xf32, #tpu.memory_space<vmem>>, %arg7: memref<1x32xf32, #tpu.memory_space<vmem>>, %arg8: memref<32x128xf32, #tpu.memory_space<vmem>>, %arg9: memref<32x128xf32, #tpu.memory_space<vmem>>) attributes {dimension_semantics = [#tpu.dimension_semantics<parallel>, #tpu.dimension_semantics<parallel>, #tpu.dimension_semantics<arbitrary>], iteration_bounds = array<i64: 1, 1, 1>, scalar_prefetch = 0 : i64, scratch_operands = 1 : i64, tpu.core_type = #tpu.core_type<tc>, window_params = [{transform_indices = @transform_0, window_bounds = array<i64: 32, 32>}, {transform_indices = @transform_1, window_bounds = array<i64: 32, 128>}, {transform_indices = @transform_2, window_bounds = array<i64: 1, 128>}, {transform_indices = @transform_3, window_bounds = array<i64: 1, 32>}, {transform_indices = @transform_4, window_bounds = array<i64: 1, 32>}, {transform_indices = @transform_5, window_bounds = array<i64: 32, 128>}]} {
    %c0_i32 = arith.constant 0 : i32
    %0 = arith.cmpi eq, %arg2, %c0_i32 : i32
    %1 = arith.extui %0 : i1 to i32
    %c0_i32_0 = arith.constant 0 : i32
    %2 = arith.cmpi ne, %1, %c0_i32_0 : i32
    scf.if %2 {
      %cst_19 = arith.constant 0.000000e+00 : f32
      %38 = vector.broadcast %cst_19 : f32 to vector<32x128xf32>
      %c0_20 = arith.constant 0 : index
      %c0_21 = arith.constant 0 : index
      %39 = vector.load %arg9[%c0_20, %c0_21] : memref<32x128xf32, #tpu.memory_space<vmem>>, vector<32x128xf32>
      tpu.vector_store %arg9[%c0_20, %c0_21], %38 {strides = array<i32>} : memref<32x128xf32, #tpu.memory_space<vmem>>, vector<32x128xf32>,
    } else {
    }
    %c0 = arith.constant 0 : index
    %c0_1 = arith.constant 0 : index
    %3 = vector.load %arg3[%c0, %c0_1] : memref<32x32xf32, #tpu.memory_space<vmem>>, vector<32x32xf32>
    %cst = arith.constant dense<0.000000e+00> : vector<32xf32>
    %4 = vector.multi_reduction <add>, %3, %cst [1] : vector<32x32xf32> to vector<32xf32>
    %5 = vector.shape_cast %4 : vector<32xf32> to vector<32x1xf32>
    %cst_2 = arith.constant 3.200000e+01 : f32
    %6 = vector.broadcast %cst_2 : f32 to vector<32x1xf32>
    %7 = arith.divf %5, %6 : vector<32x1xf32>
    %8 = vector.broadcast %7 : vector<32x1xf32> to vector<32x32xf32>
    %9 = arith.subf %3, %8 : vector<32x32xf32>
    %10 = arith.mulf %9, %9 : vector<32x32xf32>
    %cst_3 = arith.constant dense<0.000000e+00> : vector<32xf32>
    %11 = vector.multi_reduction <add>, %10, %cst_3 [1] : vector<32x32xf32> to vector<32xf32>
    %12 = vector.shape_cast %11 : vector<32xf32> to vector<32x1xf32>
    %cst_4 = arith.constant 3.200000e+01 : f32
    %13 = vector.broadcast %cst_4 : f32 to vector<32x1xf32>
    %14 = arith.divf %12, %13 : vector<32x1xf32>
    %15 = vector.broadcast %7 : vector<32x1xf32> to vector<32x32xf32>
    %16 = arith.subf %3, %15 : vector<32x32xf32>
    %cst_5 = arith.constant 9.99999974E-6 : f32
    %17 = vector.broadcast %cst_5 : f32 to vector<32x1xf32>
    %18 = arith.addf %14, %17 : vector<32x1xf32>
    %19 = math.rsqrt %18 : vector<32x1xf32>
    %20 = vector.broadcast %19 : vector<32x1xf32> to vector<32x32xf32>
    %21 = arith.mulf %16, %20 : vector<32x32xf32>
    %c0_6 = arith.constant 0 : index
    %c0_7 = arith.constant 0 : index
    %22 = vector.load %arg6[%c0_6, %c0_7] : memref<1x32xf32, #tpu.memory_space<vmem>>, vector<1x32xf32>
    %23 = vector.broadcast %22 : vector<1x32xf32> to vector<32x32xf32>
    %24 = arith.mulf %21, %23 : vector<32x32xf32>
    %c0_8 = arith.constant 0 : index
    %c0_9 = arith.constant 0 : index
    %25 = vector.load %arg7[%c0_8, %c0_9] : memref<1x32xf32, #tpu.memory_space<vmem>>, vector<1x32xf32>
    %26 = vector.broadcast %25 : vector<1x32xf32> to vector<32x32xf32>
    %27 = arith.addf %24, %26 : vector<32x32xf32>
    %c0_10 = arith.constant 0 : index
    %c0_11 = arith.constant 0 : index
    %28 = vector.load %arg9[%c0_10, %c0_11] : memref<32x128xf32, #tpu.memory_space<vmem>>, vector<32x128xf32>
    %29 = arith.truncf %27 : vector<32x32xf32> to vector<32x32xbf16>
    %c0_12 = arith.constant 0 : index
    %c0_13 = arith.constant 0 : index
    %30 = vector.load %arg4[%c0_12, %c0_13] : memref<32x128xf32, #tpu.memory_space<vmem>>, vector<32x128xf32>
    %31 = arith.truncf %30 : vector<32x128xf32> to vector<32x128xbf16>
    %cst_14 = arith.constant dense<0.000000e+00> : vector<32x128xf32>
    %32 = tpu.matmul %29, %31, %cst_14 {dimension_numbers = #tpu.dot_dimension_numbers<[1], [0], [0], [1], [0, 0, 1, 1], [], []>} : vector<32x32xbf16>, vector<32x128xbf16>, vector<32x128xf32> -> vector<32x128xf32>
    %33 = arith.addf %28, %32 : vector<32x128xf32>
    %c0_15 = arith.constant 0 : index
    %c0_16 = arith.constant 0 : index
    %34 = vector.load %arg9[%c0_15, %c0_16] : memref<32x128xf32, #tpu.memory_space<vmem>>, vector<32x128xf32>
    tpu.vector_store %arg9[%c0_15, %c0_16], %33 {strides = array<i32>} : memref<32x128xf32, #tpu.memory_space<vmem>>, vector<32x128xf32>,
    %c0_i32_17 = arith.constant 0 : i32
    %35 = arith.cmpi eq, %arg2, %c0_i32_17 : i32
    %36 = arith.extui %35 : i1 to i32
    %c0_i32_18 = arith.constant 0 : i32
    %37 = arith.cmpi ne, %36, %c0_i32_18 : i32
    scf.if %37 {
      %c0_19 = arith.constant 0 : index
      %c0_20 = arith.constant 0 : index
      %38 = vector.load %arg9[%c0_19, %c0_20] : memref<32x128xf32, #tpu.memory_space<vmem>>, vector<32x128xf32>
      %c0_21 = arith.constant 0 : index
      %c0_22 = arith.constant 0 : index
      %39 = vector.load %arg5[%c0_21, %c0_22] : memref<1x128xf32, #tpu.memory_space<vmem>>, vector<1x128xf32>
      %40 = vector.broadcast %39 : vector<1x128xf32> to vector<32x128xf32>
      %41 = arith.addf %38, %40 : vector<32x128xf32>
      %cst_23 = arith.constant 5.000000e-01 : f32
      %42 = vector.broadcast %cst_23 : f32 to vector<32x128xf32>
      %43 = arith.mulf %42, %41 : vector<32x128xf32>
      %cst_24 = arith.constant 0.707106769 : f32
      %44 = vector.broadcast %cst_24 : f32 to vector<32x128xf32>
      %45 = arith.mulf %41, %44 : vector<32x128xf32>
      %46 = math.erf %45 : vector<32x128xf32>
      %cst_25 = arith.constant 1.000000e+00 : f32
      %47 = vector.broadcast %cst_25 : f32 to vector<32x128xf32>
      %48 = arith.addf %47, %46 : vector<32x128xf32>
      %49 = arith.mulf %43, %48 : vector<32x128xf32>
      %c0_26 = arith.constant 0 : index
      %c0_27 = arith.constant 0 : index
      %50 = vector.load %arg8[%c0_26, %c0_27] : memref<32x128xf32, #tpu.memory_space<vmem>>, vector<32x128xf32>
      tpu.vector_store %arg8[%c0_26, %c0_27], %49 {strides = array<i32>} : memref<32x128xf32, #tpu.memory_space<vmem>>, vector<32x128xf32>,
    } else {
    }
    return
  }
  func.func @transform_0(%arg0: i32, %arg1: i32, %arg2: i32) -> (i32, i32) {
    %c0_i32 = arith.constant 0 : i32
    return %arg0, %arg2 : i32, i32
  }
  func.func @transform_1(%arg0: i32, %arg1: i32, %arg2: i32) -> (i32, i32) {
    %c0_i32 = arith.constant 0 : i32
    return %arg2, %arg1 : i32, i32
  }
  func.func @transform_2(%arg0: i32, %arg1: i32, %arg2: i32) -> (i32, i32) {
    %c0_i32 = arith.constant 0 : i32
    %c0_i32_0 = arith.constant 0 : i32
    return %c0_i32, %arg1 : i32, i32
  }
  func.func @transform_3(%arg0: i32, %arg1: i32, %arg2: i32) -> (i32, i32) {
    %c0_i32 = arith.constant 0 : i32
    %c0_i32_0 = arith.constant 0 : i32
    return %c0_i32, %arg2 : i32, i32
  }
  func.func @transform_4(%arg0: i32, %arg1: i32, %arg2: i32) -> (i32, i32) {
    %c0_i32 = arith.constant 0 : i32
    %c0_i32_0 = arith.constant 0 : i32
    return %c0_i32, %arg2 : i32, i32
  }
  func.func @transform_5(%arg0: i32, %arg1: i32, %arg2: i32) -> (i32, i32) {
    %c0_i32 = arith.constant 0 : i32
    return %arg0, %arg1 : i32, i32
  }
}

module attributes {stable_mosaic.version = 11 : i64} {
  func.func @_fused_linear_kernel(%arg0: i32, %arg1: i32, %arg2: i32, %arg3: memref<32x128xf32, #tpu.memory_space<vmem>>, %arg4: memref<128x32xf32, #tpu.memory_space<vmem>>, %arg5: memref<1x32xf32, #tpu.memory_space<vmem>>, %arg6: memref<32x32xf32, #tpu.memory_space<vmem>>, %arg7: memref<32x32xf32, #tpu.memory_space<vmem>>, %arg8: memref<32x32xf32, #tpu.memory_space<vmem>>) attributes {dimension_semantics = [#tpu.dimension_semantics<parallel>, #tpu.dimension_semantics<parallel>, #tpu.dimension_semantics<arbitrary>], iteration_bounds = array<i64: 1, 1, 1>, scalar_prefetch = 0 : i64, scratch_operands = 1 : i64, tpu.core_type = #tpu.core_type<tc>, window_params = [{transform_indices = @transform_0, window_bounds = array<i64: 32, 128>}, {transform_indices = @transform_1, window_bounds = array<i64: 128, 32>}, {transform_indices = @transform_2, window_bounds = array<i64: 1, 32>}, {transform_indices = @transform_3, window_bounds = array<i64: 32, 32>}, {transform_indices = @transform_4, window_bounds = array<i64: 32, 32>}]} {
    %c0_i32 = arith.constant 0 : i32
    %0 = arith.cmpi eq, %arg2, %c0_i32 : i32
    %1 = arith.extui %0 : i1 to i32
    %c0_i32_0 = arith.constant 0 : i32
    %2 = arith.cmpi ne, %1, %c0_i32_0 : i32
    scf.if %2 {
      %cst_10 = arith.constant 0.000000e+00 : f32
      %14 = vector.broadcast %cst_10 : f32 to vector<32x32xf32>
      %c0_11 = arith.constant 0 : index
      %c0_12 = arith.constant 0 : index
      %15 = vector.load %arg8[%c0_11, %c0_12] : memref<32x32xf32, #tpu.memory_space<vmem>>, vector<32x32xf32>
      tpu.vector_store %arg8[%c0_11, %c0_12], %14 {strides = array<i32>} : memref<32x32xf32, #tpu.memory_space<vmem>>, vector<32x32xf32>,
    } else {
    }
    %c0 = arith.constant 0 : index
    %c0_1 = arith.constant 0 : index
    %3 = vector.load %arg3[%c0, %c0_1] : memref<32x128xf32, #tpu.memory_space<vmem>>, vector<32x128xf32>
    %c0_2 = arith.constant 0 : index
    %c0_3 = arith.constant 0 : index
    %4 = vector.load %arg8[%c0_2, %c0_3] : memref<32x32xf32, #tpu.memory_space<vmem>>, vector<32x32xf32>
    %5 = arith.truncf %3 : vector<32x128xf32> to vector<32x128xbf16>
    %c0_4 = arith.constant 0 : index
    %c0_5 = arith.constant 0 : index
    %6 = vector.load %arg4[%c0_4, %c0_5] : memref<128x32xf32, #tpu.memory_space<vmem>>, vector<128x32xf32>
    %7 = arith.truncf %6 : vector<128x32xf32> to vector<128x32xbf16>
    %cst = arith.constant dense<0.000000e+00> : vector<32x32xf32>
    %8 = tpu.matmul %5, %7, %cst {dimension_numbers = #tpu.dot_dimension_numbers<[1], [0], [0], [1], [0, 0, 1, 1], [], []>} : vector<32x128xbf16>, vector<128x32xbf16>, vector<32x32xf32> -> vector<32x32xf32>
    %9 = arith.addf %4, %8 : vector<32x32xf32>
    %c0_6 = arith.constant 0 : index
    %c0_7 = arith.constant 0 : index
    %10 = vector.load %arg8[%c0_6, %c0_7] : memref<32x32xf32, #tpu.memory_space<vmem>>, vector<32x32xf32>
    tpu.vector_store %arg8[%c0_6, %c0_7], %9 {strides = array<i32>} : memref<32x32xf32, #tpu.memory_space<vmem>>, vector<32x32xf32>,
    %c0_i32_8 = arith.constant 0 : i32
    %11 = arith.cmpi eq, %arg2, %c0_i32_8 : i32
    %12 = arith.extui %11 : i1 to i32
    %c0_i32_9 = arith.constant 0 : i32
    %13 = arith.cmpi ne, %12, %c0_i32_9 : i32
    scf.if %13 {
      %c0_10 = arith.constant 0 : index
      %c0_11 = arith.constant 0 : index
      %14 = vector.load %arg8[%c0_10, %c0_11] : memref<32x32xf32, #tpu.memory_space<vmem>>, vector<32x32xf32>
      %c0_12 = arith.constant 0 : index
      %c0_13 = arith.constant 0 : index
      %15 = vector.load %arg5[%c0_12, %c0_13] : memref<1x32xf32, #tpu.memory_space<vmem>>, vector<1x32xf32>
      %16 = vector.broadcast %15 : vector<1x32xf32> to vector<32x32xf32>
      %17 = arith.addf %14, %16 : vector<32x32xf32>
      %c0_14 = arith.constant 0 : index
      %c0_15 = arith.constant 0 : index
      %18 = vector.load %arg6[%c0_14, %c0_15] : memref<32x32xf32, #tpu.memory_space<vmem>>, vector<32x32xf32>
      %19 = arith.addf %17, %18 : vector<32x32xf32>
      %c0_16 = arith.constant 0 : index
      %c0_17 = arith.constant 0 : index
      %20 = vector.load %arg7[%c0_16, %c0_17] : memref<32x32xf32, #tpu.memory_space<vmem>>, vector<32x32xf32>
      tpu.vector_store %arg7[%c0_16, %c0_17], %19 {strides = array<i32>} : memref<32x32xf32, #tpu.memory_space<vmem>>, vector<32x32xf32>,
    } else {
    }
    return
  }
  func.func @transform_0(%arg0: i32, %arg1: i32, %arg2: i32) -> (i32, i32) {
    %c0_i32 = arith.constant 0 : i32
    return %arg0, %arg2 : i32, i32
  }
  func.func @transform_1(%arg0: i32, %arg1: i32, %arg2: i32) -> (i32, i32) {
    %c0_i32 = arith.constant 0 : i32
    return %arg2, %arg1 : i32, i32
  }
  func.func @transform_2(%arg0: i32, %arg1: i32, %arg2: i32) -> (i32, i32) {
    %c0_i32 = arith.constant 0 : i32
    %c0_i32_0 = arith.constant 0 : i32
    return %c0_i32, %arg1 : i32, i32
  }
  func.func @transform_3(%arg0: i32, %arg1: i32, %arg2: i32) -> (i32, i32) {
    %c0_i32 = arith.constant 0 : i32
    return %arg0, %arg1 : i32, i32
  }
  func.func @transform_4(%arg0: i32, %arg1: i32, %arg2: i32) -> (i32, i32) {
    %c0_i32 = arith.constant 0 : i32
    return %arg0, %arg1 : i32, i32
  }
}

module attributes {stable_mosaic.version = 11 : i64} {
  func.func @_fused_linear_kernel(%arg0: i32, %arg1: i32, %arg2: i32, %arg3: memref<32x32xf32, #tpu.memory_space<vmem>>, %arg4: memref<32x192xf32, #tpu.memory_space<vmem>>, %arg5: memref<1x192xf32, #tpu.memory_space<vmem>>, %arg6: memref<1x32xf32, #tpu.memory_space<vmem>>, %arg7: memref<1x32xf32, #tpu.memory_space<vmem>>, %arg8: memref<32x192xf32, #tpu.memory_space<vmem>>, %arg9: memref<32x192xf32, #tpu.memory_space<vmem>>) attributes {dimension_semantics = [#tpu.dimension_semantics<parallel>, #tpu.dimension_semantics<parallel>, #tpu.dimension_semantics<arbitrary>], iteration_bounds = array<i64: 1, 1, 1>, scalar_prefetch = 0 : i64, scratch_operands = 1 : i64, tpu.core_type = #tpu.core_type<tc>, window_params = [{transform_indices = @transform_0, window_bounds = array<i64: 32, 32>}, {transform_indices = @transform_1, window_bounds = array<i64: 32, 192>}, {transform_indices = @transform_2, window_bounds = array<i64: 1, 192>}, {transform_indices = @transform_3, window_bounds = array<i64: 1, 32>}, {transform_indices = @transform_4, window_bounds = array<i64: 1, 32>}, {transform_indices = @transform_5, window_bounds = array<i64: 32, 192>}]} {
    %c0_i32 = arith.constant 0 : i32
    %0 = arith.cmpi eq, %arg2, %c0_i32 : i32
    %1 = arith.extui %0 : i1 to i32
    %c0_i32_0 = arith.constant 0 : i32
    %2 = arith.cmpi ne, %1, %c0_i32_0 : i32
    scf.if %2 {
      %cst_19 = arith.constant 0.000000e+00 : f32
      %38 = vector.broadcast %cst_19 : f32 to vector<32x192xf32>
      %c0_20 = arith.constant 0 : index
      %c0_21 = arith.constant 0 : index
      %39 = vector.load %arg9[%c0_20, %c0_21] : memref<32x192xf32, #tpu.memory_space<vmem>>, vector<32x192xf32>
      tpu.vector_store %arg9[%c0_20, %c0_21], %38 {strides = array<i32>} : memref<32x192xf32, #tpu.memory_space<vmem>>, vector<32x192xf32>,
    } else {
    }
    %c0 = arith.constant 0 : index
    %c0_1 = arith.constant 0 : index
    %3 = vector.load %arg3[%c0, %c0_1] : memref<32x32xf32, #tpu.memory_space<vmem>>, vector<32x32xf32>
    %cst = arith.constant dense<0.000000e+00> : vector<32xf32>
    %4 = vector.multi_reduction <add>, %3, %cst [1] : vector<32x32xf32> to vector<32xf32>
    %5 = vector.shape_cast %4 : vector<32xf32> to vector<32x1xf32>
    %cst_2 = arith.constant 3.200000e+01 : f32
    %6 = vector.broadcast %cst_2 : f32 to vector<32x1xf32>
    %7 = arith.divf %5, %6 : vector<32x1xf32>
    %8 = vector.broadcast %7 : vector<32x1xf32> to vector<32x32xf32>
    %9 = arith.subf %3, %8 : vector<32x32xf32>
    %10 = arith.mulf %9, %9 : vector<32x32xf32>
    %cst_3 = arith.constant dense<0.000000e+00> : vector<32xf32>
    %11 = vector.multi_reduction <add>, %10, %cst_3 [1] : vector<32x32xf32> to vector<32xf32>
    %12 = vector.shape_cast %11 : vector<32xf32> to vector<32x1xf32>
    %cst_4 = arith.constant 3.200000e+01 : f32
    %13 = vector.broadcast %cst_4 : f32 to vector<32x1xf32>
    %14 = arith.divf %12, %13 : vector<32x1xf32>
    %15 = vector.broadcast %7 : vector<32x1xf32> to vector<32x32xf32>
    %16 = arith.subf %3, %15 : vector<32x32xf32>
    %cst_5 = arith.constant 9.99999974E-6 : f32
    %17 = vector.broadcast %cst_5 : f32 to vector<32x1xf32>
    %18 = arith.addf %14, %17 : vector<32x1xf32>
    %19 = math.rsqrt %18 : vector<32x1xf32>
    %20 = vector.broadcast %19 : vector<32x1xf32> to vector<32x32xf32>
    %21 = arith.mulf %16, %20 : vector<32x32xf32>
    %c0_6 = arith.constant 0 : index
    %c0_7 = arith.constant 0 : index
    %22 = vector.load %arg6[%c0_6, %c0_7] : memref<1x32xf32, #tpu.memory_space<vmem>>, vector<1x32xf32>
    %23 = vector.broadcast %22 : vector<1x32xf32> to vector<32x32xf32>
    %24 = arith.mulf %21, %23 : vector<32x32xf32>
    %c0_8 = arith.constant 0 : index
    %c0_9 = arith.constant 0 : index
    %25 = vector.load %arg7[%c0_8, %c0_9] : memref<1x32xf32, #tpu.memory_space<vmem>>, vector<1x32xf32>
    %26 = vector.broadcast %25 : vector<1x32xf32> to vector<32x32xf32>
    %27 = arith.addf %24, %26 : vector<32x32xf32>
    %c0_10 = arith.constant 0 : index
    %c0_11 = arith.constant 0 : index
    %28 = vector.load %arg9[%c0_10, %c0_11] : memref<32x192xf32, #tpu.memory_space<vmem>>, vector<32x192xf32>
    %29 = arith.truncf %27 : vector<32x32xf32> to vector<32x32xbf16>
    %c0_12 = arith.constant 0 : index
    %c0_13 = arith.constant 0 : index
    %30 = vector.load %arg4[%c0_12, %c0_13] : memref<32x192xf32, #tpu.memory_space<vmem>>, vector<32x192xf32>
    %31 = arith.truncf %30 : vector<32x192xf32> to vector<32x192xbf16>
    %cst_14 = arith.constant dense<0.000000e+00> : vector<32x192xf32>
    %32 = tpu.matmul %29, %31, %cst_14 {dimension_numbers = #tpu.dot_dimension_numbers<[1], [0], [0], [1], [0, 0, 1, 1], [], []>} : vector<32x32xbf16>, vector<32x192xbf16>, vector<32x192xf32> -> vector<32x192xf32>
    %33 = arith.addf %28, %32 : vector<32x192xf32>
    %c0_15 = arith.constant 0 : index
    %c0_16 = arith.constant 0 : index
    %34 = vector.load %arg9[%c0_15, %c0_16] : memref<32x192xf32, #tpu.memory_space<vmem>>, vector<32x192xf32>
    tpu.vector_store %arg9[%c0_15, %c0_16], %33 {strides = array<i32>} : memref<32x192xf32, #tpu.memory_space<vmem>>, vector<32x192xf32>,
    %c0_i32_17 = arith.constant 0 : i32
    %35 = arith.cmpi eq, %arg2, %c0_i32_17 : i32
    %36 = arith.extui %35 : i1 to i32
    %c0_i32_18 = arith.constant 0 : i32
    %37 = arith.cmpi ne, %36, %c0_i32_18 : i32
    scf.if %37 {
      %c0_19 = arith.constant 0 : index
      %c0_20 = arith.constant 0 : index
      %38 = vector.load %arg9[%c0_19, %c0_20] : memref<32x192xf32, #tpu.memory_space<vmem>>, vector<32x192xf32>
      %c0_21 = arith.constant 0 : index
      %c0_22 = arith.constant 0 : index
      %39 = vector.load %arg5[%c0_21, %c0_22] : memref<1x192xf32, #tpu.memory_space<vmem>>, vector<1x192xf32>
      %40 = vector.broadcast %39 : vector<1x192xf32> to vector<32x192xf32>
      %41 = arith.addf %38, %40 : vector<32x192xf32>
      %c0_23 = arith.constant 0 : index
      %c0_24 = arith.constant 0 : index
      %42 = vector.load %arg8[%c0_23, %c0_24] : memref<32x192xf32, #tpu.memory_space<vmem>>, vector<32x192xf32>
      tpu.vector_store %arg8[%c0_23, %c0_24], %41 {strides = array<i32>} : memref<32x192xf32, #tpu.memory_space<vmem>>, vector<32x192xf32>,
    } else {
    }
    return
  }
  func.func @transform_0(%arg0: i32, %arg1: i32, %arg2: i32) -> (i32, i32) {
    %c0_i32 = arith.constant 0 : i32
    return %arg0, %arg2 : i32, i32
  }
  func.func @transform_1(%arg0: i32, %arg1: i32, %arg2: i32) -> (i32, i32) {
    %c0_i32 = arith.constant 0 : i32
    return %arg2, %arg1 : i32, i32
  }
  func.func @transform_2(%arg0: i32, %arg1: i32, %arg2: i32) -> (i32, i32) {
    %c0_i32 = arith.constant 0 : i32
    %c0_i32_0 = arith.constant 0 : i32
    return %c0_i32, %arg1 : i32, i32
  }
  func.func @transform_3(%arg0: i32, %arg1: i32, %arg2: i32) -> (i32, i32) {
    %c0_i32 = arith.constant 0 : i32
    %c0_i32_0 = arith.constant 0 : i32
    return %c0_i32, %arg2 : i32, i32
  }
  func.func @transform_4(%arg0: i32, %arg1: i32, %arg2: i32) -> (i32, i32) {
    %c0_i32 = arith.constant 0 : i32
    %c0_i32_0 = arith.constant 0 : i32
    return %c0_i32, %arg2 : i32, i32
  }
  func.func @transform_5(%arg0: i32, %arg1: i32, %arg2: i32) -> (i32, i32) {
    %c0_i32 = arith.constant 0 : i32
    return %arg0, %arg1 : i32, i32
  }
}

module attributes {stable_mosaic.version = 11 : i64} {
  func.func @_masked_mse_kernel(%arg0: i32, %arg1: memref<32x192xf32, #tpu.memory_space<vmem>>, %arg2: memref<32x192xf32, #tpu.memory_space<vmem>>, %arg3: memref<32x192xf32, #tpu.memory_space<vmem>>, %arg4: memref<1x1xf32, #tpu.memory_space<smem>>, %arg5: memref<1x1xf32, #tpu.memory_space<smem>>) attributes {dimension_semantics = [#tpu.dimension_semantics<arbitrary>], iteration_bounds = array<i64: 1>, scalar_prefetch = 0 : i64, scratch_operands = 0 : i64, tpu.core_type = #tpu.core_type<tc>, window_params = [{transform_indices = @transform_0, window_bounds = array<i64: 32, 192>}, {transform_indices = @transform_1, window_bounds = array<i64: 32, 192>}, {transform_indices = @transform_2, window_bounds = array<i64: 32, 192>}, {transform_indices = @transform_3, window_bounds = array<i64: 1, 1>}, {transform_indices = @transform_4, window_bounds = array<i64: 1, 1>}]} {
    %c0_i32 = arith.constant 0 : i32
    %0 = arith.cmpi eq, %arg0, %c0_i32 : i32
    %1 = arith.extui %0 : i1 to i32
    %c0_i32_0 = arith.constant 0 : i32
    %2 = arith.cmpi ne, %1, %c0_i32_0 : i32
    scf.if %2 {
      %cst_17 = arith.constant 0.000000e+00 : f32
      %c0_18 = arith.constant 0 : index
      %c0_19 = arith.constant 0 : index
      %24 = memref.load %arg4[%c0_18, %c0_19] : memref<1x1xf32, #tpu.memory_space<smem>>
      memref.store %cst_17, %arg4[%c0_18, %c0_19] : memref<1x1xf32, #tpu.memory_space<smem>>
      %cst_20 = arith.constant 0.000000e+00 : f32
      %c0_21 = arith.constant 0 : index
      %c0_22 = arith.constant 0 : index
      %25 = memref.load %arg5[%c0_21, %c0_22] : memref<1x1xf32, #tpu.memory_space<smem>>
      memref.store %cst_20, %arg5[%c0_21, %c0_22] : memref<1x1xf32, #tpu.memory_space<smem>>
    } else {
    }
    %c0 = arith.constant 0 : index
    %c0_1 = arith.constant 0 : index
    %3 = vector.load %arg1[%c0, %c0_1] : memref<32x192xf32, #tpu.memory_space<vmem>>, vector<32x192xf32>
    %c0_2 = arith.constant 0 : index
    %c0_3 = arith.constant 0 : index
    %4 = vector.load %arg2[%c0_2, %c0_3] : memref<32x192xf32, #tpu.memory_space<vmem>>, vector<32x192xf32>
    %5 = arith.subf %3, %4 : vector<32x192xf32>
    %6 = arith.mulf %5, %5 : vector<32x192xf32>
    %c0_4 = arith.constant 0 : index
    %c0_5 = arith.constant 0 : index
    %7 = vector.load %arg3[%c0_4, %c0_5] : memref<32x192xf32, #tpu.memory_space<vmem>>, vector<32x192xf32>
    %8 = arith.mulf %6, %7 : vector<32x192xf32>
    %c0_6 = arith.constant 0 : index
    %c0_7 = arith.constant 0 : index
    %9 = memref.load %arg4[%c0_6, %c0_7] : memref<1x1xf32, #tpu.memory_space<smem>>
    %10 = vector.shape_cast %8 : vector<32x192xf32> to vector<1x32x192xf32>
    %cst = arith.constant dense<0.000000e+00> : vector<1xf32>
    %11 = vector.multi_reduction <add>, %10, %cst [1, 2] : vector<1x32x192xf32> to vector<1xf32>
    %12 = vector.shape_cast %11 : vector<1xf32> to vector<1x1x1xf32>
    %13 = vector.extract %12[0, 0, 0] : f32 from vector<1x1x1xf32>
    %14 = arith.addf %9, %13 : f32
    %c0_8 = arith.constant 0 : index
    %c0_9 = arith.constant 0 : index
    %15 = memref.load %arg4[%c0_8, %c0_9] : memref<1x1xf32, #tpu.memory_space<smem>>
    memref.store %14, %arg4[%c0_8, %c0_9] : memref<1x1xf32, #tpu.memory_space<smem>>
    %c0_10 = arith.constant 0 : index
    %c0_11 = arith.constant 0 : index
    %16 = memref.load %arg5[%c0_10, %c0_11] : memref<1x1xf32, #tpu.memory_space<smem>>
    %c0_12 = arith.constant 0 : index
    %c0_13 = arith.constant 0 : index
    %17 = vector.load %arg3[%c0_12, %c0_13] : memref<32x192xf32, #tpu.memory_space<vmem>>, vector<32x192xf32>
    %18 = vector.shape_cast %17 : vector<32x192xf32> to vector<1x32x192xf32>
    %cst_14 = arith.constant dense<0.000000e+00> : vector<1xf32>
    %19 = vector.multi_reduction <add>, %18, %cst_14 [1, 2] : vector<1x32x192xf32> to vector<1xf32>
    %20 = vector.shape_cast %19 : vector<1xf32> to vector<1x1x1xf32>
    %21 = vector.extract %20[0, 0, 0] : f32 from vector<1x1x1xf32>
    %22 = arith.addf %16, %21 : f32
    %c0_15 = arith.constant 0 : index
    %c0_16 = arith.constant 0 : index
    %23 = memref.load %arg5[%c0_15, %c0_16] : memref<1x1xf32, #tpu.memory_space<smem>>
    memref.store %22, %arg5[%c0_15, %c0_16] : memref<1x1xf32, #tpu.memory_space<smem>>
    return
  }
  func.func @transform_0(%arg0: i32) -> (i32, i32) {
    %c0_i32 = arith.constant 0 : i32
    %c0_i32_0 = arith.constant 0 : i32
    return %arg0, %c0_i32 : i32, i32
  }
  func.func @transform_1(%arg0: i32) -> (i32, i32) {
    %c0_i32 = arith.constant 0 : i32
    %c0_i32_0 = arith.constant 0 : i32
    return %arg0, %c0_i32 : i32, i32
  }
  func.func @transform_2(%arg0: i32) -> (i32, i32) {
    %c0_i32 = arith.constant 0 : i32
    %c0_i32_0 = arith.constant 0 : i32
    return %arg0, %c0_i32 : i32, i32
  }
  func.func @transform_3(%arg0: i32) -> (i32, i32) {
    %c0_i32 = arith.constant 0 : i32
    %c0_i32_0 = arith.constant 0 : i32
    %c0_i32_1 = arith.constant 0 : i32
    return %c0_i32, %c0_i32_0 : i32, i32
  }
  func.func @transform_4(%arg0: i32) -> (i32, i32) {
    %c0_i32 = arith.constant 0 : i32
    %c0_i32_0 = arith.constant 0 : i32
    %c0_i32_1 = arith.constant 0 : i32
    return %c0_i32, %c0_i32_0 : i32, i32
  }
}

</mosaic_0001>

<bundles_post_ra>
// kernel: mae_forward.37
= control target key start
LH: loop header
LB: loop body
LE: loop exit
PB: predicated region body
PF: predicated region fallthrough
CT: control target
= control target key end

     0   :  { %vm19_vm0 = vcmask 261120   ;;  %v218_v60 = vmov 0.0   ;;  %s386_s1 = inlined_call_operand.vmem [shape: f32[256,32], index: 1, kind: input, shape index: {}]   ;;  %s387_s0 = inlined_call_operand.vmem [shape: f32[32,256], index: 0, kind: input, shape index: {}]   ;;  %s388_s2 = inlined_call_operand.vmem [shape: f32[1,32], index: 2, kind: input, shape index: {}]   ;;  %s389_s3 = inlined_call_operand.vmem [shape: f32[32,32], index: 3, kind: output, shape index: {}]  }
   0x1   :  { %v70_v0 = vld [vmem:[%s386_s1 + $0xf0] sm:$0xff]  ;;  %v71_v1 = vld [vmem:[%s386_s1 + $0xf8] sm:$0xff]  ;;  %v68_v5 = vld [vmem:[%s386_s1 + $0xe0] sm:$0xff]  ;;  %20 = vst.msk [vmem:[#allocation2] sm:$0xff] %vm19_vm0, %v218_v60 }
   0x2   :  { %v54_v2 = vld [vmem:[%s386_s1 + $0x70] sm:$0xff]  ;;  %v87_v3 = vpack.c.bf16 %v71_v1, %v70_v0  ;;  %v55_v4 = vld [vmem:[%s386_s1 + $0x78] sm:$0xff]  ;;  %v69_v6 = vld [vmem:[%s386_s1 + $0xe8] sm:$0xff]  ;;  %21 = vst.msk [vmem:[#allocation2 + $0x8] sm:$0xff] %vm19_vm0, %v218_v60 }
   0x3   :  { %v79_v7 = vpack.c.bf16 %v55_v4, %v54_v2  ;;  %v86_v8 = vpack.c.bf16 %v69_v6, %v68_v5  ;;  %v52_v9 = vld [vmem:[%s386_s1 + $0x60] sm:$0xff]  ;;  %v53_v10 = vld [vmem:[%s386_s1 + $0x68] sm:$0xff]  ;;  %v66_v11 = vld [vmem:[%s386_s1 + $0xd0] sm:$0xff]  ;;  %22 = vst.msk [vmem:[#allocation2 + $0x10] sm:$0xff] %vm19_vm0, %v218_v60 }
   0x4   :  { %173 = vmatprep.subr.bf16.mxu0 %v87_v3  ;;  %201 = vmatprep.subr.bf16.mxu1 %v87_v3  ;;  %v67_v12 = vld [vmem:[%s386_s1 + $0xd8] sm:$0xff]  ;;  %v78_v13 = vpack.c.bf16 %v53_v10, %v52_v9  ;;  %v50_v15 = vld [vmem:[%s386_s1 + $0x50] sm:$0xff]  ;;  %v64_v17 = vld [vmem:[%s386_s1 + $0xc0] sm:$0xff]  ;;  %23 = vst.msk [vmem:[#allocation2 + $0x18] sm:$0xff] %vm19_vm0, %v218_v60 }
   0x5   :  { %174 = vmatpush3.bf16.msra.mxu0 %v79_v7  ;;  %209 = vmatpush3.bf16.msra.mxu1 %v79_v7  ;;  %v85_v14 = vpack.c.bf16 %v67_v12, %v66_v11  ;;  %v51_v16 = vld [vmem:[%s386_s1 + $0x58] sm:$0xff]  ;;  %v65_v18 = vld [vmem:[%s386_s1 + $0xc8] sm:$0xff]  ;;  %v48_v21 = vld [vmem:[%s386_s1 + $0x40] sm:$0xff] }
   0x6   :  { %175 = vmatprep.subr.bf16.mxu0 %v86_v8  ;;  %202 = vmatprep.subr.bf16.mxu1 %v86_v8  ;;  %v77_v19 = vpack.c.bf16 %v51_v16, %v50_v15  ;;  %v84_v20 = vpack.c.bf16 %v65_v18, %v64_v17  ;;  %v49_v22 = vld [vmem:[%s386_s1 + $0x48] sm:$0xff]  ;;  %v62_v23 = vld [vmem:[%s386_s1 + $0xb0] sm:$0xff]  ;;  %v63_v24 = vld [vmem:[%s386_s1 + $0xb8] sm:$0xff] }
   0x7   :  { %v25_v25 = vld [vmem:[%s387_s0 + $0x8] sm:$0xff]  ;;  %v27_v26 = vld [vmem:[%s387_s0 + $0x18] sm:$0xff]  ;;  %v76_v29 = vpack.c.bf16 %v49_v22, %v48_v21  ;;  %v83_v32 = vpack.c.bf16 %v63_v24, %v62_v23  ;;  %v46_v33 = vld [vmem:[%s386_s1 + $0x30] sm:$0xff] }
   0x8   :  { %v29_v27 = vld [vmem:[%s387_s0 + $0x28] sm:$0xff]  ;;  %v31_v28 = vld [vmem:[%s387_s0 + $0x38] sm:$0xff]  ;;  %v37_v30 = vpack.c.bf16 %v27_v26, %v25_v25  ;;  %v60_v35 = vld [vmem:[%s386_s1 + $0xa0] sm:$0xff] }
   0x9   :  { %176 = vmatpush3.bf16.msra.mxu0 %v78_v13  ;;  %210 = vmatpush3.bf16.msra.mxu1 %v78_v13  ;;  %v39_v31 = vpack.c.bf16 %v31_v28, %v29_v27  ;;  %v47_v34 = vld [vmem:[%s386_s1 + $0x38] sm:$0xff]  ;;  %v61_v36 = vld [vmem:[%s386_s1 + $0xa8] sm:$0xff]  ;;  %v44_v39 = vld [vmem:[%s386_s1 + $0x20] sm:$0xff] }
   0xa   :  { %177 = vmatprep.subr.bf16.mxu0 %v85_v14  ;;  %203 = vmatprep.subr.bf16.mxu1 %v85_v14  ;;  %v75_v37 = vpack.c.bf16 %v47_v34, %v46_v33  ;;  %v82_v38 = vpack.c.bf16 %v61_v36, %v60_v35  ;;  %v45_v40 = vld [vmem:[%s386_s1 + $0x28] sm:$0xff]  ;;  %v58_v41 = vld [vmem:[%s386_s1 + $0x90] sm:$0xff]  ;;  %v59_v42 = vld [vmem:[%s386_s1 + $0x98] sm:$0xff] }
   0xb   :  { %120 = vmatprep.mubr.bf16.mxu0 %v37_v30  ;;  %128 = vmatprep.mubr.bf16.mxu1 %v39_v31  ;;  %v74_v43 = vpack.c.bf16 %v45_v40, %v44_v39  ;;  %v81_v44 = vpack.c.bf16 %v59_v42, %v58_v41  ;;  %v42_v45 = vld [vmem:[%s386_s1 + $0x10] sm:$0xff]  ;;  %v43_v46 = vld [vmem:[%s386_s1 + $0x18] sm:$0xff]  ;;  %v56_v47 = vld [vmem:[%s386_s1 + $0x80] sm:$0xff] }
   0xc   :  { %v57_v48 = vld [vmem:[%s386_s1 + $0x88] sm:$0xff]  ;;  %v73_v49 = vpack.c.bf16 %v43_v46, %v42_v45  ;;  %v40_v51 = vld [vmem:[%s386_s1] sm:$0xff]  ;;  %v26_v55 = vld [vmem:[%s387_s0 + $0x10] sm:$0xff] }
   0xd   :  { %178 = vmatpush3.bf16.msra.mxu0 %v77_v19  ;;  %211 = vmatpush3.bf16.msra.mxu1 %v77_v19  ;;  %v80_v50 = vpack.c.bf16 %v57_v48, %v56_v47  ;;  %v41_v52 = vld [vmem:[%s386_s1 + $0x8] sm:$0xff]  ;;  %v24_v53 = vld [vmem:[%s387_s0] sm:$0xff]  ;;  %v30_v57 = vld [vmem:[%s387_s0 + $0x30] sm:$0xff] }
   0xe   :  { %179 = vmatprep.subr.bf16.mxu0 %v84_v20  ;;  %204 = vmatprep.subr.bf16.mxu1 %v84_v20  ;;  %v72_v54 = vpack.c.bf16 %v41_v52, %v40_v51  ;;  %v28_v56 = vld [vmem:[%s387_s0 + $0x20] sm:$0xff]  ;;  %v36_v58 = vpack.c.bf16 %v26_v55, %v24_v53  ;;  %v34_v1 = vld [vmem:[#allocation2 + $0x10] sm:$0xff]  ;;  %v33_v9 = vld [vmem:[#allocation2 + $0x8] sm:$0xff] }
   0xf   :  { %v38_v59 = vpack.c.bf16 %v30_v57, %v28_v56  ;;  %v32_v63 = vld [vmem:[#allocation2] sm:$0xff]  ;;  %v35_v11 = vld [vmem:[#allocation2 + $0x18] sm:$0xff] }
  0x10   :  { %v172_v17 = vld [vmem:[%s388_s2] ss:$0 sm:$0xff] }
  0x11   :  { %180 = vmatpush3.bf16.msra.mxu0 %v76_v29  ;;  %212 = vmatpush3.bf16.msra.mxu1 %v76_v29 }
  0x12   :  { %181 = vmatprep.subr.bf16.mxu0 %v83_v32  ;;  %205 = vmatprep.subr.bf16.mxu1 %v83_v32 }
  0x15   :  { %182 = vmatpush3.bf16.msra.mxu0 %v75_v37  ;;  %213 = vmatpush3.bf16.msra.mxu1 %v75_v37 }
  0x16   :  { %183 = vmatprep.subr.bf16.mxu0 %v82_v38  ;;  %206 = vmatprep.subr.bf16.mxu1 %v82_v38 }
  0x19   :  { %184 = vmatpush3.bf16.msra.mxu0 %v74_v43  ;;  %214 = vmatpush3.bf16.msra.mxu1 %v74_v43 }
  0x1a   :  { %185 = vmatprep.subr.bf16.mxu0 %v81_v44  ;;  %207 = vmatprep.subr.bf16.mxu1 %v81_v44 }
  0x1d   :  { %186 = vmatpush3.bf16.msra.mxu0 %v73_v49  ;;  %215 = vmatpush3.bf16.msra.mxu1 %v73_v49 }
  0x1e   :  { %187 = vmatprep.subr.bf16.mxu0 %v80_v50  ;;  %208 = vmatprep.subr.bf16.mxu1 %v80_v50 }
  0x21   :  { %188 = vmatpush3.bf16.msra.mxu0 %v72_v54  ;;  %216 = vmatpush3.bf16.msra.mxu1 %v72_v54 }
  0x24   :  { %121 = vmatmul.mubr.bf16.vlgmr.msra.gmra.mxu0 %v36_v58  ;;  %129 = vmatmul.mubr.bf16.vlgmr.msra.gmra.mxu1 %v38_v59 }
  0xe4   :  { %v189_v61 = vpop.f32.mrf.mxu0  ;;  %v195_v62 = vpop.f32.mrf.mxu1 }
  0xe6   :  { %v190_v0 = vpop.f32.mrf.mxu0  ;;  %v196_v2 = vpop.f32.mrf.mxu1 }
  0xe7   :  { %v191_v3 = vadd.f32 %v190_v0, %v189_v61  ;;  %v197_v4 = vadd.f32 %v196_v2, %v195_v62 }
  0xe8   :  { %v192_v5 = vpop.f32.mrf.mxu0  ;;  %v198_v6 = vpop.f32.mrf.mxu1 }
  0xe9   :  { %v137_v7 = vadd.f32 %v191_v3, %v32_v63  ;;  %v139_v8 = vadd.f32 %v197_v4, %v34_v1 }
  0xea   :  { %v193_v10 = vpop.f32.mrf.mxu0  ;;  %v199_v12 = vpop.f32.mrf.mxu1 }
  0xeb   :  { %142 = vst.msk [vmem:[#allocation2] sm:$0xff] %vm19_vm0, %v137_v7  ;;  %144 = vst.msk [vmem:[#allocation2 + $0x10] sm:$0xff] %vm19_vm0, %v139_v8  ;;  %v194_v13 = vadd.f32 %v193_v10, %v192_v5  ;;  %v200_v14 = vadd.f32 %v199_v12, %v198_v6 }
  0xed   :  { %v138_v15 = vadd.f32 %v194_v13, %v33_v9  ;;  %v140_v16 = vadd.f32 %v200_v14, %v35_v11 }
  0xef   :  { %143 = vst.msk [vmem:[#allocation2 + $0x8] sm:$0xff] %vm19_vm0, %v138_v15  ;;  %145 = vst.msk [vmem:[#allocation2 + $0x18] sm:$0xff] %vm19_vm0, %v140_v16 }
  0xf2   :  { %v149_v18 = vld [vmem:[#allocation2] sm:$0xff]  ;;  %v151_v19 = vld [vmem:[#allocation2 + $0x10] sm:$0xff] }
  0xf3   :  { %v160_v20 = vadd.f32 %v172_v17, %v149_v18  ;;  %v162_v21 = vadd.f32 %v172_v17, %v151_v19 }
  0xf5   :  { %164 = vst.msk [vmem:[%s389_s3] sm:$0xff] %vm19_vm0, %v160_v20  ;;  %166 = vst.msk [vmem:[%s389_s3 + $0x10] sm:$0xff] %vm19_vm0, %v162_v21 }
  0xf6   :  { %v150_v22 = vld [vmem:[#allocation2 + $0x8] sm:$0xff]  ;;  %v152_v23 = vld [vmem:[#allocation2 + $0x18] sm:$0xff] }
  0xf7   :  { %v161_v24 = vadd.f32 %v172_v17, %v150_v22  ;;  %v163_v25 = vadd.f32 %v172_v17, %v152_v23 }
  0xf9   :  { %165 = vst.msk [vmem:[%s389_s3 + $0x8] sm:$0xff] %vm19_vm0, %v161_v24  ;;  %167 = vst.msk [vmem:[%s389_s3 + $0x18] sm:$0xff] %vm19_vm0, %v163_v25 }

// kernel: mae_forward.25
= control target key start
LH: loop header
LB: loop body
LE: loop exit
PB: predicated region body
PF: predicated region fallthrough
CT: control target
= control target key end

     0   :  { %vm19_vm0 = vcmask 523264   ;;  %v195_v0 = vmov 0   ;;  %v196_v4 = vmov 0.0   ;;  %s366_s1 = inlined_call_operand.vmem [shape: f32[192,64], index: 1, kind: input, shape index: {}]   ;;  %s367_s0 = inlined_call_operand.vmem [shape: f32[32,192], index: 0, kind: input, shape index: {}]   ;;  %s368_s2 = inlined_call_operand.vmem [shape: f32[1,64], index: 2, kind: input, shape index: {}]   ;;  %s369_s3 = inlined_call_operand.vmem [shape: f32[32,64], index: 3, kind: output, shape index: {}]  }
   0x1   :  { %83 = vmatprep.subr.bf16.mxu0 %v195_v0  ;;  %169 = vmatprep.subr.bf16.mxu1 %v195_v0  ;;  %v54_v1 = vld [vmem:[%s366_s1 + $0x70] sm:$0xff]  ;;  %v55_v2 = vld [vmem:[%s366_s1 + $0x78] sm:$0xff]  ;;  %v52_v3 = vld [vmem:[%s366_s1 + $0x60] sm:$0xff]  ;;  %20 = vst.msk [vmem:[#allocation2] sm:$0xff] %vm19_vm0, %v196_v4 }
   0x2   :  { %21 = vst.msk [vmem:[#allocation2 + $0x8] sm:$0xff] %vm19_vm0, %v196_v4  ;;  %22 = vst.msk [vmem:[#allocation2 + $0x10] sm:$0xff] %vm19_vm0, %v196_v4  ;;  %v71_v5 = vpack.c.bf16 %v55_v2, %v54_v1  ;;  %v53_v6 = vld [vmem:[%s366_s1 + $0x68] sm:$0xff]  ;;  %v50_v8 = vld [vmem:[%s366_s1 + $0x50] sm:$0xff] }
   0x3   :  { %23 = vst.msk [vmem:[#allocation2 + $0x18] sm:$0xff] %vm19_vm0, %v196_v4  ;;  %v70_v7 = vpack.c.bf16 %v53_v6, %v52_v3  ;;  %v51_v9 = vld [vmem:[%s366_s1 + $0x58] sm:$0xff]  ;;  %v48_v11 = vld [vmem:[%s366_s1 + $0x40] sm:$0xff]  ;;  %v49_v12 = vld [vmem:[%s366_s1 + $0x48] sm:$0xff] }
   0x4   :  { %84 = vmatpush1.bf16.msra.mxu0 %v71_v5  ;;  %181 = vmatpush1.bf16.msra.mxu1 %v71_v5  ;;  %v69_v10 = vpack.c.bf16 %v51_v9, %v50_v8  ;;  %v25_v13 = vld [vmem:[%s367_s0 + $0x8] sm:$0xff]  ;;  %v27_v14 = vld [vmem:[%s367_s0 + $0x18] sm:$0xff]  ;;  %v68_v19 = vpack.c.bf16 %v49_v12, %v48_v11  ;;  %v46_v20 = vld [vmem:[%s366_s1 + $0x30] sm:$0xff] }
   0x5   :  { %85 = vmatprep.subr.bf16.mxu0 %v195_v0  ;;  %170 = vmatprep.subr.bf16.mxu1 %v195_v0  ;;  %v29_v15 = vld [vmem:[%s367_s0 + $0x28] sm:$0xff]  ;;  %v37_v16 = vpack.c.bf16 %v27_v14, %v25_v13  ;;  %v31_v17 = vld [vmem:[%s367_s0 + $0x38] sm:$0xff]  ;;  %v44_v23 = vld [vmem:[%s366_s1 + $0x20] sm:$0xff] }
   0x6   :  { %v39_v18 = vpack.c.bf16 %v31_v17, %v29_v15  ;;  %v47_v21 = vld [vmem:[%s366_s1 + $0x38] sm:$0xff]  ;;  %v45_v24 = vld [vmem:[%s366_s1 + $0x28] sm:$0xff]  ;;  %v42_v26 = vld [vmem:[%s366_s1 + $0x10] sm:$0xff] }
   0x7   :  { %166 = vmatprep.mubr.msk.bf16.mxu0 %vm19_vm0, %v37_v16  ;;  %v67_v22 = vpack.c.bf16 %v47_v21, %v46_v20  ;;  %v66_v25 = vpack.c.bf16 %v45_v24, %v44_v23  ;;  %v43_v27 = vld [vmem:[%s366_s1 + $0x18] sm:$0xff]  ;;  %v40_v29 = vld [vmem:[%s366_s1] sm:$0xff]  ;;  %v41_v30 = vld [vmem:[%s366_s1 + $0x8] sm:$0xff] }
   0x8   :  { %86 = vmatpush1.bf16.msra.mxu0 %v70_v7  ;;  %182 = vmatpush1.bf16.msra.mxu1 %v70_v7  ;;  %v65_v28 = vpack.c.bf16 %v43_v27, %v42_v26  ;;  %v64_v31 = vpack.c.bf16 %v41_v30, %v40_v29  ;;  %v62_v32 = vld [vmem:[%s366_s1 + $0xb0] sm:$0xff]  ;;  %v63_v33 = vld [vmem:[%s366_s1 + $0xb8] sm:$0xff]  ;;  %v60_v35 = vld [vmem:[%s366_s1 + $0xa0] sm:$0xff] }
   0x9   :  { %87 = vmatprep.subr.bf16.mxu0 %v195_v0  ;;  %171 = vmatprep.subr.bf16.mxu1 %v195_v0  ;;  %v75_v34 = vpack.c.bf16 %v63_v33, %v62_v32  ;;  %v61_v36 = vld [vmem:[%s366_s1 + $0xa8] sm:$0xff]  ;;  %v58_v38 = vld [vmem:[%s366_s1 + $0x90] sm:$0xff]  ;;  %v59_v39 = vld [vmem:[%s366_s1 + $0x98] sm:$0xff] }
   0xa   :  { %167 = vmatprep.mubr.msk.bf16.mxu1 %vm19_vm0, %v39_v18  ;;  %v74_v37 = vpack.c.bf16 %v61_v36, %v60_v35  ;;  %v73_v40 = vpack.c.bf16 %v59_v39, %v58_v38  ;;  %v56_v41 = vld [vmem:[%s366_s1 + $0x80] sm:$0xff]  ;;  %v57_v42 = vld [vmem:[%s366_s1 + $0x88] sm:$0xff]  ;;  %v26_v45 = vld [vmem:[%s367_s0 + $0x10] sm:$0xff] }
   0xb   :  { %v24_v43 = vld [vmem:[%s367_s0] sm:$0xff]  ;;  %v72_v44 = vpack.c.bf16 %v57_v42, %v56_v41  ;;  %v30_v47 = vld [vmem:[%s367_s0 + $0x30] sm:$0xff]  ;;  %v33_v58 = vld [vmem:[#allocation2 + $0x8] sm:$0xff] }
   0xc   :  { %88 = vmatpush1.bf16.msra.mxu0 %v69_v10  ;;  %183 = vmatpush1.bf16.msra.mxu1 %v69_v10  ;;  %v28_v46 = vld [vmem:[%s367_s0 + $0x20] sm:$0xff]  ;;  %v36_v48 = vpack.c.bf16 %v26_v45, %v24_v43  ;;  %v34_v51 = vld [vmem:[#allocation2 + $0x10] sm:$0xff]  ;;  %v35_v59 = vld [vmem:[#allocation2 + $0x18] sm:$0xff] }
   0xd   :  { %89 = vmatprep.subr.bf16.mxu0 %v195_v0  ;;  %172 = vmatprep.subr.bf16.mxu1 %v195_v0  ;;  %v38_v49 = vpack.c.bf16 %v30_v47, %v28_v46  ;;  %v32_v50 = vld [vmem:[#allocation2] sm:$0xff] }
   0xe   :  { %v168_v2 = vld [vmem:[%s368_s2] ss:$0 sm:$0xff] }
  0x10   :  { %90 = vmatpush1.bf16.msra.mxu0 %v68_v19  ;;  %184 = vmatpush1.bf16.msra.mxu1 %v68_v19 }
  0x11   :  { %91 = vmatprep.subr.bf16.mxu0 %v195_v0  ;;  %173 = vmatprep.subr.bf16.mxu1 %v195_v0 }
  0x14   :  { %92 = vmatpush1.bf16.msra.mxu0 %v67_v22  ;;  %185 = vmatpush1.bf16.msra.mxu1 %v67_v22 }
  0x15   :  { %93 = vmatprep.subr.bf16.mxu0 %v195_v0  ;;  %174 = vmatprep.subr.bf16.mxu1 %v195_v0 }
  0x18   :  { %94 = vmatpush1.bf16.msra.mxu0 %v66_v25  ;;  %186 = vmatpush1.bf16.msra.mxu1 %v66_v25 }
  0x19   :  { %95 = vmatprep.subr.bf16.mxu0 %v195_v0  ;;  %175 = vmatprep.subr.bf16.mxu1 %v195_v0 }
  0x1c   :  { %96 = vmatpush1.bf16.msra.mxu0 %v65_v28  ;;  %187 = vmatpush1.bf16.msra.mxu1 %v65_v28 }
  0x1d   :  { %97 = vmatprep.subr.bf16.mxu0 %v195_v0  ;;  %176 = vmatprep.subr.bf16.mxu1 %v195_v0 }
  0x20   :  { %98 = vmatpush1.bf16.msra.mxu0 %v64_v31  ;;  %188 = vmatpush1.bf16.msra.mxu1 %v64_v31 }
  0x21   :  { %107 = vmatprep.subr.bf16.mxu0 %v195_v0  ;;  %177 = vmatprep.subr.bf16.mxu1 %v195_v0 }
  0x24   :  { %108 = vmatpush2.bf16.msra.mxu0 %v75_v34  ;;  %189 = vmatpush2.bf16.msra.mxu1 %v75_v34 }
  0x25   :  { %109 = vmatprep.subr.bf16.mxu0 %v195_v0  ;;  %178 = vmatprep.subr.bf16.mxu1 %v195_v0 }
  0x28   :  { %110 = vmatpush2.bf16.msra.mxu0 %v74_v37  ;;  %190 = vmatpush2.bf16.msra.mxu1 %v74_v37 }
  0x29   :  { %111 = vmatprep.subr.bf16.mxu0 %v195_v0  ;;  %179 = vmatprep.subr.bf16.mxu1 %v195_v0 }
  0x2c   :  { %112 = vmatpush2.bf16.msra.mxu0 %v73_v40  ;;  %191 = vmatpush2.bf16.msra.mxu1 %v73_v40 }
  0x2d   :  { %113 = vmatprep.subr.bf16.mxu0 %v195_v0  ;;  %180 = vmatprep.subr.bf16.mxu1 %v195_v0 }
  0x30   :  { %114 = vmatpush2.bf16.msra.mxu0 %v72_v44  ;;  %192 = vmatpush2.bf16.msra.mxu1 %v72_v44 }
  0x33   :  { %116 = vmatmul.mubr.bf16.vlgmr.msra.gmra.mxu0 %v36_v48  ;;  %124 = vmatmul.mubr.bf16.vlgmr.msra.gmra.mxu1 %v38_v49 }
  0xf3   :  { %v117_v52 = vpop.f32.mrf.mxu0  ;;  %v125_v53 = vpop.f32.mrf.mxu1 }
  0xf4   :  { %v132_v54 = vadd.f32 %v117_v52, %v32_v50  ;;  %v134_v55 = vadd.f32 %v125_v53, %v34_v51 }
  0xf5   :  { %v119_v56 = vpop.f32.mrf.mxu0  ;;  %v127_v57 = vpop.f32.mrf.mxu1 }
  0xf6   :  { %136 = vst.msk [vmem:[#allocation2] sm:$0xff] %vm19_vm0, %v132_v54  ;;  %138 = vst.msk [vmem:[#allocation2 + $0x10] sm:$0xff] %vm19_vm0, %v134_v55 }
  0xf7   :  { %v120_v60 = vpop.f32.mrf.mxu0  ;;  %v128_v61 = vpop.f32.mrf.mxu1 }
  0xf8   :  { %v133_v62 = vadd.f32 %v120_v60, %v33_v58  ;;  %v135_v63 = vadd.f32 %v128_v61, %v35_v59 }
  0xf9   :  { %v122_v0 = vpop.f32.mrf.mxu0  ;;  %v130_v1 = vpop.f32.mrf.mxu1 }
  0xfa   :  { %137 = vst.msk [vmem:[#allocation2 + $0x8] sm:$0xff] %vm19_vm0, %v133_v62  ;;  %139 = vst.msk [vmem:[#allocation2 + $0x18] sm:$0xff] %vm19_vm0, %v135_v63 }
  0xfd   :  { %v143_v3 = vld [vmem:[#allocation2] sm:$0xff]  ;;  %v145_v4 = vld [vmem:[#allocation2 + $0x10] sm:$0xff] }
  0xfe   :  { %v154_v5 = vadd.f32 %v168_v2, %v143_v3  ;;  %v156_v6 = vadd.f32 %v168_v2, %v145_v4 }
 0x100   :  { %158 = vst.msk [vmem:[%s369_s3] sm:$0xff] %vm19_vm0, %v154_v5  ;;  %160 = vst.msk [vmem:[%s369_s3 + $0x10] sm:$0xff] %vm19_vm0, %v156_v6 }
 0x101   :  { %v144_v7 = vld [vmem:[#allocation2 + $0x8] sm:$0xff]  ;;  %v146_v8 = vld [vmem:[#allocation2 + $0x18] sm:$0xff] }
 0x102   :  { %v155_v9 = vadd.f32 %v168_v2, %v144_v7  ;;  %v157_v10 = vadd.f32 %v168_v2, %v146_v8 }
 0x104   :  { %159 = vst.msk [vmem:[%s369_s3 + $0x8] sm:$0xff] %vm19_vm0, %v155_v9  ;;  %161 = vst.msk [vmem:[%s369_s3 + $0x18] sm:$0xff] %vm19_vm0, %v157_v10 }

// kernel: mae_forward.26
= control target key start
LH: loop header
LB: loop body
LE: loop exit
PB: predicated region body
PF: predicated region fallthrough
CT: control target
= control target key end

     0   :  { %vm26_vm0 = vcmask 523264   ;;  %v167_v10 = vmov 0   ;;  %v168_v32 = vmov 0.0   ;;  %v142_v43 = vlaneseq  ;;  %s271_s0 = inlined_call_operand.vmem [shape: f32[8,64], index: 0, kind: input, shape index: {}]   ;;  %s272_s1 = inlined_call_operand.vmem [shape: f32[64,192], index: 1, kind: input, shape index: {}]   ;;  %s273_s3 = inlined_call_operand.vmem [shape: f32[1,64], index: 3, kind: input, shape index: {}]   ;;  %s274_s4 = inlined_call_operand.vmem [shape: f32[1,64], index: 4, kind: input, shape index: {}]   ;;  %s275_s2 = inlined_call_operand.vmem [shape: f32[1,192], index: 2, kind: input, shape index: {}]   ;;  %s276_s5 = inlined_call_operand.vmem [shape: f32[8,192], index: 5, kind: output, shape index: {}]  }
   0x1   :  { %v28_v0 = vld [vmem:[%s271_s0] sm:$0xff]  ;;  %v76_v7 = vld [vmem:[%s272_s1 + $0x68] sm:$0xff]  ;;  %v78_v8 = vld [vmem:[%s272_s1 + $0x78] sm:$0xff]  ;;  %122 = vmatprep.mubr.bf16.mxu0 %v167_v10  ;;  %27 = vst.msk [vmem:[#allocation2 + $0x8] sm:$0xff] %vm26_vm0, %v168_v32 }
   0x2   :  { %v30_v1 = vsel %vm26_vm0, %v28_v0, 0.0  ;;  %v75_v9 = vld [vmem:[%s272_s1 + $0x60] sm:$0xff]  ;;  %v86_v11 = vpack.c.bf16 %v78_v8, %v76_v7  ;;  %v77_v12 = vld [vmem:[%s272_s1 + $0x70] sm:$0xff]  ;;  %v72_v13 = vld [vmem:[%s272_s1 + $0x48] sm:$0xff]  ;;  %v143_v44 = vshrl.u32 %v142_v43, 7 }
   0x3   :  { %31 = vadd.xlane.f32.xlu0 %v30_v1  ;;  %v74_v14 = vld [vmem:[%s272_s1 + $0x58] sm:$0xff]  ;;  %v85_v15 = vpack.c.bf16 %v77_v12, %v75_v9  ;;  %v71_v17 = vld [vmem:[%s272_s1 + $0x40] sm:$0xff]  ;;  %v73_v18 = vld [vmem:[%s272_s1 + $0x50] sm:$0xff] }
   0x4   :  { %v84_v16 = vpack.c.bf16 %v74_v14, %v72_v13  ;;  %v68_v19 = vld [vmem:[%s272_s1 + $0x28] sm:$0xff]  ;;  %98 = vmatprep.subr.bf16.mxu0 %v86_v11  ;;  %v70_v20 = vld [vmem:[%s272_s1 + $0x38] sm:$0xff]  ;;  %v83_v21 = vpack.c.bf16 %v73_v18, %v71_v17  ;;  %v67_v23 = vld [vmem:[%s272_s1 + $0x20] sm:$0xff]  ;;  %v144_v45 = vsub.s32 0, %v143_v44  ;;  %v148_v54 = vsub.s32 1, %v143_v44 }
   0x5   :  { %99 = vmatpush1.bf16.msra.mxu0 %v85_v15  ;;  %v82_v22 = vpack.c.bf16 %v70_v20, %v68_v19  ;;  %v69_v24 = vld [vmem:[%s272_s1 + $0x30] sm:$0xff]  ;;  %v64_v25 = vld [vmem:[%s272_s1 + $0x8] sm:$0xff]  ;;  %v66_v26 = vld [vmem:[%s272_s1 + $0x18] sm:$0xff] }
   0x6   :  { %100 = vmatprep.subr.bf16.mxu0 %v84_v16  ;;  %v81_v27 = vpack.c.bf16 %v69_v24, %v67_v23  ;;  %v80_v28 = vpack.c.bf16 %v66_v26, %v64_v25  ;;  %v63_v29 = vld [vmem:[%s272_s1] sm:$0xff]  ;;  %v65_v30 = vld [vmem:[%s272_s1 + $0x10] sm:$0xff] }
   0x7   :  { %v79_v31 = vpack.c.bf16 %v65_v30, %v63_v29  ;;  %v160_v37 = vld [vmem:[%s273_s3] ss:$0 sm:$0xff] }
   0x8   :  { %v161_v39 = vld [vmem:[%s274_s4] ss:$0 sm:$0xff]  ;;  %v61_v49 = vld [vmem:[#allocation2 + $0x8] sm:$0xff] }
   0x9   :  { %101 = vmatpush1.bf16.msra.mxu0 %v83_v21  ;;  %v140_v46 = vld [vmem:[%s275_s2] sm:$0x3] }
   0xa   :  { %102 = vmatprep.subr.bf16.mxu0 %v82_v22  ;;  %v145_v47 = vrot.slane %v140_v46, %v144_v45  ;;  %v149_v56 = vrot.slane %v140_v46, %v148_v54 }
   0xd   :  { %103 = vmatpush1.bf16.msra.mxu0 %v81_v27 }
   0xe   :  { %104 = vmatprep.subr.bf16.mxu0 %v80_v28 }
  0x11   :  { %105 = vmatpush1.bf16.msra.mxu0 %v79_v31 }
  0x8c   :  { %v32_v2 = vpop.xlane.xlu0 %31 }
  0x8d   :  { %v34_v3 = vmul.f32 0.015625, %v32_v2 }
  0x8f   :  { %v35_v4 = vsub.f32 %v28_v0, %v34_v3 }
  0x91   :  { %v36_v5 = vmul.f32 %v35_v4, %v35_v4 }
  0x93   :  { %v37_v6 = vsel %vm26_vm0, %v36_v5, 0.0 }
  0x94   :  { %38 = vadd.xlane.f32.xlu0 %v37_v6 }
 0x11d   :  { %v39_v33 = vpop.xlane.xlu0 %38 }
 0x11e   :  { %v40_v34 = vmul.f32 0.015625, %v39_v33 }
 0x120   :  { %v41_v35 = vadd.f32 1e-05, %v40_v34 }
 0x122   :  { %165 = vrsqrt.f32 %v41_v35 }
 0x12f   :  { %v166_v36 = vpop.eup %165 }
 0x130   :  { %v43_v38 = vmul.f32 %v166_v36, %v35_v4 }
 0x132   :  { %v51_v40 = vmul.f32 %v160_v37, %v43_v38 }
 0x134   :  { %v59_v41 = vadd.f32 %v161_v39, %v51_v40 }
 0x136   :  { %v62_v42 = vpack.c.bf16 %v59_v41, %v59_v41 }
 0x138   :  { %162 = vmatmul.mubr.msk.bf16.vlgmr.msra.gmra.mxu0 %vm26_vm0, %v62_v42 }
 0x1f8   :  { %v124_v48 = vpop.f32.mrf.mxu0 }
 0x1f9   :  { %v152_v51 = vadd.f32 %v145_v47, %v124_v48 }
 0x1fa   :  { %v126_v50 = vpop.f32.mrf.mxu0 }
 0x1fb   :  { %v132_v52 = vadd.f32 %v126_v50, %v61_v49  ;;  %154 = vst [vmem:[%s276_s5] sm:$0xff] %v152_v51 }
 0x1fc   :  { %v128_v53 = vpop.f32.mrf.mxu0 }
 0x1fd   :  { %134 = vst.msk [vmem:[#allocation2 + $0x8] sm:$0xff] %vm26_vm0, %v132_v52 }
 0x1fe   :  { %v129_v55 = vpop.f32.mrf.mxu0 }
 0x204   :  { %v139_v57 = vld [vmem:[#allocation2 + $0x8] sm:$0xff] }
 0x205   :  { %v153_v58 = vadd.f32 %v149_v56, %v139_v57 }
 0x207   :  { %155 = vst.msk [vmem:[%s276_s5 + $0x8] sm:$0xff] %vm26_vm0, %v153_v58 }

// kernel: mae_forward.27
= control target key start
LH: loop header
LB: loop body
LE: loop exit
PB: predicated region body
PF: predicated region fallthrough
CT: control target
= control target key end

     0   :  { %s777_s12 = smov 0   ;;  %s779_s13 = smov 0   ;;  %s849_s0 = inlined_call_operand.vmem [shape: f32[2,4,4,16], index: 0, kind: input, shape index: {}]   ;;  %s850_s1 = inlined_call_operand.vmem [shape: f32[2,4,4,16], index: 1, kind: input, shape index: {}]   ;;  %s851_s2 = inlined_call_operand.vmem [shape: f32[2,4,4,16], index: 2, kind: input, shape index: {}]   ;;  %s852_s3 = inlined_call_operand.vmem [shape: f32[2,4,4,16], index: 3, kind: output, shape index: {}]  }
   0x1   :  { %s781_s14 = smov 0   ;;  %s783_s15 = smov 0  }
   0x2   :  { %s785_s16 = smov 0  }
   0x3 LB: > { %s35_s17 = sadd.s32 1, %s743_s14  ;;  %s39_s18 = sadd.s32 1, %s747_s15  ;;  %s751_s16 = sphi %s785_s16, %s13_s16   ;;  %s747_s15 = sphi %s783_s15, %s856_s15   ;;  %s743_s14 = sphi %s781_s14, %s855_s14   ;;  %s739_s13 = sphi %s779_s13, %s854_s13   ;;  %s735_s12 = sphi %s777_s12, %s853_s12  }
   0x4   : > { %p37_p0 = scmp.ge.s32.totalorder %s35_s17, 4  ;;  %p632_p1 = scmp.ge.s32.totalorder %s751_s16, 1 }
   0x5   : > { %p217_p2 = scmp.lt.s32.totalorder %s751_s16, 9 }
   0x6   : > { %s858_s17 = smov (%p37_p0, %s35_s17), 0  ;;  %s860_s18 = smov (!%p37_p0, %s39_s18), %s747_s15 }
   0x7   : > { %p218_p3 = pnand %p632_p1, %p217_p2  ;;  %p41_p4 = scmp.ge.s32.totalorder %s860_s18, 2 }
   0x8   : > { %p275_p5 = scmp.lt.s32.totalorder (!%p218_p3), %s739_s13, 1  ;;  %p277_p6 = scmp.lt.s32.totalorder (!%p218_p3), %s735_s12, 3 }
   0x9   : > { %s862_s18 = smov (%p41_p4, %s860_s18), 0  ;;  %221 = sbr.rel (%p218_p3) target bundleno = 798 (0x31e), region = 32 }
   0xe   : > { %vm327_vm0 = vcmask 125952   ;;  %v753_v0 = vmov 0.0   ;;  %vm754_vm1 = vmmov 0   ;;  %s864_s13 = smov (!%p275_p5, %s739_s13), 1  ;;  %s866_s12 = smov (!%p277_p6, %s735_s12), 3  ;;  %vm335_vm2 = vcmask 130048  }
   0xf   : > { %328 = vst.msk [vmem:[#allocation4] sm:$0xf] %vm327_vm0, %v753_v0  ;;  %649 = vmatprep.subr.bf16.mxu0 %v753_v0  ;;  %651 = vmatprep.mubr.msk.bf16.mxu0 %vm754_vm1, %v753_v0  ;;  %s633_s19 = sshll.u32 %s864_s13, 2  ;;  %vm324_vm3 = vcmask 3072   ;;  %v755_v6 = vmov -inf   ;;  %vm384_vm4 = vcmask 27648  }
  0x10   : > { %655 = vmatprep.subr.bf16.mxu1 %v753_v0  ;;  %657 = vmatprep.mubr.msk.bf16.mxu1 %vm754_vm1, %v753_v0  ;;  %s283_s20 = sadd.s32 %s633_s19, %s866_s12  ;;  %325 = vst.msk [vmem:[#allocation2] sm:$0xf] %vm324_vm3, %v755_v6  ;;  %326 = vst.msk [vmem:[#allocation3] sm:$0xf] %vm324_vm3, %v753_v0  ;;  %v756_v13 = vmov 0   ;;  %vm420_vm5 = vcmask 1041408  }
  0x11   : > { %s808_s21 = sshll.u32 %s283_s20, 2  ;;  %705 = vset.pattern.permute.xlu0 %v756_v13  ;;  %706 = vset.pattern.permute.xlu1 %v756_v13  ;;  %vm416_vm6 = vcmask 31744  }
  0x12   : > { %s296_s24 = scalar_lea.vmem %s850_s1, %s808_s21  ;;  %s285_s27 = scalar_lea.vmem %s849_s0, %s808_s21 }
  0x13   : > { %v331_v1 = vld [vmem:[%s296_s24] sm:$0xf]  ;;  %s307_s30 = scalar_lea.vmem %s851_s2, %s808_s21  ;;  %s318_s6 = scalar_lea.vmem %s852_s3, %s808_s21 }
  0x14   : > { %v332_v2 = vpack.c.bf16 %v331_v1, %v331_v1  ;;  %v329_v4 = vld [vmem:[%s285_s27] sm:$0xf] }
  0x15   : > { %v330_v5 = vpack.c.bf16 %v329_v4, %v329_v4  ;;  %v333_v18 = vld [vmem:[%s307_s30] sm:$0xf] }
  0x16   : > { %v340_v3 = vsel %vm335_vm2, %v332_v2, 0  ;;  %v334_v19 = vpack.c.bf16 %v333_v18, %v333_v18  ;;  %v408_v35 = vld [vmem:[#allocation4] sm:$0xf] }
  0x17   : > { %650 = vmatpush3.bf16.xpose.msra.mxu0 %v340_v3  ;;  %v383_v14 = vld [vmem:[#allocation2] sm:$0xf]  ;;  %v400_v29 = vld [vmem:[#allocation3] sm:$0xf] }
  0x18   : > { %v422_v20 = vsel %vm420_vm5, %v334_v19, 0 }
  0x19   : > { %656 = vmatpush3.bf16.msra.mxu1 %v422_v20 }
  0x1e   : > { %652 = vmatmul.mubr.msk.bf16.vlgmr.msra.gmra.mxu0 %vm335_vm2, %v330_v5 }
  0xde   : > { %v376_v7 = vpop.f32.mrf.mxu0 }
  0xdf   : > { %v382_v8 = vmul.f32 0.25, %v376_v7 }
  0xe0   : > { %v653_v9 = vpop.f32.mrf.mxu0 }
  0xe1   : > { %v385_v10 = vsel %vm384_vm4, %v382_v8, -inf }
  0xe2   : > { %386 = vmax.xlane.f32.xlu0 %v385_v10  ;;  %v379_v11 = vpop.f32.mrf.mxu0 }
  0xe4   : > { %v654_v12 = vpop.f32.mrf.mxu0 }
 0x16b   : > { %v387_v15 = vpop.xlane.xlu0 %386 }
 0x16c   : > { %v388_v16 = vmax.f32 %v383_v14, %v387_v15 }
 0x16e   : > { %v389_v17 = vsub.f32 %v383_v14, %v388_v16  ;;  %467 = vst.msk [vmem:[#allocation2] sm:$0xf] %vm324_vm3, %v388_v16  ;;  %394 = vperm.xlu0 %705, %v388_v16  }
 0x170   : > { %v390_v25 = vmul.f32 1.442695, %v389_v17 }
 0x1e9   : > { %v395_v21 = vpop.permute.xlu0 %394 }
 0x1ea   : > { %v397_v22 = vsub.f32 %v382_v8, %v395_v21 }
 0x1ec   : > { %v398_v23 = vmul.f32 1.442695, %v397_v22 }
 0x1ee   : > { %707 = vpow2.f32 %v398_v23 }
 0x1ef   : > { %709 = vpow2.f32 %v390_v25 }
 0x1fb   : > { %v708_v24 = vpop.eup %707 }
 0x1fc   : > { %v402_v26 = vsel %vm384_vm4, %v708_v24, 0.0  ;;  %v415_v27 = vpack.c.bf16 %v708_v24, %v708_v24  ;;  %v710_v28 = vpop.eup %709 }
 0x1fd   : > { %403 = vadd.xlane.f32.xlu1 %v402_v26  ;;  %v401_v30 = vmul.f32 %v710_v28, %v400_v29 }
 0x1fe   : > { %658 = vmatmul.mubr.msk.bf16.vlgmr.msra.gmra.mxu1 %vm416_vm6, %v415_v27 }
 0x20e   : > { %411 = vperm.xlu1 %706, %v710_v28  }
 0x286   : > { %v404_v31 = vpop.xlane.xlu1 %403 }
 0x287   : > { %v405_v32 = vadd.f32 %v404_v31, %v401_v30 }
 0x289   : > { %407 = vst.msk [vmem:[#allocation3] sm:$0xf] %vm324_vm3, %v405_v32 }
 0x28a   : > { %v412_v36 = vpop.permute.xlu1 %411 }
 0x28b   : > { %v414_v37 = vmul.f32 %v412_v36, %v408_v35 }
 0x290   : > { %v472_v33 = vld [vmem:[#allocation3] sm:$0xf] }
 0x291   : > { %711 = vrcp.f32 %v472_v33 }
 0x29e   : > { %v712_v34 = vpop.eup %711 }
 0x29f   : > { %476 = vperm.xlu1 %706, %v712_v34  }
 0x2be   : > { %v458_v38 = vpop.f32.mrf.mxu1 }
 0x2bf   : > { %v464_v39 = vadd.f32 %v458_v38, %v414_v37 }
 0x2c0   : > { %v659_v40 = vpop.f32.mrf.mxu1 }
 0x2c1   : > { %466 = vst.msk [vmem:[#allocation4] sm:$0xf] %vm327_vm0, %v464_v39 }
 0x2c2   : > { %v461_v41 = vpop.f32.mrf.mxu1 }
 0x2c4   : > { %v660_v42 = vpop.f32.mrf.mxu1 }
 0x2c8   : > { %v471_v43 = vld [vmem:[#allocation4] sm:$0xf] }
 0x31a   : > { %v477_v44 = vpop.permute.xlu1 %476 }
 0x31b   : > { %v479_v45 = vmul.f32 %v477_v44, %v471_v43 }
 0x31d   : > { %480 = vst.msk [vmem:[%s318_s6] sm:$0xf] %vm327_vm0, %v479_v45 }
 0x31e PF: > { %s13_s16 = sadd.s32 1, %s751_s16   ;;  %s853_s12 = smov %s743_s14 }
 0x31f   : > { %p10_p7 = scmp.ge.s32.totalorder %s13_s16, 10   ;;  %s854_s13 = smov %s747_s15 }
 0x320   : > { %s855_s14 = smov %s858_s17  ;;  %s856_s15 = smov %s862_s18 }
 0x321   :  { %12 = sbr.rel (!%p10_p7) target bundleno = 3 (0x3), region = 76 }

// kernel: mae_forward.28
= control target key start
LH: loop header
LB: loop body
LE: loop exit
PB: predicated region body
PF: predicated region fallthrough
CT: control target
= control target key end

     0   :  { %vm22_vm0 = vcmask 523264   ;;  %v125_v0 = vmov 0.0   ;;  %vm126_vm1 = vmmov 0   ;;  %s192_s1 = inlined_call_operand.vmem [shape: f32[64,64], index: 1, kind: input, shape index: {}]   ;;  %s193_s0 = inlined_call_operand.vmem [shape: f32[8,64], index: 0, kind: input, shape index: {}]   ;;  %s194_s2 = inlined_call_operand.vmem [shape: f32[1,64], index: 2, kind: input, shape index: {}]   ;;  %s195_s3 = inlined_call_operand.vmem [shape: f32[8,64], index: 3, kind: input, shape index: {}]   ;;  %s196_s4 = inlined_call_operand.vmem [shape: f32[8,64], index: 4, kind: output, shape index: {}]  }
   0x1   :  { %111 = vmatprep.subr.bf16.mxu0 %v125_v0  ;;  %v33_v1 = vld [vmem:[%s192_s1 + $0x30] sm:$0xff]  ;;  %v34_v2 = vld [vmem:[%s192_s1 + $0x38] sm:$0xff]  ;;  %v31_v3 = vld [vmem:[%s192_s1 + $0x20] sm:$0xff]  ;;  %119 = vmatprep.mubr.msk.bf16.mxu0 %vm126_vm1, %v125_v0  ;;  %23 = vst.msk [vmem:[#allocation2] sm:$0xff] %vm22_vm0, %v125_v0 }
   0x2   :  { %v38_v4 = vpack.c.bf16 %v34_v2, %v33_v1  ;;  %v32_v5 = vld [vmem:[%s192_s1 + $0x28] sm:$0xff]  ;;  %v29_v7 = vld [vmem:[%s192_s1 + $0x10] sm:$0xff]  ;;  %v30_v8 = vld [vmem:[%s192_s1 + $0x18] sm:$0xff] }
   0x3   :  { %v37_v6 = vpack.c.bf16 %v32_v5, %v31_v3  ;;  %v36_v9 = vpack.c.bf16 %v30_v8, %v29_v7  ;;  %v27_v10 = vld [vmem:[%s192_s1] sm:$0xff]  ;;  %v28_v11 = vld [vmem:[%s192_s1 + $0x8] sm:$0xff] }
   0x4   :  { %112 = vmatpush3.bf16.msra.mxu0 %v38_v4  ;;  %v35_v12 = vpack.c.bf16 %v28_v11, %v27_v10  ;;  %v24_v13 = vld [vmem:[%s193_s0] sm:$0xff] }
   0x5   :  { %113 = vmatprep.subr.bf16.mxu0 %v125_v0  ;;  %v26_v14 = vpack.c.bf16 %v24_v13, %v24_v13  ;;  %v105_v21 = vld [vmem:[%s194_s2] ss:$0 sm:$0xff] }
   0x6   :  { %v97_v23 = vld [vmem:[%s195_s3] sm:$0xff] }
   0x8   :  { %114 = vmatpush3.bf16.msra.mxu0 %v37_v6  ;;  %v25_v15 = vld [vmem:[#allocation2] sm:$0xff] }
   0x9   :  { %115 = vmatprep.subr.bf16.mxu0 %v125_v0 }
   0xc   :  { %116 = vmatpush3.bf16.msra.mxu0 %v36_v9 }
   0xd   :  { %117 = vmatprep.subr.bf16.mxu0 %v125_v0 }
  0x10   :  { %118 = vmatpush3.bf16.msra.mxu0 %v35_v12 }
  0x13   :  { %120 = vmatmul.mubr.msk.bf16.vlgmr.msra.gmra.mxu0 %vm22_vm0, %v26_v14 }
  0xd3   :  { %v77_v16 = vpop.f32.mrf.mxu0 }
  0xd4   :  { %v83_v17 = vadd.f32 %v77_v16, %v25_v15 }
  0xd5   :  { %v121_v18 = vpop.f32.mrf.mxu0 }
  0xd6   :  { %84 = vst.msk [vmem:[#allocation2] sm:$0xff] %vm22_vm0, %v83_v17 }
  0xd7   :  { %v80_v19 = vpop.f32.mrf.mxu0 }
  0xd9   :  { %v122_v20 = vpop.f32.mrf.mxu0 }
  0xdd   :  { %v88_v22 = vld [vmem:[#allocation2] sm:$0xff] }
  0xde   :  { %v96_v24 = vadd.f32 %v105_v21, %v88_v22 }
  0xe0   :  { %v98_v25 = vadd.f32 %v97_v23, %v96_v24 }
  0xe2   :  { %99 = vst.msk [vmem:[%s196_s4] sm:$0xff] %vm22_vm0, %v98_v25 }

// kernel: mae_forward.29
= control target key start
LH: loop header
LB: loop body
LE: loop exit
PB: predicated region body
PF: predicated region fallthrough
CT: control target
= control target key end

     0   :  { %vm28_vm0 = vcmask 523264   ;;  %v179_v10 = vmov 0   ;;  %v141_v42 = vlaneseq  ;;  %s279_s0 = inlined_call_operand.vmem [shape: f32[8,64], index: 0, kind: input, shape index: {}]   ;;  %s280_s1 = inlined_call_operand.vmem [shape: f32[64,256], index: 1, kind: input, shape index: {}]   ;;  %s281_s3 = inlined_call_operand.vmem [shape: f32[1,64], index: 3, kind: input, shape index: {}]   ;;  %s282_s4 = inlined_call_operand.vmem [shape: f32[1,64], index: 4, kind: input, shape index: {}]   ;;  %s283_s2 = inlined_call_operand.vmem [shape: f32[1,256], index: 2, kind: input, shape index: {}]   ;;  %s284_s5 = inlined_call_operand.vmem [shape: f32[8,256], index: 5, kind: output, shape index: {}]  }
   0x1   :  { %v27_v0 = vld [vmem:[%s279_s0] sm:$0xff]  ;;  %v75_v7 = vld [vmem:[%s280_s1 + $0x68] sm:$0xff]  ;;  %v77_v8 = vld [vmem:[%s280_s1 + $0x78] sm:$0xff]  ;;  %121 = vmatprep.mubr.bf16.mxu0 %v179_v10 }
   0x2   :  { %v29_v1 = vsel %vm28_vm0, %v27_v0, 0.0  ;;  %v74_v9 = vld [vmem:[%s280_s1 + $0x60] sm:$0xff]  ;;  %v85_v11 = vpack.c.bf16 %v77_v8, %v75_v7  ;;  %v76_v12 = vld [vmem:[%s280_s1 + $0x70] sm:$0xff]  ;;  %v71_v13 = vld [vmem:[%s280_s1 + $0x48] sm:$0xff]  ;;  %v142_v43 = vshrl.u32 %v141_v42, 7 }
   0x3   :  { %30 = vadd.xlane.f32.xlu0 %v29_v1  ;;  %v73_v14 = vld [vmem:[%s280_s1 + $0x58] sm:$0xff]  ;;  %v84_v15 = vpack.c.bf16 %v76_v12, %v74_v9  ;;  %v70_v17 = vld [vmem:[%s280_s1 + $0x40] sm:$0xff]  ;;  %v72_v18 = vld [vmem:[%s280_s1 + $0x50] sm:$0xff] }
   0x4   :  { %v83_v16 = vpack.c.bf16 %v73_v14, %v71_v13  ;;  %v67_v19 = vld [vmem:[%s280_s1 + $0x28] sm:$0xff]  ;;  %97 = vmatprep.subr.bf16.mxu0 %v85_v11  ;;  %v69_v20 = vld [vmem:[%s280_s1 + $0x38] sm:$0xff]  ;;  %v82_v21 = vpack.c.bf16 %v72_v18, %v70_v17  ;;  %v66_v23 = vld [vmem:[%s280_s1 + $0x20] sm:$0xff]  ;;  %v143_v44 = vsub.s32 0, %v142_v43  ;;  %v147_v46 = vsub.s32 1, %v142_v43 }
   0x5   :  { %98 = vmatpush1.bf16.msra.mxu0 %v84_v15  ;;  %v81_v22 = vpack.c.bf16 %v69_v20, %v67_v19  ;;  %v68_v24 = vld [vmem:[%s280_s1 + $0x30] sm:$0xff]  ;;  %v63_v25 = vld [vmem:[%s280_s1 + $0x8] sm:$0xff]  ;;  %v65_v26 = vld [vmem:[%s280_s1 + $0x18] sm:$0xff] }
   0x6   :  { %99 = vmatprep.subr.bf16.mxu0 %v83_v16  ;;  %v80_v27 = vpack.c.bf16 %v68_v24, %v66_v23  ;;  %v79_v28 = vpack.c.bf16 %v65_v26, %v63_v25  ;;  %v62_v29 = vld [vmem:[%s280_s1] sm:$0xff]  ;;  %v64_v30 = vld [vmem:[%s280_s1 + $0x10] sm:$0xff] }
   0x7   :  { %v78_v31 = vpack.c.bf16 %v64_v30, %v62_v29  ;;  %v169_v36 = vld [vmem:[%s281_s3] ss:$0 sm:$0xff] }
   0x8   :  { %v170_v38 = vld [vmem:[%s282_s4] ss:$0 sm:$0xff] }
   0x9   :  { %100 = vmatpush1.bf16.msra.mxu0 %v82_v21  ;;  %v139_v45 = vld [vmem:[%s283_s2] sm:$0x3] }
   0xa   :  { %101 = vmatprep.subr.bf16.mxu0 %v81_v22  ;;  %v144_v47 = vrot.slane %v139_v45, %v143_v44  ;;  %v148_v48 = vrot.slane %v139_v45, %v147_v46 }
   0xd   :  { %102 = vmatpush1.bf16.msra.mxu0 %v80_v27 }
   0xe   :  { %103 = vmatprep.subr.bf16.mxu0 %v79_v28 }
  0x11   :  { %104 = vmatpush1.bf16.msra.mxu0 %v78_v31 }
  0x8c   :  { %v31_v2 = vpop.xlane.xlu0 %30 }
  0x8d   :  { %v33_v3 = vmul.f32 0.015625, %v31_v2 }
  0x8f   :  { %v34_v4 = vsub.f32 %v27_v0, %v33_v3 }
  0x91   :  { %v35_v5 = vmul.f32 %v34_v4, %v34_v4 }
  0x93   :  { %v36_v6 = vsel %vm28_vm0, %v35_v5, 0.0 }
  0x94   :  { %37 = vadd.xlane.f32.xlu0 %v36_v6 }
 0x11d   :  { %v38_v32 = vpop.xlane.xlu0 %37 }
 0x11e   :  { %v39_v33 = vmul.f32 0.015625, %v38_v32 }
 0x120   :  { %v40_v34 = vadd.f32 1e-05, %v39_v33 }
 0x122   :  { %173 = vrsqrt.f32 %v40_v34 }
 0x12f   :  { %v174_v35 = vpop.eup %173 }
 0x130   :  { %v42_v37 = vmul.f32 %v174_v35, %v34_v4 }
 0x132   :  { %v50_v39 = vmul.f32 %v169_v36, %v42_v37 }
 0x134   :  { %v58_v40 = vadd.f32 %v170_v38, %v50_v39 }
 0x136   :  { %v61_v41 = vpack.c.bf16 %v58_v40, %v58_v40 }
 0x138   :  { %171 = vmatmul.mubr.msk.bf16.vlgmr.msra.gmra.mxu0 %vm28_vm0, %v61_v41 }
 0x1f8   :  { %v123_v49 = vpop.f32.mrf.mxu0 }
 0x1f9   :  { %v151_v50 = vadd.f32 %v144_v47, %v123_v49 }
 0x1fa   :  { %v125_v51 = vpop.f32.mrf.mxu0 }
 0x1fb   :  { %v155_v52 = vmul.f32 0.70710677, %v151_v50  ;;  %v152_v53 = vadd.f32 %v148_v48, %v125_v51  ;;  %v153_v58 = vmul.f32 0.5, %v151_v50 }
 0x1fc   :  { %v127_v54 = vpop.f32.mrf.mxu0 }
 0x1fd   :  { %175 = verf.f32 %v155_v52  ;;  %v156_v55 = vmul.f32 0.70710677, %v152_v53  ;;  %v154_v62 = vmul.f32 0.5, %v152_v53 }
 0x1fe   :  { %v128_v56 = vpop.f32.mrf.mxu0 }
 0x1ff   :  { %177 = verf.f32 %v156_v55 }
 0x20a   :  { %v176_v57 = vpop.eup %175 }
 0x20b   :  { %v159_v59 = vadd.f32 1.0, %v176_v57 }
 0x20c   :  { %v178_v60 = vpop.eup %177 }
 0x20d   :  { %v161_v61 = vmul.f32 %v159_v59, %v153_v58  ;;  %v160_v63 = vadd.f32 1.0, %v178_v60 }
 0x20f   :  { %163 = vst [vmem:[%s284_s5] sm:$0xff] %v161_v61  ;;  %v162_v0 = vmul.f32 %v160_v63, %v154_v62 }
 0x211   :  { %164 = vst [vmem:[%s284_s5 + $0x8] sm:$0xff] %v162_v0 }

// kernel: mae_forward.30
= control target key start
LH: loop header
LB: loop body
LE: loop exit
PB: predicated region body
PF: predicated region fallthrough
CT: control target
= control target key end

     0   :  { %vm22_vm0 = vcmask 523264   ;;  %v163_v52 = vmov 0.0   ;;  %s303_s1 = inlined_call_operand.vmem [shape: f32[256,64], index: 1, kind: input, shape index: {}]   ;;  %s304_s0 = inlined_call_operand.vmem [shape: f32[8,256], index: 0, kind: input, shape index: {}]   ;;  %s305_s2 = inlined_call_operand.vmem [shape: f32[1,64], index: 2, kind: input, shape index: {}]   ;;  %s306_s3 = inlined_call_operand.vmem [shape: f32[8,64], index: 3, kind: input, shape index: {}]   ;;  %s307_s4 = inlined_call_operand.vmem [shape: f32[8,64], index: 4, kind: output, shape index: {}]  }
   0x1   :  { %v59_v0 = vld [vmem:[%s303_s1 + $0xf0] sm:$0xff]  ;;  %v60_v1 = vld [vmem:[%s303_s1 + $0xf8] sm:$0xff]  ;;  %v57_v5 = vld [vmem:[%s303_s1 + $0xe0] sm:$0xff]  ;;  %23 = vst.msk [vmem:[#allocation2] sm:$0xff] %vm22_vm0, %v163_v52 }
   0x2   :  { %v43_v2 = vld [vmem:[%s303_s1 + $0x70] sm:$0xff]  ;;  %v76_v3 = vpack.c.bf16 %v60_v1, %v59_v0  ;;  %v44_v4 = vld [vmem:[%s303_s1 + $0x78] sm:$0xff]  ;;  %v58_v6 = vld [vmem:[%s303_s1 + $0xe8] sm:$0xff] }
   0x3   :  { %v68_v7 = vpack.c.bf16 %v44_v4, %v43_v2  ;;  %v75_v8 = vpack.c.bf16 %v58_v6, %v57_v5  ;;  %v41_v9 = vld [vmem:[%s303_s1 + $0x60] sm:$0xff]  ;;  %v42_v10 = vld [vmem:[%s303_s1 + $0x68] sm:$0xff]  ;;  %v55_v11 = vld [vmem:[%s303_s1 + $0xd0] sm:$0xff] }
   0x4   :  { %140 = vmatprep.subr.bf16.mxu0 %v76_v3  ;;  %v56_v12 = vld [vmem:[%s303_s1 + $0xd8] sm:$0xff]  ;;  %v67_v13 = vpack.c.bf16 %v42_v10, %v41_v9  ;;  %v39_v15 = vld [vmem:[%s303_s1 + $0x50] sm:$0xff]  ;;  %v53_v17 = vld [vmem:[%s303_s1 + $0xc0] sm:$0xff] }
   0x5   :  { %141 = vmatpush3.bf16.msra.mxu0 %v68_v7  ;;  %v74_v14 = vpack.c.bf16 %v56_v12, %v55_v11  ;;  %v40_v16 = vld [vmem:[%s303_s1 + $0x58] sm:$0xff]  ;;  %v54_v18 = vld [vmem:[%s303_s1 + $0xc8] sm:$0xff]  ;;  %v37_v21 = vld [vmem:[%s303_s1 + $0x40] sm:$0xff] }
   0x6   :  { %142 = vmatprep.subr.bf16.mxu0 %v75_v8  ;;  %v66_v19 = vpack.c.bf16 %v40_v16, %v39_v15  ;;  %v73_v20 = vpack.c.bf16 %v54_v18, %v53_v17  ;;  %v38_v22 = vld [vmem:[%s303_s1 + $0x48] sm:$0xff]  ;;  %v51_v23 = vld [vmem:[%s303_s1 + $0xb0] sm:$0xff]  ;;  %v52_v24 = vld [vmem:[%s303_s1 + $0xb8] sm:$0xff] }
   0x7   :  { %v25_v25 = vld [vmem:[%s304_s0 + $0x8] sm:$0xff]  ;;  %v65_v26 = vpack.c.bf16 %v38_v22, %v37_v21  ;;  %v72_v28 = vpack.c.bf16 %v52_v24, %v51_v23  ;;  %v35_v29 = vld [vmem:[%s303_s1 + $0x30] sm:$0xff]  ;;  %v36_v30 = vld [vmem:[%s303_s1 + $0x38] sm:$0xff] }
   0x8   :  { %v28_v27 = vpack.c.bf16 %v25_v25, %v25_v25  ;;  %v49_v31 = vld [vmem:[%s303_s1 + $0xa0] sm:$0xff]  ;;  %v50_v32 = vld [vmem:[%s303_s1 + $0xa8] sm:$0xff]  ;;  %v64_v33 = vpack.c.bf16 %v36_v30, %v35_v29  ;;  %v47_v37 = vld [vmem:[%s303_s1 + $0x90] sm:$0xff] }
   0x9   :  { %143 = vmatpush3.bf16.msra.mxu0 %v67_v13  ;;  %v71_v34 = vpack.c.bf16 %v50_v32, %v49_v31  ;;  %v33_v35 = vld [vmem:[%s303_s1 + $0x20] sm:$0xff]  ;;  %v34_v36 = vld [vmem:[%s303_s1 + $0x28] sm:$0xff]  ;;  %v48_v38 = vld [vmem:[%s303_s1 + $0x98] sm:$0xff] }
   0xa   :  { %144 = vmatprep.subr.bf16.mxu0 %v74_v14  ;;  %109 = vmatprep.mubr.bf16.mxu0 %v28_v27  ;;  %v63_v39 = vpack.c.bf16 %v34_v36, %v33_v35  ;;  %v70_v40 = vpack.c.bf16 %v48_v38, %v47_v37  ;;  %v31_v41 = vld [vmem:[%s303_s1 + $0x10] sm:$0xff]  ;;  %v32_v42 = vld [vmem:[%s303_s1 + $0x18] sm:$0xff]  ;;  %v45_v43 = vld [vmem:[%s303_s1 + $0x80] sm:$0xff] }
   0xb   :  { %v46_v44 = vld [vmem:[%s303_s1 + $0x88] sm:$0xff]  ;;  %v62_v45 = vpack.c.bf16 %v32_v42, %v31_v41  ;;  %v29_v47 = vld [vmem:[%s303_s1] sm:$0xff] }
   0xc   :  { %v69_v46 = vpack.c.bf16 %v46_v44, %v45_v43  ;;  %v30_v48 = vld [vmem:[%s303_s1 + $0x8] sm:$0xff]  ;;  %v24_v50 = vld [vmem:[%s304_s0] sm:$0xff] }
   0xd   :  { %145 = vmatpush3.bf16.msra.mxu0 %v66_v19  ;;  %v61_v49 = vpack.c.bf16 %v30_v48, %v29_v47  ;;  %v27_v51 = vpack.c.bf16 %v24_v50, %v24_v50  ;;  %v26_v54 = vld [vmem:[#allocation2] sm:$0xff] }
   0xe   :  { %146 = vmatprep.subr.bf16.mxu0 %v73_v20  ;;  %v139_v60 = vld [vmem:[%s305_s2] ss:$0 sm:$0xff] }
   0xf   :  { %v132_v62 = vld [vmem:[%s306_s3] sm:$0xff] }
  0x11   :  { %147 = vmatpush3.bf16.msra.mxu0 %v65_v26 }
  0x12   :  { %148 = vmatprep.subr.bf16.mxu0 %v72_v28 }
  0x15   :  { %149 = vmatpush3.bf16.msra.mxu0 %v64_v33 }
  0x16   :  { %150 = vmatprep.subr.bf16.mxu0 %v71_v34 }
  0x19   :  { %151 = vmatpush3.bf16.msra.mxu0 %v63_v39 }
  0x1a   :  { %152 = vmatprep.subr.bf16.mxu0 %v70_v40 }
  0x1d   :  { %153 = vmatpush3.bf16.msra.mxu0 %v62_v45 }
  0x1e   :  { %154 = vmatprep.subr.bf16.mxu0 %v69_v46 }
  0x21   :  { %155 = vmatpush3.bf16.msra.mxu0 %v61_v49 }
  0x24   :  { %110 = vmatmul.mubr.bf16.vlgmr.msra.gmra.mxu0 %v27_v51 }
  0xe4   :  { %v156_v53 = vpop.f32.mrf.mxu0 }
  0xe6   :  { %v157_v55 = vpop.f32.mrf.mxu0 }
  0xe7   :  { %v158_v56 = vadd.f32 %v157_v55, %v156_v53 }
  0xe8   :  { %v159_v57 = vpop.f32.mrf.mxu0 }
  0xe9   :  { %v117_v58 = vadd.f32 %v158_v56, %v26_v54 }
  0xea   :  { %v160_v59 = vpop.f32.mrf.mxu0 }
  0xeb   :  { %119 = vst.msk [vmem:[#allocation2] sm:$0xff] %vm22_vm0, %v117_v58 }
  0xf2   :  { %v123_v61 = vld [vmem:[#allocation2] sm:$0xff] }
  0xf3   :  { %v131_v63 = vadd.f32 %v139_v60, %v123_v61 }
  0xf5   :  { %v133_v0 = vadd.f32 %v132_v62, %v131_v63 }
  0xf7   :  { %134 = vst.msk [vmem:[%s307_s4] sm:$0xff] %vm22_vm0, %v133_v0 }

// kernel: mae_forward.36
= control target key start
LH: loop header
LB: loop body
LE: loop exit
PB: predicated region body
PF: predicated region fallthrough
CT: control target
= control target key end

     0   :  { %vm28_vm0 = vcmask 523264   ;;  %v161_v7 = vmov 0.0   ;;  %vm162_vm1 = vmmov 0   ;;  %vm25_vm2 = vcmask 261120   ;;  %s238_s0 = inlined_call_operand.vmem [shape: f32[8,64], index: 0, kind: input, shape index: {}]   ;;  %s239_s1 = inlined_call_operand.vmem [shape: f32[64,32], index: 1, kind: input, shape index: {}]   ;;  %s240_s3 = inlined_call_operand.vmem [shape: f32[1,64], index: 3, kind: input, shape index: {}]   ;;  %s241_s4 = inlined_call_operand.vmem [shape: f32[1,64], index: 4, kind: input, shape index: {}]   ;;  %s242_s2 = inlined_call_operand.vmem [shape: f32[1,32], index: 2, kind: input, shape index: {}]   ;;  %s243_s5 = inlined_call_operand.vmem [shape: f32[8,32], index: 5, kind: output, shape index: {}]  }
   0x1   :  { %v27_v0 = vld [vmem:[%s238_s0] sm:$0xff]  ;;  %145 = vmatprep.subr.bf16.mxu0 %v161_v7  ;;  %v67_v8 = vld [vmem:[%s239_s1 + $0x30] sm:$0xff]  ;;  %v68_v9 = vld [vmem:[%s239_s1 + $0x38] sm:$0xff]  ;;  %153 = vmatprep.mubr.msk.bf16.mxu0 %vm162_vm1, %v161_v7  ;;  %26 = vst.msk [vmem:[#allocation2] sm:$0xff] %vm25_vm2, %v161_v7 }
   0x2   :  { %v29_v1 = vsel %vm28_vm0, %v27_v0, 0.0  ;;  %v65_v10 = vld [vmem:[%s239_s1 + $0x20] sm:$0xff]  ;;  %v72_v11 = vpack.c.bf16 %v68_v9, %v67_v8  ;;  %v66_v12 = vld [vmem:[%s239_s1 + $0x28] sm:$0xff]  ;;  %v63_v14 = vld [vmem:[%s239_s1 + $0x10] sm:$0xff] }
   0x3   :  { %30 = vadd.xlane.f32.xlu0 %v29_v1  ;;  %v71_v13 = vpack.c.bf16 %v66_v12, %v65_v10  ;;  %v64_v15 = vld [vmem:[%s239_s1 + $0x18] sm:$0xff]  ;;  %v61_v17 = vld [vmem:[%s239_s1] sm:$0xff]  ;;  %v62_v18 = vld [vmem:[%s239_s1 + $0x8] sm:$0xff] }
   0x4   :  { %146 = vmatpush3.bf16.msra.mxu0 %v72_v11  ;;  %v70_v16 = vpack.c.bf16 %v64_v15, %v63_v14  ;;  %v69_v19 = vpack.c.bf16 %v62_v18, %v61_v17  ;;  %v136_v24 = vld [vmem:[%s240_s3] ss:$0 sm:$0xff] }
   0x5   :  { %147 = vmatprep.subr.bf16.mxu0 %v161_v7  ;;  %v137_v26 = vld [vmem:[%s241_s4] ss:$0 sm:$0xff] }
   0x6   :  { %v139_v36 = vld [vmem:[%s242_s2] ss:$0 sm:$0xff] }
   0x8   :  { %148 = vmatpush3.bf16.msra.mxu0 %v71_v13  ;;  %v59_v30 = vld [vmem:[#allocation2] sm:$0xff] }
   0x9   :  { %149 = vmatprep.subr.bf16.mxu0 %v161_v7 }
   0xc   :  { %150 = vmatpush3.bf16.msra.mxu0 %v70_v16 }
   0xd   :  { %151 = vmatprep.subr.bf16.mxu0 %v161_v7 }
  0x10   :  { %152 = vmatpush3.bf16.msra.mxu0 %v69_v19 }
  0x8c   :  { %v31_v2 = vpop.xlane.xlu0 %30 }
  0x8d   :  { %v33_v3 = vmul.f32 0.015625, %v31_v2 }
  0x8f   :  { %v34_v4 = vsub.f32 %v27_v0, %v33_v3 }
  0x91   :  { %v35_v5 = vmul.f32 %v34_v4, %v34_v4 }
  0x93   :  { %v36_v6 = vsel %vm28_vm0, %v35_v5, 0.0 }
  0x94   :  { %37 = vadd.xlane.f32.xlu0 %v36_v6 }
 0x11d   :  { %v38_v20 = vpop.xlane.xlu0 %37 }
 0x11e   :  { %v39_v21 = vmul.f32 0.015625, %v38_v20 }
 0x120   :  { %v40_v22 = vadd.f32 1e-05, %v39_v21 }
 0x122   :  { %159 = vrsqrt.f32 %v40_v22 }
 0x12f   :  { %v160_v23 = vpop.eup %159 }
 0x130   :  { %v42_v25 = vmul.f32 %v160_v23, %v34_v4 }
 0x132   :  { %v50_v27 = vmul.f32 %v136_v24, %v42_v25 }
 0x134   :  { %v58_v28 = vadd.f32 %v137_v26, %v50_v27 }
 0x136   :  { %v60_v29 = vpack.c.bf16 %v58_v28, %v58_v28 }
 0x138   :  { %154 = vmatmul.mubr.msk.bf16.vlgmr.msra.gmra.mxu0 %vm28_vm0, %v60_v29 }
 0x1f8   :  { %v110_v31 = vpop.f32.mrf.mxu0 }
 0x1f9   :  { %v116_v32 = vadd.f32 %v110_v31, %v59_v30 }
 0x1fa   :  { %v155_v33 = vpop.f32.mrf.mxu0 }
 0x1fb   :  { %118 = vst.msk [vmem:[#allocation2] sm:$0xff] %vm25_vm2, %v116_v32 }
 0x1fc   :  { %v113_v34 = vpop.f32.mrf.mxu0 }
 0x1fe   :  { %v156_v35 = vpop.f32.mrf.mxu0 }
 0x202   :  { %v122_v37 = vld [vmem:[#allocation2] sm:$0xff] }
 0x203   :  { %v130_v38 = vadd.f32 %v139_v36, %v122_v37 }
 0x205   :  { %131 = vst.msk [vmem:[%s243_s5] sm:$0xff] %vm25_vm2, %v130_v38 }

// kernel: mae_forward.38
= control target key start
LH: loop header
LB: loop body
LE: loop exit
PB: predicated region body
PF: predicated region fallthrough
CT: control target
= control target key end

     0   :  { %vm34_vm0 = vcmask 261120   ;;  %vm25_vm1 = vcmask 785408   ;;  %v238_v34 = vmov 0.0   ;;  %s336_s0 = inlined_call_operand.vmem [shape: f32[32,32], index: 0, kind: input, shape index: {}]   ;;  %s337_s1 = inlined_call_operand.vmem [shape: f32[32,96], index: 1, kind: input, shape index: {}]   ;;  %s338_s3 = inlined_call_operand.vmem [shape: f32[1,32], index: 3, kind: input, shape index: {}]   ;;  %s339_s4 = inlined_call_operand.vmem [shape: f32[1,32], index: 4, kind: input, shape index: {}]   ;;  %s340_s2 = inlined_call_operand.vmem [shape: f32[1,96], index: 2, kind: input, shape index: {}]   ;;  %s341_s5 = inlined_call_operand.vmem [shape: f32[32,96], index: 5, kind: output, shape index: {}]  }
   0x1   :  { %v30_v0 = vld [vmem:[%s336_s0] sm:$0xff]  ;;  %v32_v1 = vld [vmem:[%s336_s0 + $0x10] sm:$0xff]  ;;  %v31_v2 = vld [vmem:[%s336_s0 + $0x8] sm:$0xff]  ;;  %28 = vst.msk [vmem:[#allocation2 + $0x10] sm:$0xff] %vm25_vm1, %v238_v34 }
   0x2   :  { %v35_v3 = vsel %vm34_vm0, %v30_v0, 0.0  ;;  %v41_v4 = vsel %vm34_vm0, %v32_v1, 0.0  ;;  %v33_v5 = vld [vmem:[%s336_s0 + $0x18] sm:$0xff]  ;;  %v38_v6 = vsel %vm34_vm0, %v31_v2, 0.0  ;;  %v118_v28 = vld [vmem:[%s337_s1 + $0x10] sm:$0xff]  ;;  %v116_v30 = vld [vmem:[%s337_s1] sm:$0xff] }
   0x3   :  { %36 = vadd.xlane.f32.xlu0 %v35_v3  ;;  %42 = vadd.xlane.f32.xlu1 %v41_v4  ;;  %v44_v7 = vsel %vm34_vm0, %v33_v5, 0.0  ;;  %v119_v29 = vld [vmem:[%s337_s1 + $0x18] sm:$0xff]  ;;  %v117_v32 = vld [vmem:[%s337_s1 + $0x8] sm:$0xff]  ;;  %26 = vst.msk [vmem:[#allocation2] sm:$0xff] %vm25_vm1, %v238_v34  ;;  %27 = vst.msk [vmem:[#allocation2 + $0x8] sm:$0xff] %vm25_vm1, %v238_v34 }
   0x4   :  { %v121_v31 = vpack.c.bf16 %v119_v29, %v118_v28  ;;  %v120_v33 = vpack.c.bf16 %v117_v32, %v116_v30  ;;  %29 = vst.msk [vmem:[#allocation2 + $0x18] sm:$0xff] %vm25_vm1, %v238_v34  ;;  %v212_v49 = vld [vmem:[%s338_s3] ss:$0 sm:$0xff] }
   0x5   :  { %v213_v54 = vld [vmem:[%s339_s4] ss:$0 sm:$0xff] }
   0x6   :  { %221 = vmatprep.subr.bf16.mxu0 %v121_v31 }
   0x7   :  { %39 = vadd.xlane.f32.xlu0 %v38_v6  ;;  %45 = vadd.xlane.f32.xlu1 %v44_v7 }
   0x8   :  { %222 = vmatpush3.bf16.msra.mxu0 %v121_v31  ;;  %v112_v3 = vld [vmem:[#allocation2 + $0x10] sm:$0xff] }
   0x9   :  { %223 = vmatprep.subr.bf16.mxu0 %v120_v33 }
   0xc   :  { %224 = vmatpush3.bf16.msra.mxu0 %v120_v33 }
  0x8c   :  { %v37_v8 = vpop.xlane.xlu0 %36  ;;  %v43_v9 = vpop.xlane.xlu1 %42 }
  0x8d   :  { %v48_v10 = vmul.f32 0.03125, %v37_v8  ;;  %v50_v11 = vmul.f32 0.03125, %v43_v9  ;;  %v113_v8 = vld [vmem:[#allocation2 + $0x18] sm:$0xff] }
  0x8f   :  { %v52_v12 = vsub.f32 %v30_v0, %v48_v10  ;;  %v54_v13 = vsub.f32 %v32_v1, %v50_v11  ;;  %v111_v11 = vld [vmem:[#allocation2 + $0x8] sm:$0xff] }
  0x90   :  { %v40_v14 = vpop.xlane.xlu0 %39  ;;  %v46_v15 = vpop.xlane.xlu1 %45 }
  0x91   :  { %v49_v16 = vmul.f32 0.03125, %v40_v14  ;;  %v51_v17 = vmul.f32 0.03125, %v46_v15  ;;  %v56_v18 = vmul.f32 %v52_v12, %v52_v12  ;;  %v58_v19 = vmul.f32 %v54_v13, %v54_v13  ;;  %v216_v15 = vld [vmem:[%s340_s2] ss:$0 sm:$0xff] }
  0x93   :  { %v53_v20 = vsub.f32 %v31_v2, %v49_v16  ;;  %v55_v21 = vsub.f32 %v33_v5, %v51_v17  ;;  %v60_v22 = vsel %vm34_vm0, %v56_v18, 0.0  ;;  %v66_v23 = vsel %vm34_vm0, %v58_v19, 0.0  ;;  %v110_v5 = vld [vmem:[#allocation2] sm:$0xff] }
  0x94   :  { %61 = vadd.xlane.f32.xlu0 %v60_v22 }
  0x95   :  { %v57_v24 = vmul.f32 %v53_v20, %v53_v20  ;;  %v59_v25 = vmul.f32 %v55_v21, %v55_v21 }
  0x97   :  { %v63_v26 = vsel %vm34_vm0, %v57_v24, 0.0  ;;  %v69_v27 = vsel %vm34_vm0, %v59_v25, 0.0 }
  0x98   :  { %67 = vadd.xlane.f32.xlu0 %v66_v23  ;;  %64 = vadd.xlane.f32.xlu1 %v63_v26 }
  0x9c   :  { %70 = vadd.xlane.f32.xlu1 %v69_v27 }
 0x11d   :  { %v62_v35 = vpop.xlane.xlu0 %61 }
 0x11e   :  { %v72_v36 = vmul.f32 0.03125, %v62_v35 }
 0x120   :  { %v76_v37 = vadd.f32 1e-05, %v72_v36 }
 0x121   :  { %v65_v38 = vpop.xlane.xlu1 %64  ;;  %v68_v39 = vpop.xlane.xlu0 %67 }
 0x122   :  { %230 = vrsqrt.f32 %v76_v37  ;;  %v73_v40 = vmul.f32 0.03125, %v65_v38  ;;  %v74_v41 = vmul.f32 0.03125, %v68_v39 }
 0x124   :  { %v77_v42 = vadd.f32 1e-05, %v73_v40  ;;  %v78_v43 = vadd.f32 1e-05, %v74_v41 }
 0x125   :  { %v71_v44 = vpop.xlane.xlu1 %70 }
 0x126   :  { %232 = vrsqrt.f32 %v77_v42  ;;  %v75_v45 = vmul.f32 0.03125, %v71_v44 }
 0x127   :  { %234 = vrsqrt.f32 %v78_v43 }
 0x128   :  { %v79_v46 = vadd.f32 1e-05, %v75_v45 }
 0x12a   :  { %236 = vrsqrt.f32 %v79_v46 }
 0x12f   :  { %v231_v47 = vpop.eup %230 }
 0x130   :  { %v84_v48 = vmul.f32 %v231_v47, %v52_v12 }
 0x132   :  { %v95_v53 = vmul.f32 %v212_v49, %v84_v48 }
 0x133   :  { %v233_v50 = vpop.eup %232 }
 0x134   :  { %v235_v51 = vpop.eup %234  ;;  %v85_v52 = vmul.f32 %v233_v50, %v53_v20  ;;  %v106_v58 = vadd.f32 %v213_v54, %v95_v53 }
 0x135   :  { %v86_v55 = vmul.f32 %v235_v51, %v54_v13 }
 0x136   :  { %v96_v56 = vmul.f32 %v212_v49, %v85_v52 }
 0x137   :  { %v237_v57 = vpop.eup %236  ;;  %v97_v61 = vmul.f32 %v212_v49, %v86_v55 }
 0x138   :  { %v107_v59 = vadd.f32 %v213_v54, %v96_v56  ;;  %v87_v60 = vmul.f32 %v237_v57, %v55_v21 }
 0x139   :  { %v108_v0 = vadd.f32 %v213_v54, %v97_v61 }
 0x13a   :  { %v114_v62 = vpack.c.bf16 %v107_v59, %v106_v58  ;;  %v98_v63 = vmul.f32 %v212_v49, %v87_v60 }
 0x13c   :  { %225 = vmatprep.mubr.msk.bf16.mxu0 %vm34_vm0, %v114_v62  ;;  %v109_v1 = vadd.f32 %v213_v54, %v98_v63 }
 0x13e   :  { %v115_v2 = vpack.c.bf16 %v109_v1, %v108_v0 }
 0x140   :  { %226 = vmatmul.mubr.msk.bf16.vlgmr.msra.gmra.mxu0 %vm34_vm0, %v115_v2 }
 0x200   :  { %v227_v4 = vpop.f32.mrf.mxu0 }
 0x201   :  { %v179_v6 = vadd.f32 %v227_v4, %v112_v3 }
 0x202   :  { %v162_v7 = vpop.f32.mrf.mxu0 }
 0x203   :  { %184 = vst.msk [vmem:[#allocation2 + $0x10] sm:$0xff] %vm25_vm1, %v179_v6  ;;  %v177_v9 = vadd.f32 %v162_v7, %v110_v5 }
 0x204   :  { %v228_v10 = vpop.f32.mrf.mxu0 }
 0x205   :  { %182 = vst.msk [vmem:[#allocation2] sm:$0xff] %vm25_vm1, %v177_v9  ;;  %v180_v12 = vadd.f32 %v228_v10, %v113_v8 }
 0x206   :  { %v165_v13 = vpop.f32.mrf.mxu0 }
 0x207   :  { %185 = vst.msk [vmem:[#allocation2 + $0x18] sm:$0xff] %vm25_vm1, %v180_v12  ;;  %v178_v14 = vadd.f32 %v165_v13, %v111_v11 }
 0x209   :  { %183 = vst.msk [vmem:[#allocation2 + $0x8] sm:$0xff] %vm25_vm1, %v178_v14 }
 0x20a   :  { %v191_v16 = vld [vmem:[#allocation2 + $0x10] sm:$0xff] }
 0x20b   :  { %v202_v17 = vadd.f32 %v216_v15, %v191_v16 }
 0x20c   :  { %v189_v18 = vld [vmem:[#allocation2] sm:$0xff] }
 0x20d   :  { %206 = vst.msk [vmem:[%s341_s5 + $0x10] sm:$0xff] %vm25_vm1, %v202_v17  ;;  %v200_v19 = vadd.f32 %v216_v15, %v189_v18 }
 0x20e   :  { %v192_v20 = vld [vmem:[#allocation2 + $0x18] sm:$0xff] }
 0x20f   :  { %204 = vst.msk [vmem:[%s341_s5] sm:$0xff] %vm25_vm1, %v200_v19  ;;  %v203_v21 = vadd.f32 %v216_v15, %v192_v20 }
 0x210   :  { %v190_v22 = vld [vmem:[#allocation2 + $0x8] sm:$0xff] }
 0x211   :  { %207 = vst.msk [vmem:[%s341_s5 + $0x18] sm:$0xff] %vm25_vm1, %v203_v21  ;;  %v201_v23 = vadd.f32 %v216_v15, %v190_v22 }
 0x213   :  { %205 = vst.msk [vmem:[%s341_s5 + $0x8] sm:$0xff] %vm25_vm1, %v201_v23 }

// kernel: mae_forward.40
= control target key start
LH: loop header
LB: loop body
LE: loop exit
PB: predicated region body
PF: predicated region fallthrough
CT: control target
= control target key end

     0   :  { %vm22_vm0 = vcmask 261120   ;;  %v157_v3 = vmov 0.0   ;;  %s248_s1 = inlined_call_operand.vmem [shape: f32[32,32], index: 1, kind: input, shape index: {}]   ;;  %s249_s0 = inlined_call_operand.vmem [shape: f32[32,32], index: 0, kind: input, shape index: {}]   ;;  %s250_s2 = inlined_call_operand.vmem [shape: f32[1,32], index: 2, kind: input, shape index: {}]   ;;  %s251_s3 = inlined_call_operand.vmem [shape: f32[32,32], index: 3, kind: input, shape index: {}]   ;;  %s252_s4 = inlined_call_operand.vmem [shape: f32[32,32], index: 4, kind: output, shape index: {}]  }
   0x1   :  { %v39_v0 = vld [vmem:[%s248_s1 + $0x10] sm:$0xff]  ;;  %v40_v1 = vld [vmem:[%s248_s1 + $0x18] sm:$0xff]  ;;  %v37_v2 = vld [vmem:[%s248_s1] sm:$0xff]  ;;  %25 = vst.msk [vmem:[#allocation2 + $0x10] sm:$0xff] %vm22_vm0, %v157_v3 }
   0x2   :  { %23 = vst.msk [vmem:[#allocation2] sm:$0xff] %vm22_vm0, %v157_v3  ;;  %24 = vst.msk [vmem:[#allocation2 + $0x8] sm:$0xff] %vm22_vm0, %v157_v3  ;;  %v42_v4 = vpack.c.bf16 %v40_v1, %v39_v0  ;;  %v38_v5 = vld [vmem:[%s248_s1 + $0x8] sm:$0xff]  ;;  %v27_v6 = vld [vmem:[%s249_s0] sm:$0xff] }
   0x3   :  { %26 = vst.msk [vmem:[#allocation2 + $0x18] sm:$0xff] %vm22_vm0, %v157_v3  ;;  %v28_v7 = vld [vmem:[%s249_s0 + $0x8] sm:$0xff]  ;;  %v41_v8 = vpack.c.bf16 %v38_v5, %v37_v2  ;;  %v29_v10 = vld [vmem:[%s249_s0 + $0x10] sm:$0xff]  ;;  %v30_v11 = vld [vmem:[%s249_s0 + $0x18] sm:$0xff] }
   0x4   :  { %v35_v9 = vpack.c.bf16 %v28_v7, %v27_v6  ;;  %148 = vmatprep.subr.bf16.mxu0 %v42_v4  ;;  %v36_v12 = vpack.c.bf16 %v30_v11, %v29_v10  ;;  %v143_v25 = vld [vmem:[%s250_s2] ss:$0 sm:$0xff]  ;;  %v127_v27 = vld [vmem:[%s251_s3 + $0x10] sm:$0xff]  ;;  %v128_v34 = vld [vmem:[%s251_s3 + $0x18] sm:$0xff] }
   0x5   :  { %149 = vmatpush3.bf16.msra.mxu0 %v42_v4  ;;  %v125_v30 = vld [vmem:[%s251_s3] sm:$0xff]  ;;  %v126_v38 = vld [vmem:[%s251_s3 + $0x8] sm:$0xff] }
   0x6   :  { %152 = vmatprep.mubr.msk.bf16.mxu0 %vm22_vm0, %v35_v9  ;;  %150 = vmatprep.subr.bf16.mxu0 %v41_v8 }
   0x8   :  { %v33_v13 = vld [vmem:[#allocation2 + $0x10] sm:$0xff] }
   0x9   :  { %151 = vmatpush3.bf16.msra.mxu0 %v41_v8  ;;  %v31_v15 = vld [vmem:[#allocation2] sm:$0xff]  ;;  %v32_v21 = vld [vmem:[#allocation2 + $0x8] sm:$0xff] }
   0xa   :  { %v34_v18 = vld [vmem:[#allocation2 + $0x18] sm:$0xff] }
   0xc   :  { %153 = vmatmul.mubr.msk.bf16.vlgmr.msra.gmra.mxu0 %vm22_vm0, %v36_v12 }
  0xcc   :  { %v154_v14 = vpop.f32.mrf.mxu0 }
  0xcd   :  { %v101_v16 = vadd.f32 %v154_v14, %v33_v13 }
  0xce   :  { %v84_v17 = vpop.f32.mrf.mxu0 }
  0xcf   :  { %105 = vst.msk [vmem:[#allocation2 + $0x10] sm:$0xff] %vm22_vm0, %v101_v16  ;;  %v99_v19 = vadd.f32 %v84_v17, %v31_v15 }
  0xd0   :  { %v155_v20 = vpop.f32.mrf.mxu0 }
  0xd1   :  { %103 = vst.msk [vmem:[#allocation2] sm:$0xff] %vm22_vm0, %v99_v19  ;;  %v102_v22 = vadd.f32 %v155_v20, %v34_v18 }
  0xd2   :  { %v87_v23 = vpop.f32.mrf.mxu0 }
  0xd3   :  { %106 = vst.msk [vmem:[#allocation2 + $0x18] sm:$0xff] %vm22_vm0, %v102_v22  ;;  %v100_v24 = vadd.f32 %v87_v23, %v32_v21 }
  0xd5   :  { %104 = vst.msk [vmem:[#allocation2 + $0x8] sm:$0xff] %vm22_vm0, %v100_v24 }
  0xd6   :  { %v112_v26 = vld [vmem:[#allocation2 + $0x10] sm:$0xff] }
  0xd7   :  { %v123_v28 = vadd.f32 %v143_v25, %v112_v26 }
  0xd8   :  { %v110_v29 = vld [vmem:[#allocation2] sm:$0xff] }
  0xd9   :  { %v131_v31 = vadd.f32 %v127_v27, %v123_v28  ;;  %v121_v32 = vadd.f32 %v143_v25, %v110_v29 }
  0xda   :  { %v113_v33 = vld [vmem:[#allocation2 + $0x18] sm:$0xff] }
  0xdb   :  { %135 = vst.msk [vmem:[%s252_s4 + $0x10] sm:$0xff] %vm22_vm0, %v131_v31  ;;  %v129_v35 = vadd.f32 %v125_v30, %v121_v32  ;;  %v124_v36 = vadd.f32 %v143_v25, %v113_v33 }
  0xdc   :  { %v111_v37 = vld [vmem:[#allocation2 + $0x8] sm:$0xff] }
  0xdd   :  { %133 = vst.msk [vmem:[%s252_s4] sm:$0xff] %vm22_vm0, %v129_v35  ;;  %v132_v39 = vadd.f32 %v128_v34, %v124_v36  ;;  %v122_v40 = vadd.f32 %v143_v25, %v111_v37 }
  0xdf   :  { %136 = vst.msk [vmem:[%s252_s4 + $0x18] sm:$0xff] %vm22_vm0, %v132_v39  ;;  %v130_v41 = vadd.f32 %v126_v38, %v122_v40 }
  0xe1   :  { %134 = vst.msk [vmem:[%s252_s4 + $0x8] sm:$0xff] %vm22_vm0, %v130_v41 }

// kernel: mae_forward.39
= control target key start
LH: loop header
LB: loop body
LE: loop exit
PB: predicated region body
PF: predicated region fallthrough
CT: control target
= control target key end

     0   :  { %s881_s12 = smov 0   ;;  %s883_s13 = smov 0   ;;  %s965_s0 = inlined_call_operand.vmem [shape: f32[2,4,16,8], index: 0, kind: input, shape index: {}]   ;;  %s966_s1 = inlined_call_operand.vmem [shape: f32[2,4,16,8], index: 1, kind: input, shape index: {}]   ;;  %s967_s2 = inlined_call_operand.vmem [shape: f32[2,4,16,8], index: 2, kind: input, shape index: {}]   ;;  %s968_s3 = inlined_call_operand.vmem [shape: f32[2,4,16,8], index: 3, kind: output, shape index: {}]  }
   0x1   :  { %s885_s14 = smov 0   ;;  %s887_s15 = smov 0  }
   0x2   :  { %s889_s16 = smov 0  }
   0x3 LB: > { %s35_s17 = sadd.s32 1, %s847_s14  ;;  %s39_s18 = sadd.s32 1, %s851_s15  ;;  %s855_s16 = sphi %s889_s16, %s13_s16   ;;  %s851_s15 = sphi %s887_s15, %s972_s15   ;;  %s847_s14 = sphi %s885_s14, %s971_s14   ;;  %s843_s13 = sphi %s883_s13, %s970_s13   ;;  %s839_s12 = sphi %s881_s12, %s969_s12  }
   0x4   : > { %p37_p0 = scmp.ge.s32.totalorder %s35_s17, 4  ;;  %p726_p1 = scmp.ge.s32.totalorder %s855_s16, 1 }
   0x5   : > { %p226_p2 = scmp.lt.s32.totalorder %s855_s16, 9 }
   0x6   : > { %s974_s17 = smov (%p37_p0, %s35_s17), 0  ;;  %s976_s18 = smov (!%p37_p0, %s39_s18), %s851_s15 }
   0x7   : > { %p227_p3 = pnand %p726_p1, %p226_p2  ;;  %p41_p4 = scmp.ge.s32.totalorder %s976_s18, 2 }
   0x8   : > { %p293_p5 = scmp.lt.s32.totalorder (!%p227_p3), %s843_s13, 1  ;;  %p295_p6 = scmp.lt.s32.totalorder (!%p227_p3), %s839_s12, 3 }
   0x9   : > { %s978_s18 = smov (%p41_p4, %s976_s18), 0  ;;  %230 = sbr.rel (%p227_p3) target bundleno = 802 (0x322), region = 32 }
   0xe   : > { %vm358_vm0 = vcmask 64512   ;;  %v857_v0 = vmov 0.0   ;;  %vm858_vm1 = vmmov 0   ;;  %s980_s13 = smov (!%p293_p5, %s843_s13), 1  ;;  %s982_s12 = smov (!%p295_p6, %s839_s12), 3  ;;  %vm353_vm2 = vcmask 7168  }
   0xf   : > { %747 = vmatprep.subr.bf16.mxu0 %v857_v0  ;;  %359 = vst.msk [vmem:[#allocation4] sm:$0xff] %vm358_vm0, %v857_v0  ;;  %360 = vst.msk [vmem:[#allocation4 + $0x8] sm:$0xff] %vm358_vm0, %v857_v0  ;;  %749 = vmatprep.mubr.msk.bf16.mxu0 %vm858_vm1, %v857_v0  ;;  %s728_s19 = sshll.u32 %s980_s13, 3  ;;  %s727_s20 = sshll.u32 %s982_s12, 1  ;;  %v859_v8 = vmov -inf   ;;  %vm422_vm3 = vcmask 130048  }
  0x10   : > { %753 = vmatprep.subr.bf16.mxu1 %v857_v0  ;;  %755 = vmatprep.mubr.msk.bf16.mxu1 %vm858_vm1, %v857_v0  ;;  %s302_s21 = sadd.s32 %s728_s19, %s727_s20  ;;  %354 = vst.msk [vmem:[#allocation2] sm:$0xff] %vm353_vm2, %v859_v8  ;;  %355 = vst.msk [vmem:[#allocation2 + $0x8] sm:$0xff] %vm353_vm2, %v859_v8  ;;  %v860_v17 = vmov 0  }
  0x11   : > { %s913_s22 = sshll.u32 %s302_s21, 3  ;;  %356 = vst.msk [vmem:[#allocation3] sm:$0xff] %vm353_vm2, %v857_v0  ;;  %357 = vst.msk [vmem:[#allocation3 + $0x8] sm:$0xff] %vm353_vm2, %v857_v0  ;;  %803 = vset.pattern.permute.xlu1 %v860_v17  ;;  %804 = vset.pattern.permute.xlu0 %v860_v17 }
  0x12   : > { %s318_s25 = scalar_lea.vmem %s966_s1, %s913_s22  ;;  %s304_s28 = scalar_lea.vmem %s965_s0, %s913_s22 }
  0x13   : > { %v364_v1 = vld [vmem:[%s318_s25] sm:$0xff]  ;;  %v365_v2 = vld [vmem:[%s318_s25 + $0x8] sm:$0xff]  ;;  %s332_s4 = scalar_lea.vmem %s967_s2, %s913_s22  ;;  %s346_s7 = scalar_lea.vmem %s968_s3, %s913_s22 }
  0x14   : > { %v366_v3 = vpack.c.bf16 %v365_v2, %v364_v1  ;;  %v361_v5 = vld [vmem:[%s304_s28] sm:$0xff]  ;;  %v362_v6 = vld [vmem:[%s304_s28 + $0x8] sm:$0xff] }
  0x15   : > { %v363_v7 = vpack.c.bf16 %v362_v6, %v361_v5  ;;  %v367_v26 = vld [vmem:[%s332_s4] sm:$0xff]  ;;  %v368_v27 = vld [vmem:[%s332_s4 + $0x8] sm:$0xff] }
  0x16   : > { %v375_v4 = vsel %vm358_vm0, %v366_v3, 0  ;;  %v369_v28 = vpack.c.bf16 %v368_v27, %v367_v26  ;;  %v468_v56 = vld [vmem:[#allocation4] sm:$0xff]  ;;  %v469_v59 = vld [vmem:[#allocation4 + $0x8] sm:$0xff] }
  0x17   : > { %748 = vmatpush3.bf16.xpose.msra.mxu0 %v375_v4  ;;  %v420_v18 = vld [vmem:[#allocation2] sm:$0xff]  ;;  %v421_v21 = vld [vmem:[#allocation2 + $0x8] sm:$0xff] }
  0x18   : > { %754 = vmatpush3.bf16.msra.mxu1 %v369_v28  ;;  %v453_v44 = vld [vmem:[#allocation3] sm:$0xff]  ;;  %v454_v47 = vld [vmem:[#allocation3 + $0x8] sm:$0xff] }
  0x1e   : > { %750 = vmatmul.mubr.msk.bf16.vlgmr.msra.gmra.mxu0 %vm358_vm0, %v363_v7 }
  0xde   : > { %v411_v9 = vpop.f32.mrf.mxu0 }
  0xdf   : > { %v418_v10 = vmul.f32 0.35355338, %v411_v9 }
  0xe0   : > { %v751_v11 = vpop.f32.mrf.mxu0 }
  0xe1   : > { %v423_v12 = vsel %vm422_vm3, %v418_v10, -inf }
  0xe2   : > { %424 = vmax.xlane.f32.xlu0 %v423_v12  ;;  %v414_v13 = vpop.f32.mrf.mxu0 }
  0xe3   : > { %v419_v14 = vmul.f32 0.35355338, %v414_v13 }
  0xe4   : > { %v752_v15 = vpop.f32.mrf.mxu0 }
  0xe5   : > { %v426_v16 = vsel %vm422_vm3, %v419_v14, -inf }
  0xe6   : > { %427 = vmax.xlane.f32.xlu0 %v426_v16 }
 0x16b   : > { %v425_v19 = vpop.xlane.xlu0 %424 }
 0x16c   : > { %v429_v20 = vmax.f32 %v420_v18, %v425_v19 }
 0x16e   : > { %v431_v22 = vsub.f32 %v420_v18, %v429_v20  ;;  %531 = vst.msk [vmem:[#allocation2] sm:$0xff] %vm353_vm2, %v429_v20  ;;  %439 = vperm.xlu1 %803, %v429_v20  }
 0x16f   : > { %v428_v23 = vpop.xlane.xlu0 %427 }
 0x170   : > { %v430_v24 = vmax.f32 %v421_v21, %v428_v23  ;;  %v433_v41 = vmul.f32 1.442695, %v431_v22 }
 0x172   : > { %v432_v25 = vsub.f32 %v421_v21, %v430_v24  ;;  %532 = vst.msk [vmem:[#allocation2 + $0x8] sm:$0xff] %vm353_vm2, %v430_v24  ;;  %444 = vperm.xlu1 %803, %v430_v24  }
 0x174   : > { %v435_v38 = vmul.f32 1.442695, %v432_v25 }
 0x1e9   : > { %v440_v29 = vpop.permute.xlu1 %439 }
 0x1ea   : > { %v447_v30 = vsub.f32 %v418_v10, %v440_v29 }
 0x1ec   : > { %v449_v31 = vmul.f32 1.442695, %v447_v30 }
 0x1ed   : > { %v445_v32 = vpop.permute.xlu1 %444 }
 0x1ee   : > { %805 = vpow2.f32 %v449_v31  ;;  %v448_v33 = vsub.f32 %v419_v14, %v445_v32 }
 0x1f0   : > { %v451_v34 = vmul.f32 1.442695, %v448_v33 }
 0x1f2   : > { %807 = vpow2.f32 %v451_v34 }
 0x1f3   : > { %809 = vpow2.f32 %v435_v38 }
 0x1f4   : > { %811 = vpow2.f32 %v433_v41 }
 0x1fb   : > { %v806_v35 = vpop.eup %805 }
 0x1fc   : > { %v457_v36 = vsel %vm422_vm3, %v806_v35, 0.0 }
 0x1fd   : > { %458 = vadd.xlane.f32.xlu0 %v457_v36 }
 0x1ff   : > { %v808_v37 = vpop.eup %807 }
 0x200   : > { %v460_v39 = vsel %vm422_vm3, %v808_v37, 0.0  ;;  %v482_v40 = vpack.c.bf16 %v808_v37, %v806_v35  ;;  %v810_v42 = vpop.eup %809 }
 0x201   : > { %461 = vadd.xlane.f32.xlu1 %v460_v39  ;;  %v812_v43 = vpop.eup %811  ;;  %v456_v49 = vmul.f32 %v810_v42, %v454_v47 }
 0x202   : > { %756 = vmatmul.mubr.msk.bf16.vlgmr.msra.gmra.mxu1 %vm422_vm3, %v482_v40  ;;  %v455_v45 = vmul.f32 %v812_v43, %v453_v44 }
 0x212   : > { %477 = vperm.xlu1 %803, %v810_v42  }
 0x213   : > { %472 = vperm.xlu0 %804, %v812_v43  }
 0x286   : > { %v459_v46 = vpop.xlane.xlu0 %458 }
 0x287   : > { %v463_v48 = vadd.f32 %v459_v46, %v455_v45 }
 0x289   : > { %466 = vst.msk [vmem:[#allocation3] sm:$0xff] %vm353_vm2, %v463_v48 }
 0x28a   : > { %v462_v50 = vpop.xlane.xlu1 %461 }
 0x28b   : > { %v464_v51 = vadd.f32 %v462_v50, %v456_v49 }
 0x28d   : > { %467 = vst.msk [vmem:[#allocation3 + $0x8] sm:$0xff] %vm353_vm2, %v464_v51 }
 0x28e   : > { %v473_v57 = vpop.permute.xlu0 %472  ;;  %v478_v60 = vpop.permute.xlu1 %477 }
 0x28f   : > { %v480_v58 = vmul.f32 %v473_v57, %v468_v56  ;;  %v481_v0 = vmul.f32 %v478_v60, %v469_v59 }
 0x290   : > { %v538_v52 = vld [vmem:[#allocation3] sm:$0xff] }
 0x291   : > { %813 = vrcp.f32 %v538_v52 }
 0x294   : > { %v539_v53 = vld [vmem:[#allocation3 + $0x8] sm:$0xff] }
 0x295   : > { %815 = vrcp.f32 %v539_v53 }
 0x29e   : > { %v814_v54 = vpop.eup %813 }
 0x29f   : > { %544 = vperm.xlu0 %804, %v814_v54  }
 0x2a2   : > { %v816_v55 = vpop.eup %815 }
 0x2a3   : > { %549 = vperm.xlu0 %804, %v816_v55  }
 0x2c2   : > { %v520_v61 = vpop.f32.mrf.mxu1 }
 0x2c3   : > { %v527_v62 = vadd.f32 %v520_v61, %v480_v58 }
 0x2c4   : > { %v757_v63 = vpop.f32.mrf.mxu1 }
 0x2c5   : > { %529 = vst.msk [vmem:[#allocation4] sm:$0xff] %vm358_vm0, %v527_v62 }
 0x2c6   : > { %v523_v1 = vpop.f32.mrf.mxu1 }
 0x2c7   : > { %v528_v2 = vadd.f32 %v523_v1, %v481_v0 }
 0x2c8   : > { %v758_v3 = vpop.f32.mrf.mxu1 }
 0x2c9   : > { %530 = vst.msk [vmem:[#allocation4 + $0x8] sm:$0xff] %vm358_vm0, %v528_v2 }
 0x2cc   : > { %v536_v4 = vld [vmem:[#allocation4] sm:$0xff] }
 0x2d0   : > { %v537_v7 = vld [vmem:[#allocation4 + $0x8] sm:$0xff] }
 0x31a   : > { %v545_v5 = vpop.permute.xlu0 %544 }
 0x31b   : > { %v552_v6 = vmul.f32 %v545_v5, %v536_v4 }
 0x31d   : > { %554 = vst.msk [vmem:[%s346_s7] sm:$0xff] %vm358_vm0, %v552_v6 }
 0x31e   : > { %v550_v8 = vpop.permute.xlu0 %549 }
 0x31f   : > { %v553_v9 = vmul.f32 %v550_v8, %v537_v7 }
 0x321   : > { %555 = vst.msk [vmem:[%s346_s7 + $0x8] sm:$0xff] %vm358_vm0, %v553_v9 }
 0x322 PF: > { %s13_s16 = sadd.s32 1, %s855_s16   ;;  %s969_s12 = smov %s847_s14 }
 0x323   : > { %p10_p7 = scmp.ge.s32.totalorder %s13_s16, 10   ;;  %s970_s13 = smov %s851_s15 }
 0x324   : > { %s971_s14 = smov %s974_s17  ;;  %s972_s15 = smov %s978_s18 }
 0x325   :  { %12 = sbr.rel (!%p10_p7) target bundleno = 3 (0x3), region = 76 }

// kernel: mae_forward.41
= control target key start
LH: loop header
LB: loop body
LE: loop exit
PB: predicated region body
PF: predicated region fallthrough
CT: control target
= control target key end

     0   :  { %vm33_vm0 = vcmask 261120   ;;  %s348_s0 = inlined_call_operand.vmem [shape: f32[32,32], index: 0, kind: input, shape index: {}]   ;;  %s349_s1 = inlined_call_operand.vmem [shape: f32[32,128], index: 1, kind: input, shape index: {}]   ;;  %s350_s3 = inlined_call_operand.vmem [shape: f32[1,32], index: 3, kind: input, shape index: {}]   ;;  %s351_s4 = inlined_call_operand.vmem [shape: f32[1,32], index: 4, kind: input, shape index: {}]   ;;  %s352_s2 = inlined_call_operand.vmem [shape: f32[1,128], index: 2, kind: input, shape index: {}]   ;;  %s353_s5 = inlined_call_operand.vmem [shape: f32[32,128], index: 5, kind: output, shape index: {}]  }
   0x1   :  { %v29_v0 = vld [vmem:[%s348_s0] sm:$0xff]  ;;  %v31_v1 = vld [vmem:[%s348_s0 + $0x10] sm:$0xff]  ;;  %v30_v2 = vld [vmem:[%s348_s0 + $0x8] sm:$0xff] }
   0x2   :  { %v34_v3 = vsel %vm33_vm0, %v29_v0, 0.0  ;;  %v40_v4 = vsel %vm33_vm0, %v31_v1, 0.0  ;;  %v32_v5 = vld [vmem:[%s348_s0 + $0x18] sm:$0xff]  ;;  %v37_v6 = vsel %vm33_vm0, %v30_v2, 0.0  ;;  %v117_v28 = vld [vmem:[%s349_s1 + $0x10] sm:$0xff]  ;;  %v115_v30 = vld [vmem:[%s349_s1] sm:$0xff] }
   0x3   :  { %35 = vadd.xlane.f32.xlu0 %v34_v3  ;;  %41 = vadd.xlane.f32.xlu1 %v40_v4  ;;  %v43_v7 = vsel %vm33_vm0, %v32_v5, 0.0  ;;  %v118_v29 = vld [vmem:[%s349_s1 + $0x18] sm:$0xff]  ;;  %v116_v32 = vld [vmem:[%s349_s1 + $0x8] sm:$0xff]  ;;  %v230_v48 = vld [vmem:[%s350_s3] ss:$0 sm:$0xff] }
   0x4   :  { %v120_v31 = vpack.c.bf16 %v118_v29, %v117_v28  ;;  %v119_v33 = vpack.c.bf16 %v116_v32, %v115_v30  ;;  %v231_v53 = vld [vmem:[%s351_s4] ss:$0 sm:$0xff] }
   0x6   :  { %239 = vmatprep.subr.bf16.mxu0 %v120_v31 }
   0x7   :  { %38 = vadd.xlane.f32.xlu0 %v37_v6  ;;  %44 = vadd.xlane.f32.xlu1 %v43_v7 }
   0x8   :  { %240 = vmatpush3.bf16.msra.mxu0 %v120_v31 }
   0x9   :  { %241 = vmatprep.subr.bf16.mxu0 %v119_v33 }
   0xc   :  { %242 = vmatpush3.bf16.msra.mxu0 %v119_v33 }
  0x8c   :  { %v36_v8 = vpop.xlane.xlu0 %35  ;;  %v42_v9 = vpop.xlane.xlu1 %41 }
  0x8d   :  { %v47_v10 = vmul.f32 0.03125, %v36_v8  ;;  %v49_v11 = vmul.f32 0.03125, %v42_v9 }
  0x8f   :  { %v51_v12 = vsub.f32 %v29_v0, %v47_v10  ;;  %v53_v13 = vsub.f32 %v31_v1, %v49_v11 }
  0x90   :  { %v39_v14 = vpop.xlane.xlu0 %38  ;;  %v45_v15 = vpop.xlane.xlu1 %44 }
  0x91   :  { %v48_v16 = vmul.f32 0.03125, %v39_v14  ;;  %v50_v17 = vmul.f32 0.03125, %v45_v15  ;;  %v55_v18 = vmul.f32 %v51_v12, %v51_v12  ;;  %v57_v19 = vmul.f32 %v53_v13, %v53_v13 }
  0x93   :  { %v52_v20 = vsub.f32 %v30_v2, %v48_v16  ;;  %v54_v21 = vsub.f32 %v32_v5, %v50_v17  ;;  %v59_v22 = vsel %vm33_vm0, %v55_v18, 0.0  ;;  %v65_v23 = vsel %vm33_vm0, %v57_v19, 0.0  ;;  %v234_v2 = vld [vmem:[%s352_s2] ss:$0 sm:$0xff] }
  0x94   :  { %60 = vadd.xlane.f32.xlu0 %v59_v22 }
  0x95   :  { %v56_v24 = vmul.f32 %v52_v20, %v52_v20  ;;  %v58_v25 = vmul.f32 %v54_v21, %v54_v21 }
  0x97   :  { %v62_v26 = vsel %vm33_vm0, %v56_v24, 0.0  ;;  %v68_v27 = vsel %vm33_vm0, %v58_v25, 0.0 }
  0x98   :  { %66 = vadd.xlane.f32.xlu0 %v65_v23  ;;  %63 = vadd.xlane.f32.xlu1 %v62_v26 }
  0x9c   :  { %69 = vadd.xlane.f32.xlu1 %v68_v27 }
 0x11d   :  { %v61_v34 = vpop.xlane.xlu0 %60 }
 0x11e   :  { %v71_v35 = vmul.f32 0.03125, %v61_v34 }
 0x120   :  { %v75_v36 = vadd.f32 1e-05, %v71_v35 }
 0x121   :  { %v64_v37 = vpop.xlane.xlu1 %63  ;;  %v67_v38 = vpop.xlane.xlu0 %66 }
 0x122   :  { %247 = vrsqrt.f32 %v75_v36  ;;  %v72_v39 = vmul.f32 0.03125, %v64_v37  ;;  %v73_v40 = vmul.f32 0.03125, %v67_v38 }
 0x124   :  { %v76_v41 = vadd.f32 1e-05, %v72_v39  ;;  %v77_v42 = vadd.f32 1e-05, %v73_v40 }
 0x125   :  { %v70_v43 = vpop.xlane.xlu1 %69 }
 0x126   :  { %249 = vrsqrt.f32 %v76_v41  ;;  %v74_v44 = vmul.f32 0.03125, %v70_v43 }
 0x127   :  { %251 = vrsqrt.f32 %v77_v42 }
 0x128   :  { %v78_v45 = vadd.f32 1e-05, %v74_v44 }
 0x12a   :  { %253 = vrsqrt.f32 %v78_v45 }
 0x12f   :  { %v248_v46 = vpop.eup %247 }
 0x130   :  { %v83_v47 = vmul.f32 %v248_v46, %v51_v12 }
 0x132   :  { %v94_v52 = vmul.f32 %v230_v48, %v83_v47 }
 0x133   :  { %v250_v49 = vpop.eup %249 }
 0x134   :  { %v252_v50 = vpop.eup %251  ;;  %v84_v51 = vmul.f32 %v250_v49, %v52_v20  ;;  %v105_v57 = vadd.f32 %v231_v53, %v94_v52 }
 0x135   :  { %v85_v54 = vmul.f32 %v252_v50, %v53_v13 }
 0x136   :  { %v95_v55 = vmul.f32 %v230_v48, %v84_v51 }
 0x137   :  { %v254_v56 = vpop.eup %253  ;;  %v96_v60 = vmul.f32 %v230_v48, %v85_v54 }
 0x138   :  { %v106_v58 = vadd.f32 %v231_v53, %v95_v55  ;;  %v86_v59 = vmul.f32 %v254_v56, %v54_v21 }
 0x139   :  { %v107_v63 = vadd.f32 %v231_v53, %v96_v60 }
 0x13a   :  { %v113_v61 = vpack.c.bf16 %v106_v58, %v105_v57  ;;  %v97_v62 = vmul.f32 %v230_v48, %v86_v59 }
 0x13c   :  { %243 = vmatprep.mubr.msk.bf16.mxu0 %vm33_vm0, %v113_v61  ;;  %v108_v0 = vadd.f32 %v231_v53, %v97_v62 }
 0x13e   :  { %v114_v1 = vpack.c.bf16 %v108_v0, %v107_v63 }
 0x140   :  { %244 = vmatmul.mubr.msk.bf16.vlgmr.msra.gmra.mxu0 %vm33_vm0, %v114_v1 }
 0x200   :  { %v245_v3 = vpop.f32.mrf.mxu0 }
 0x201   :  { %v200_v4 = vadd.f32 %v245_v3, %v234_v2 }
 0x202   :  { %v161_v5 = vpop.f32.mrf.mxu0 }
 0x203   :  { %v208_v6 = vmul.f32 0.70710677, %v200_v4  ;;  %v198_v7 = vadd.f32 %v234_v2, %v161_v5  ;;  %v204_v16 = vmul.f32 0.5, %v200_v4 }
 0x204   :  { %v246_v8 = vpop.f32.mrf.mxu0 }
 0x205   :  { %255 = verf.f32 %v208_v6  ;;  %v206_v9 = vmul.f32 0.70710677, %v198_v7  ;;  %v201_v10 = vadd.f32 %v246_v8, %v234_v2  ;;  %v202_v20 = vmul.f32 0.5, %v198_v7 }
 0x206   :  { %v164_v11 = vpop.f32.mrf.mxu0 }
 0x207   :  { %257 = verf.f32 %v206_v9  ;;  %v209_v12 = vmul.f32 0.70710677, %v201_v10  ;;  %v199_v13 = vadd.f32 %v234_v2, %v164_v11  ;;  %v205_v24 = vmul.f32 0.5, %v201_v10 }
 0x209   :  { %259 = verf.f32 %v209_v12  ;;  %v207_v14 = vmul.f32 0.70710677, %v199_v13  ;;  %v203_v28 = vmul.f32 0.5, %v199_v13 }
 0x20b   :  { %261 = verf.f32 %v207_v14 }
 0x212   :  { %v256_v15 = vpop.eup %255 }
 0x213   :  { %v216_v17 = vadd.f32 1.0, %v256_v15 }
 0x214   :  { %v258_v18 = vpop.eup %257 }
 0x215   :  { %v220_v19 = vmul.f32 %v216_v17, %v204_v16  ;;  %v214_v21 = vadd.f32 1.0, %v258_v18 }
 0x216   :  { %v260_v22 = vpop.eup %259 }
 0x217   :  { %224 = vst [vmem:[%s353_s5 + $0x10] sm:$0xff] %v220_v19  ;;  %v218_v23 = vmul.f32 %v214_v21, %v202_v20  ;;  %v217_v25 = vadd.f32 1.0, %v260_v22 }
 0x218   :  { %v262_v26 = vpop.eup %261 }
 0x219   :  { %222 = vst [vmem:[%s353_s5] sm:$0xff] %v218_v23  ;;  %v221_v27 = vmul.f32 %v217_v25, %v205_v24  ;;  %v215_v29 = vadd.f32 1.0, %v262_v26 }
 0x21b   :  { %225 = vst [vmem:[%s353_s5 + $0x18] sm:$0xff] %v221_v27  ;;  %v219_v30 = vmul.f32 %v215_v29, %v203_v28 }
 0x21d   :  { %223 = vst [vmem:[%s353_s5 + $0x8] sm:$0xff] %v219_v30 }

// kernel: mae_forward.42
= control target key start
LH: loop header
LB: loop body
LE: loop exit
PB: predicated region body
PF: predicated region fallthrough
CT: control target
= control target key end

     0   :  { %vm22_vm0 = vcmask 261120   ;;  %v185_v3 = vmov 0.0   ;;  %s310_s1 = inlined_call_operand.vmem [shape: f32[128,32], index: 1, kind: input, shape index: {}]   ;;  %s311_s0 = inlined_call_operand.vmem [shape: f32[32,128], index: 0, kind: input, shape index: {}]   ;;  %s312_s2 = inlined_call_operand.vmem [shape: f32[1,32], index: 2, kind: input, shape index: {}]   ;;  %s313_s3 = inlined_call_operand.vmem [shape: f32[32,32], index: 3, kind: input, shape index: {}]   ;;  %s314_s4 = inlined_call_operand.vmem [shape: f32[32,32], index: 4, kind: output, shape index: {}]  }
   0x1   :  { %v51_v0 = vld [vmem:[%s310_s1 + $0x70] sm:$0xff]  ;;  %v52_v1 = vld [vmem:[%s310_s1 + $0x78] sm:$0xff]  ;;  %v49_v2 = vld [vmem:[%s310_s1 + $0x60] sm:$0xff]  ;;  %25 = vst.msk [vmem:[#allocation2 + $0x10] sm:$0xff] %vm22_vm0, %v185_v3 }
   0x2   :  { %23 = vst.msk [vmem:[#allocation2] sm:$0xff] %vm22_vm0, %v185_v3  ;;  %24 = vst.msk [vmem:[#allocation2 + $0x8] sm:$0xff] %vm22_vm0, %v185_v3  ;;  %v60_v4 = vpack.c.bf16 %v52_v1, %v51_v0  ;;  %v50_v5 = vld [vmem:[%s310_s1 + $0x68] sm:$0xff]  ;;  %v47_v7 = vld [vmem:[%s310_s1 + $0x50] sm:$0xff] }
   0x3   :  { %26 = vst.msk [vmem:[#allocation2 + $0x18] sm:$0xff] %vm22_vm0, %v185_v3  ;;  %v59_v6 = vpack.c.bf16 %v50_v5, %v49_v2  ;;  %v48_v8 = vld [vmem:[%s310_s1 + $0x58] sm:$0xff]  ;;  %v27_v10 = vld [vmem:[%s311_s0] sm:$0xff]  ;;  %v28_v11 = vld [vmem:[%s311_s0 + $0x8] sm:$0xff] }
   0x4   :  { %164 = vmatprep.subr.bf16.mxu0 %v60_v4  ;;  %v58_v9 = vpack.c.bf16 %v48_v8, %v47_v7  ;;  %v45_v12 = vld [vmem:[%s310_s1 + $0x40] sm:$0xff]  ;;  %v46_v13 = vld [vmem:[%s310_s1 + $0x48] sm:$0xff]  ;;  %v35_v14 = vpack.c.bf16 %v28_v11, %v27_v10  ;;  %v43_v16 = vld [vmem:[%s310_s1 + $0x30] sm:$0xff] }
   0x5   :  { %165 = vmatpush3.bf16.msra.mxu0 %v60_v4  ;;  %v57_v15 = vpack.c.bf16 %v46_v13, %v45_v12  ;;  %v44_v17 = vld [vmem:[%s310_s1 + $0x38] sm:$0xff]  ;;  %v41_v19 = vld [vmem:[%s310_s1 + $0x20] sm:$0xff]  ;;  %v42_v20 = vld [vmem:[%s310_s1 + $0x28] sm:$0xff] }
   0x6   :  { %166 = vmatprep.subr.bf16.mxu0 %v59_v6  ;;  %180 = vmatprep.mubr.bf16.mxu0 %v35_v14  ;;  %v56_v18 = vpack.c.bf16 %v44_v17, %v43_v16  ;;  %v55_v21 = vpack.c.bf16 %v42_v20, %v41_v19  ;;  %v39_v22 = vld [vmem:[%s310_s1 + $0x10] sm:$0xff]  ;;  %v40_v23 = vld [vmem:[%s310_s1 + $0x18] sm:$0xff]  ;;  %v37_v25 = vld [vmem:[%s310_s1] sm:$0xff] }
   0x7   :  { %v54_v24 = vpack.c.bf16 %v40_v23, %v39_v22  ;;  %v38_v26 = vld [vmem:[%s310_s1 + $0x8] sm:$0xff]  ;;  %v29_v28 = vld [vmem:[%s311_s0 + $0x10] sm:$0xff]  ;;  %v30_v29 = vld [vmem:[%s311_s0 + $0x18] sm:$0xff] }
   0x8   :  { %v53_v27 = vpack.c.bf16 %v38_v26, %v37_v25  ;;  %v36_v30 = vpack.c.bf16 %v30_v29, %v29_v28  ;;  %v33_v31 = vld [vmem:[#allocation2 + $0x10] sm:$0xff]  ;;  %v153_v43 = vld [vmem:[%s312_s2] ss:$0 sm:$0xff]  ;;  %v140_v52 = vld [vmem:[%s313_s3 + $0x18] sm:$0xff] }
   0x9   :  { %167 = vmatpush3.bf16.msra.mxu0 %v59_v6  ;;  %v31_v33 = vld [vmem:[#allocation2] sm:$0xff]  ;;  %v32_v39 = vld [vmem:[#allocation2 + $0x8] sm:$0xff]  ;;  %v139_v45 = vld [vmem:[%s313_s3 + $0x10] sm:$0xff] }
   0xa   :  { %168 = vmatprep.subr.bf16.mxu0 %v58_v9  ;;  %v34_v36 = vld [vmem:[#allocation2 + $0x18] sm:$0xff]  ;;  %v137_v48 = vld [vmem:[%s313_s3] sm:$0xff]  ;;  %v138_v56 = vld [vmem:[%s313_s3 + $0x8] sm:$0xff] }
   0xd   :  { %169 = vmatpush3.bf16.msra.mxu0 %v58_v9 }
   0xe   :  { %170 = vmatprep.subr.bf16.mxu0 %v57_v15 }
  0x11   :  { %171 = vmatpush3.bf16.msra.mxu0 %v57_v15 }
  0x12   :  { %172 = vmatprep.subr.bf16.mxu0 %v56_v18 }
  0x15   :  { %173 = vmatpush3.bf16.msra.mxu0 %v56_v18 }
  0x16   :  { %174 = vmatprep.subr.bf16.mxu0 %v55_v21 }
  0x19   :  { %175 = vmatpush3.bf16.msra.mxu0 %v55_v21 }
  0x1a   :  { %176 = vmatprep.subr.bf16.mxu0 %v54_v24 }
  0x1d   :  { %177 = vmatpush3.bf16.msra.mxu0 %v54_v24 }
  0x1e   :  { %178 = vmatprep.subr.bf16.mxu0 %v53_v27 }
  0x21   :  { %179 = vmatpush3.bf16.msra.mxu0 %v53_v27 }
  0x24   :  { %181 = vmatmul.mubr.bf16.vlgmr.msra.gmra.mxu0 %v36_v30 }
  0xe4   :  { %v182_v32 = vpop.f32.mrf.mxu0 }
  0xe5   :  { %v112_v34 = vadd.f32 %v182_v32, %v33_v31 }
  0xe6   :  { %v95_v35 = vpop.f32.mrf.mxu0 }
  0xe7   :  { %117 = vst.msk [vmem:[#allocation2 + $0x10] sm:$0xff] %vm22_vm0, %v112_v34  ;;  %v110_v37 = vadd.f32 %v95_v35, %v31_v33 }
  0xe8   :  { %v183_v38 = vpop.f32.mrf.mxu0 }
  0xe9   :  { %115 = vst.msk [vmem:[#allocation2] sm:$0xff] %vm22_vm0, %v110_v37  ;;  %v113_v40 = vadd.f32 %v183_v38, %v34_v36 }
  0xea   :  { %v98_v41 = vpop.f32.mrf.mxu0 }
  0xeb   :  { %118 = vst.msk [vmem:[#allocation2 + $0x18] sm:$0xff] %vm22_vm0, %v113_v40  ;;  %v111_v42 = vadd.f32 %v98_v41, %v32_v39 }
  0xed   :  { %116 = vst.msk [vmem:[#allocation2 + $0x8] sm:$0xff] %vm22_vm0, %v111_v42 }
  0xee   :  { %v124_v44 = vld [vmem:[#allocation2 + $0x10] sm:$0xff] }
  0xef   :  { %v135_v46 = vadd.f32 %v153_v43, %v124_v44 }
  0xf0   :  { %v122_v47 = vld [vmem:[#allocation2] sm:$0xff] }
  0xf1   :  { %v143_v49 = vadd.f32 %v139_v45, %v135_v46  ;;  %v133_v50 = vadd.f32 %v153_v43, %v122_v47 }
  0xf2   :  { %v125_v51 = vld [vmem:[#allocation2 + $0x18] sm:$0xff] }
  0xf3   :  { %147 = vst.msk [vmem:[%s314_s4 + $0x10] sm:$0xff] %vm22_vm0, %v143_v49  ;;  %v141_v53 = vadd.f32 %v137_v48, %v133_v50  ;;  %v136_v54 = vadd.f32 %v153_v43, %v125_v51 }
  0xf4   :  { %v123_v55 = vld [vmem:[#allocation2 + $0x8] sm:$0xff] }
  0xf5   :  { %145 = vst.msk [vmem:[%s314_s4] sm:$0xff] %vm22_vm0, %v141_v53  ;;  %v144_v57 = vadd.f32 %v140_v52, %v136_v54  ;;  %v134_v58 = vadd.f32 %v153_v43, %v123_v55 }
  0xf7   :  { %148 = vst.msk [vmem:[%s314_s4 + $0x18] sm:$0xff] %vm22_vm0, %v144_v57  ;;  %v142_v59 = vadd.f32 %v138_v56, %v134_v58 }
  0xf9   :  { %146 = vst.msk [vmem:[%s314_s4 + $0x8] sm:$0xff] %vm22_vm0, %v142_v59 }

// kernel: mae_forward.48
= control target key start
LH: loop header
LB: loop body
LE: loop exit
PB: predicated region body
PF: predicated region fallthrough
CT: control target
= control target key end

     0   :  { %vm38_vm0 = vcmask 261120   ;;  %v273_v31 = vmov 0   ;;  %vm26_vm1 = vcmask 523264   ;;  %s406_s0 = inlined_call_operand.vmem [shape: f32[32,32], index: 0, kind: input, shape index: {}]   ;;  %s407_s1 = inlined_call_operand.vmem [shape: f32[32,192], index: 1, kind: input, shape index: {}]   ;;  %s408_s3 = inlined_call_operand.vmem [shape: f32[1,32], index: 3, kind: input, shape index: {}]   ;;  %s409_s4 = inlined_call_operand.vmem [shape: f32[1,32], index: 4, kind: input, shape index: {}]   ;;  %s410_s2 = inlined_call_operand.vmem [shape: f32[1,192], index: 2, kind: input, shape index: {}]   ;;  %s411_s5 = inlined_call_operand.vmem [shape: f32[32,192], index: 5, kind: output, shape index: {}]  }
   0x1   :  { %v34_v0 = vld [vmem:[%s406_s0] sm:$0xff]  ;;  %v36_v1 = vld [vmem:[%s406_s0 + $0x10] sm:$0xff]  ;;  %v35_v2 = vld [vmem:[%s406_s0 + $0x8] sm:$0xff]  ;;  %174 = vmatprep.mubr.bf16.mxu0 %v273_v31  ;;  %184 = vmatprep.mubr.bf16.mxu1 %v273_v31 }
   0x2   :  { %v39_v3 = vsel %vm38_vm0, %v34_v0, 0.0  ;;  %v45_v4 = vsel %vm38_vm0, %v36_v1, 0.0  ;;  %v37_v5 = vld [vmem:[%s406_s0 + $0x18] sm:$0xff]  ;;  %v42_v6 = vsel %vm38_vm0, %v35_v2, 0.0  ;;  %v129_v28 = vld [vmem:[%s407_s1 + $0x28] sm:$0xff]  ;;  %v128_v30 = vld [vmem:[%s407_s1 + $0x20] sm:$0xff] }
   0x3   :  { %40 = vadd.xlane.f32.xlu0 %v39_v3  ;;  %46 = vadd.xlane.f32.xlu1 %v45_v4  ;;  %v48_v7 = vsel %vm38_vm0, %v37_v5, 0.0  ;;  %v131_v29 = vld [vmem:[%s407_s1 + $0x38] sm:$0xff]  ;;  %v130_v33 = vld [vmem:[%s407_s1 + $0x30] sm:$0xff]  ;;  %v125_v34 = vld [vmem:[%s407_s1 + $0x8] sm:$0xff] }
   0x4   :  { %v135_v32 = vpack.c.bf16 %v131_v29, %v129_v28  ;;  %v127_v35 = vld [vmem:[%s407_s1 + $0x18] sm:$0xff]  ;;  %v134_v36 = vpack.c.bf16 %v130_v33, %v128_v30  ;;  %v124_v38 = vld [vmem:[%s407_s1] sm:$0xff]  ;;  %v126_v39 = vld [vmem:[%s407_s1 + $0x10] sm:$0xff] }
   0x5   :  { %v133_v37 = vpack.c.bf16 %v127_v35, %v125_v34  ;;  %v132_v40 = vpack.c.bf16 %v126_v39, %v124_v38  ;;  %v255_v55 = vld [vmem:[%s408_s3] ss:$0 sm:$0xff] }
   0x6   :  { %154 = vmatprep.subr.bf16.mxu0 %v135_v32  ;;  %259 = vmatprep.subr.bf16.mxu1 %v135_v32  ;;  %v256_v60 = vld [vmem:[%s409_s4] ss:$0 sm:$0xff] }
   0x7   :  { %43 = vadd.xlane.f32.xlu0 %v42_v6  ;;  %49 = vadd.xlane.f32.xlu1 %v48_v7 }
   0x8   :  { %155 = vmatpush1.bf16.msra.mxu0 %v134_v36  ;;  %261 = vmatpush1.bf16.msra.mxu1 %v134_v36 }
   0x9   :  { %156 = vmatprep.subr.bf16.mxu0 %v133_v37  ;;  %260 = vmatprep.subr.bf16.mxu1 %v133_v37 }
   0xc   :  { %157 = vmatpush1.bf16.msra.mxu0 %v132_v40  ;;  %262 = vmatpush1.bf16.msra.mxu1 %v132_v40 }
  0x8c   :  { %v41_v8 = vpop.xlane.xlu0 %40  ;;  %v47_v9 = vpop.xlane.xlu1 %46 }
  0x8d   :  { %v52_v10 = vmul.f32 0.03125, %v41_v8  ;;  %v54_v11 = vmul.f32 0.03125, %v47_v9  ;;  %v274_v9 = vmov 0.0  }
  0x8e   :  { %27 = vst.msk [vmem:[#allocation2 + $0x8] sm:$0xff] %vm26_vm1, %v274_v9  ;;  %29 = vst.msk [vmem:[#allocation2 + $0x18] sm:$0xff] %vm26_vm1, %v274_v9 }
  0x8f   :  { %v56_v12 = vsub.f32 %v34_v0, %v52_v10  ;;  %v321_v13 = vsub.f32 %v36_v1, %v54_v11  ;;  %31 = vst.msk [vmem:[#allocation2 + $0x28] sm:$0xff] %vm26_vm1, %v274_v9  ;;  %33 = vst.msk [vmem:[#allocation2 + $0x38] sm:$0xff] %vm26_vm1, %v274_v9  ;;  %v225_v10 = vlaneseq }
  0x90   :  { %v44_v14 = vpop.xlane.xlu0 %43  ;;  %v50_v15 = vpop.xlane.xlu1 %49 }
  0x91   :  { %v53_v16 = vmul.f32 0.03125, %v44_v14  ;;  %v55_v17 = vmul.f32 0.03125, %v50_v15  ;;  %v60_v18 = vmul.f32 %v56_v12, %v56_v12  ;;  %v62_v19 = vmul.f32 %v321_v13, %v321_v13 }
  0x92   :  { %v226_v11 = vshrl.u32 %v225_v10, 7 }
  0x93   :  { %v57_v20 = vsub.f32 %v35_v2, %v53_v16  ;;  %v325_v21 = vsub.f32 %v37_v5, %v55_v17  ;;  %v64_v22 = vsel %vm38_vm0, %v60_v18, 0.0  ;;  %v70_v23 = vsel %vm38_vm0, %v62_v19, 0.0 }
  0x94   :  { %65 = vadd.xlane.f32.xlu0 %v64_v22 }
  0x95   :  { %v61_v24 = vmul.f32 %v57_v20, %v57_v20  ;;  %v63_v25 = vmul.f32 %v325_v21, %v325_v21  ;;  %v115_v16 = vld [vmem:[#allocation2 + $0x8] sm:$0xff]  ;;  %v117_v22 = vld [vmem:[#allocation2 + $0x18] sm:$0xff] }
  0x96   :  { %v121_v32 = vld [vmem:[#allocation2 + $0x38] sm:$0xff] }
  0x97   :  { %v67_v26 = vsel %vm38_vm0, %v61_v24, 0.0  ;;  %v73_v27 = vsel %vm38_vm0, %v63_v25, 0.0  ;;  %v231_v24 = vsub.s32 1, %v226_v11 }
  0x98   :  { %71 = vadd.xlane.f32.xlu0 %v70_v23  ;;  %68 = vadd.xlane.f32.xlu1 %v67_v26  ;;  %v119_v23 = vld [vmem:[#allocation2 + $0x28] sm:$0xff] }
  0x9c   :  { %74 = vadd.xlane.f32.xlu1 %v73_v27 }
 0x11d   :  { %v66_v41 = vpop.xlane.xlu0 %65 }
 0x11e   :  { %v76_v42 = vmul.f32 0.03125, %v66_v41 }
 0x120   :  { %v80_v43 = vadd.f32 1e-05, %v76_v42 }
 0x121   :  { %v69_v44 = vpop.xlane.xlu1 %68  ;;  %v72_v45 = vpop.xlane.xlu0 %71 }
 0x122   :  { %265 = vrsqrt.f32 %v80_v43  ;;  %v77_v46 = vmul.f32 0.03125, %v69_v44  ;;  %v78_v47 = vmul.f32 0.03125, %v72_v45 }
 0x124   :  { %v81_v48 = vadd.f32 1e-05, %v77_v46  ;;  %v82_v49 = vadd.f32 1e-05, %v78_v47 }
 0x125   :  { %v75_v50 = vpop.xlane.xlu1 %74 }
 0x126   :  { %267 = vrsqrt.f32 %v81_v48  ;;  %v79_v51 = vmul.f32 0.03125, %v75_v50 }
 0x127   :  { %269 = vrsqrt.f32 %v82_v49 }
 0x128   :  { %v83_v52 = vadd.f32 1e-05, %v79_v51 }
 0x12a   :  { %271 = vrsqrt.f32 %v83_v52 }
 0x12f   :  { %v266_v53 = vpop.eup %265 }
 0x130   :  { %v88_v54 = vmul.f32 %v266_v53, %v56_v12  ;;  %v227_v12 = vsub.s32 0, %v226_v11 }
 0x132   :  { %v99_v59 = vmul.f32 %v255_v55, %v88_v54 }
 0x133   :  { %v268_v56 = vpop.eup %267 }
 0x134   :  { %v270_v57 = vpop.eup %269  ;;  %v89_v58 = vmul.f32 %v268_v56, %v57_v20  ;;  %v110_v0 = vadd.f32 %v256_v60, %v99_v59 }
 0x135   :  { %v90_v61 = vmul.f32 %v270_v57, %v321_v13  ;;  %v223_v13 = vld [vmem:[%s410_s2] sm:$0x3] }
 0x136   :  { %v100_v62 = vmul.f32 %v255_v55, %v89_v58  ;;  %v228_v14 = vrot.slane %v223_v13, %v227_v12  ;;  %v232_v33 = vrot.slane %v223_v13, %v231_v24 }
 0x137   :  { %v272_v63 = vpop.eup %271  ;;  %v101_v3 = vmul.f32 %v255_v55, %v90_v61 }
 0x138   :  { %v111_v1 = vadd.f32 %v256_v60, %v100_v62  ;;  %v91_v2 = vmul.f32 %v272_v63, %v325_v21 }
 0x139   :  { %v112_v6 = vadd.f32 %v256_v60, %v101_v3 }
 0x13a   :  { %v122_v4 = vpack.c.bf16 %v111_v1, %v110_v0  ;;  %v102_v5 = vmul.f32 %v255_v55, %v91_v2 }
 0x13c   :  { %257 = vmatmul.mubr.msk.bf16.vlgmr.msra.gmra.mxu0 %vm38_vm0, %v122_v4  ;;  %v113_v7 = vadd.f32 %v256_v60, %v102_v5 }
 0x13e   :  { %v123_v8 = vpack.c.bf16 %v113_v7, %v112_v6 }
 0x140   :  { %258 = vmatmul.mubr.msk.bf16.vlgmr.msra.gmra.mxu1 %vm38_vm0, %v123_v8 }
 0x1fc   :  { %v176_v15 = vpop.f32.mrf.mxu0 }
 0x1fd   :  { %v235_v18 = vadd.f32 %v228_v14, %v176_v15 }
 0x1fe   :  { %v178_v17 = vpop.f32.mrf.mxu0 }
 0x1ff   :  { %v196_v19 = vadd.f32 %v178_v17, %v115_v16  ;;  %243 = vst [vmem:[%s411_s5] sm:$0xff] %v235_v18 }
 0x200   :  { %v180_v20 = vpop.f32.mrf.mxu0  ;;  %v186_v21 = vpop.f32.mrf.mxu1 }
 0x201   :  { %205 = vst.msk [vmem:[#allocation2 + $0x8] sm:$0xff] %vm26_vm1, %v196_v19  ;;  %v237_v27 = vadd.f32 %v228_v14, %v180_v20  ;;  %v239_v28 = vadd.f32 %v228_v14, %v186_v21 }
 0x202   :  { %v182_v25 = vpop.f32.mrf.mxu0  ;;  %v188_v26 = vpop.f32.mrf.mxu1 }
 0x203   :  { %v198_v29 = vadd.f32 %v182_v25, %v117_v22  ;;  %v200_v30 = vadd.f32 %v188_v26, %v119_v23  ;;  %245 = vst [vmem:[%s411_s5 + $0x10] sm:$0xff] %v237_v27  ;;  %247 = vst [vmem:[%s411_s5 + $0x20] sm:$0xff] %v239_v28 }
 0x204   :  { %v190_v31 = vpop.f32.mrf.mxu1 }
 0x205   :  { %207 = vst.msk [vmem:[#allocation2 + $0x18] sm:$0xff] %vm26_vm1, %v198_v29  ;;  %209 = vst.msk [vmem:[#allocation2 + $0x28] sm:$0xff] %vm26_vm1, %v200_v30  ;;  %v241_v35 = vadd.f32 %v228_v14, %v190_v31 }
 0x206   :  { %v192_v34 = vpop.f32.mrf.mxu1 }
 0x207   :  { %v202_v36 = vadd.f32 %v192_v34, %v121_v32  ;;  %249 = vst [vmem:[%s411_s5 + $0x30] sm:$0xff] %v241_v35 }
 0x208   :  { %v216_v37 = vld [vmem:[#allocation2 + $0x8] sm:$0xff] }
 0x209   :  { %v236_v38 = vadd.f32 %v232_v33, %v216_v37  ;;  %211 = vst.msk [vmem:[#allocation2 + $0x38] sm:$0xff] %vm26_vm1, %v202_v36 }
 0x20b   :  { %244 = vst.msk [vmem:[%s411_s5 + $0x8] sm:$0xff] %vm26_vm1, %v236_v38 }
 0x20c   :  { %v218_v39 = vld [vmem:[#allocation2 + $0x18] sm:$0xff]  ;;  %v220_v40 = vld [vmem:[#allocation2 + $0x28] sm:$0xff] }
 0x20d   :  { %v238_v41 = vadd.f32 %v232_v33, %v218_v39  ;;  %v240_v42 = vadd.f32 %v232_v33, %v220_v40 }
 0x20f   :  { %246 = vst.msk [vmem:[%s411_s5 + $0x18] sm:$0xff] %vm26_vm1, %v238_v41  ;;  %248 = vst.msk [vmem:[%s411_s5 + $0x28] sm:$0xff] %vm26_vm1, %v240_v42 }
 0x210   :  { %v222_v43 = vld [vmem:[#allocation2 + $0x38] sm:$0xff] }
 0x211   :  { %v242_v44 = vadd.f32 %v232_v33, %v222_v43 }
 0x213   :  { %250 = vst.msk [vmem:[%s411_s5 + $0x38] sm:$0xff] %vm26_vm1, %v242_v44 }

// kernel: mae_forward.49
= control target key start
LH: loop header
LB: loop body
LE: loop exit
PB: predicated region body
PF: predicated region fallthrough
CT: control target
= control target key end

     0   :  { %10 = vsyncpa [#allocation3], 0  ;;  %vm75_vm0 = vcmask 523264   ;;  %s296_s0 = inlined_call_operand.vmem [shape: f32[32,192], index: 0, kind: input, shape index: {}]   ;;  %s297_s1 = inlined_call_operand.vmem [shape: f32[32,192], index: 1, kind: input, shape index: {}]   ;;  %s298_s2 = inlined_call_operand.vmem [shape: f32[32,192], index: 2, kind: input, shape index: {}]   ;;  %s299_s3 = inlined_call_operand.hbm [shape: f32[1,1], index: 3, kind: output, shape index: {0}]   ;;  %s300_s4 = inlined_call_operand.hbm [shape: f32[1,1], index: 4, kind: output, shape index: {1}]  }
   0x1   :  { %v26_v0 = vld [vmem:[%s296_s0] sm:$0xff]  ;;  %v27_v1 = vld [vmem:[%s296_s0 + $0x8] sm:$0xff]  ;;  %v28_v2 = vld [vmem:[%s296_s0 + $0x10] sm:$0xff] }
   0x2   :  { %v29_v3 = vld [vmem:[%s296_s0 + $0x18] sm:$0xff]  ;;  %v30_v4 = vld [vmem:[%s296_s0 + $0x20] sm:$0xff]  ;;  %v31_v5 = vld [vmem:[%s296_s0 + $0x28] sm:$0xff] }
   0x3   :  { %v34_v6 = vld [vmem:[%s297_s1] sm:$0xff]  ;;  %v35_v7 = vld [vmem:[%s297_s1 + $0x8] sm:$0xff]  ;;  %v36_v8 = vld [vmem:[%s297_s1 + $0x10] sm:$0xff] }
   0x4   :  { %v37_v9 = vld [vmem:[%s297_s1 + $0x18] sm:$0xff]  ;;  %v42_v10 = vsub.f32 %v26_v0, %v34_v6  ;;  %v32_v11 = vld [vmem:[%s296_s0 + $0x30] sm:$0xff]  ;;  %v38_v13 = vld [vmem:[%s297_s1 + $0x20] sm:$0xff]  ;;  %v43_v15 = vsub.f32 %v27_v1, %v35_v7  ;;  %v44_v16 = vsub.f32 %v28_v2, %v36_v8 }
   0x5   :  { %v33_v12 = vld [vmem:[%s296_s0 + $0x38] sm:$0xff]  ;;  %v39_v14 = vld [vmem:[%s297_s1 + $0x28] sm:$0xff]  ;;  %v45_v17 = vsub.f32 %v29_v3, %v37_v9  ;;  %v46_v19 = vsub.f32 %v30_v4, %v38_v13  ;;  %v58_v22 = vld [vmem:[%s298_s2] sm:$0xff] }
   0x6   :  { %v41_v18 = vld [vmem:[%s297_s1 + $0x38] sm:$0xff]  ;;  %v47_v20 = vsub.f32 %v31_v5, %v39_v14  ;;  %v50_v21 = vmul.f32 %v42_v10, %v42_v10  ;;  %v59_v23 = vld [vmem:[%s298_s2 + $0x8] sm:$0xff]  ;;  %v40_v24 = vld [vmem:[%s297_s1 + $0x30] sm:$0xff]  ;;  %v51_v25 = vmul.f32 %v43_v15, %v43_v15  ;;  %v52_v26 = vmul.f32 %v44_v16, %v44_v16 }
   0x7   :  { %v53_v27 = vmul.f32 %v45_v17, %v45_v17  ;;  %v60_v28 = vld [vmem:[%s298_s2 + $0x10] sm:$0xff]  ;;  %v61_v29 = vld [vmem:[%s298_s2 + $0x18] sm:$0xff]  ;;  %v49_v31 = vsub.f32 %v33_v12, %v41_v18 }
   0x8   :  { %v66_v30 = vmul.f32 %v58_v22, %v50_v21  ;;  %v55_v32 = vmul.f32 %v47_v20, %v47_v20  ;;  %v67_v33 = vmul.f32 %v59_v23, %v51_v25 }
   0x9   :  { %v69_v34 = vmul.f32 %v61_v29, %v53_v27 }
   0xa   :  { %11 = vsyncpa [#allocation5], 0  ;;  %v48_v35 = vsub.f32 %v32_v11, %v40_v24  ;;  %v54_v36 = vmul.f32 %v46_v19, %v46_v19  ;;  %v63_v37 = vld [vmem:[%s298_s2 + $0x28] sm:$0xff]  ;;  %v68_v38 = vmul.f32 %v60_v28, %v52_v26  ;;  %v108_v39 = vsel %vm75_vm0, %v59_v23, 0.0  ;;  %v62_v40 = vld [vmem:[%s298_s2 + $0x20] sm:$0xff]  ;;  %s183_s10 = smov [#allocation2]  }
   0xb   :  { %v76_v41 = vsel %vm75_vm0, %v67_v33, 0.0  ;;  %v109_v42 = vadd.f32 %v108_v39, %v58_v22  ;;  %v111_v44 = vsel %vm75_vm0, %v61_v29, 0.0  ;;  %v57_v45 = vmul.f32 %v49_v31, %v49_v31  ;;  %v65_v50 = vld [vmem:[%s298_s2 + $0x38] sm:$0xff]  ;;  %v64_v53 = vld [vmem:[%s298_s2 + $0x30] sm:$0xff]  ;;  %s184_s13 = smov [#allocation4]  }
   0xc   :  { %v77_v43 = vadd.f32 %v76_v41, %v66_v30  ;;  %v71_v46 = vmul.f32 %v63_v37, %v55_v32  ;;  %v79_v47 = vsel %vm75_vm0, %v69_v34, 0.0  ;;  %v56_v49 = vmul.f32 %v48_v35, %v48_v35 }
   0xd   :  { %v110_v48 = vadd.f32 %v109_v42, %v60_v28  ;;  %v70_v51 = vmul.f32 %v62_v40, %v54_v36  ;;  %v114_v56 = vsel %vm75_vm0, %v63_v37, 0.0  ;;  %v73_v57 = vmul.f32 %v65_v50, %v57_v45 }
   0xe   :  { %v78_v52 = vadd.f32 %v77_v43, %v68_v38  ;;  %v82_v58 = vsel %vm75_vm0, %v71_v46, 0.0  ;;  %v72_v60 = vmul.f32 %v64_v53, %v56_v49  ;;  %v117_v3 = vsel %vm75_vm0, %v65_v50, 0.0 }
   0xf   :  { %v112_v54 = vadd.f32 %v111_v44, %v110_v48  ;;  %v85_v0 = vsel %vm75_vm0, %v73_v57, 0.0 }
  0x10   :  { %v80_v55 = vadd.f32 %v79_v47, %v78_v52 }
  0x11   :  { %v113_v59 = vadd.f32 %v112_v54, %v62_v40 }
  0x12   :  { %v81_v61 = vadd.f32 %v80_v55, %v70_v51 }
  0x13   :  { %v115_v62 = vadd.f32 %v114_v56, %v113_v59 }
  0x14   :  { %v83_v63 = vadd.f32 %v82_v58, %v81_v61 }
  0x15   :  { %v116_v2 = vadd.f32 %v115_v62, %v64_v53 }
  0x16   :  { %v84_v1 = vadd.f32 %v83_v63, %v72_v60 }
  0x17   :  { %v118_v5 = vadd.f32 %v117_v3, %v116_v2 }
  0x18   :  { %v86_v4 = vadd.f32 %v85_v0, %v84_v1 }
  0x1a   :  { %87 = vadd.xlane.f32.xlu0 %v86_v4 }
  0x1e   :  { %119 = vadd.xlane.f32.xlu0 %v118_v5 }
  0xa3   :  { %v88_v6 = vpop.xlane.xlu0 %87 }
  0xa4   :  { %v89_v7 = vrot.slane %v88_v6, 4 }
  0xa6   :  { %v90_v8 = vadd.f32 %v89_v7, %v88_v6 }
  0xa7   :  { %v120_v9 = vpop.xlane.xlu0 %119 }
  0xa8   :  { %v91_v10 = vrot.slane %v90_v8, 2  ;;  %v121_v11 = vrot.slane %v120_v9, 4 }
  0xaa   :  { %v122_v12 = vadd.f32 %v121_v11, %v120_v9  ;;  %v92_v13 = vadd.f32 %v91_v10, %v90_v8 }
  0xac   :  { %v123_v14 = vrot.slane %v122_v12, 2  ;;  %v93_v15 = vrot.slane %v92_v13, 1 }
  0xae   :  { %v124_v16 = vadd.f32 %v123_v14, %v122_v12  ;;  %v94_v17 = vadd.f32 %v93_v15, %v92_v13 }
  0xb0   :  { %156 = vpush %v94_v17  ;;  %v125_v18 = vrot.slane %v124_v16, 1 }
  0xb2   :  { %v126_v19 = vadd.f32 %v125_v18, %v124_v16 }
  0xb4   :  { %158 = vpush %v126_v19 }
  0xe1   :  { %s157_s2 = spop %156 }
  0xe2   :  { %98 = sst [smem:[#allocation2]] %s157_s2 }
  0xe3   :  { %138 = dma.smem_to_hbm %s183_s10, 16, %s299_s3, [#allocation3]  }
  0xe5   :  { %s159_s9 = spop %158 }
  0xe6   :  { %130 = sst [smem:[#allocation4]] %s159_s9 }
  0xe7   :  { %146 = dma.smem_to_hbm %s184_s13, 16, %s300_s4, [#allocation5]  }
  0xe8   :  { %179 = dma.done.wait [#allocation3], 16  }
  0xe9   :  { %180 = vsyncadd [#allocation3], 4294967280 }
  0xea   :  { %181 = dma.done.wait [#allocation5], 16  }
  0xeb   :  { %182 = vsyncadd [#allocation5], 4294967280 }
  0xec   :  { %153 = sfence }
  0xed   :  { %154 = vsyncpa [#allocation3], 1 }
  0xee   :  { %155 = vsyncpa [#allocation5], 1 }

</bundles_post_ra>
